<compile_context>
chip_gen: v6e
topology: v6e:2x2x1
jax: 0.10.0
libtpu: 0.0.40
codegen_flags: <defaults>
</compile_context>

<pallas_src>
import numpy as np
import jax
import jax.numpy as jnp
from jax import lax
from jax.experimental import pallas as pl
from jax.experimental.pallas import tpu as pltpu


HIN = 13           # conv3 input spatial (5x5 valid -> 9x9, matching up_size=9)
HOUT = 9           # conv3 output spatial
HP = 4             # pooled spatial (MaxPool2d(2,2) on 9x9)
CIN = 64
C = 128
KCOL = 25 * CIN    # 1600 im2col channels
KPAD = -(-KCOL // 128) * 128   # 1664, lane-aligned


def _round_up(x, m):
    return -(-x // m) * m


def _bilinear_matrix(in_size, out_size):
    """PyTorch nn.Upsample(mode='bilinear', align_corners=False) 1-D matrix."""
    scale = in_size / out_size
    m = np.zeros((out_size, in_size), np.float32)
    for i in range(out_size):
        s = max(scale * (i + 0.5) - 0.5, 0.0)
        i0 = min(int(np.floor(s)), in_size - 1)
        i1 = min(i0 + 1, in_size - 1)
        l1 = float(s - i0)
        m[i, i0] += 1.0 - l1
        m[i, i1] += l1
    return m


def _build_tables(B, rpad):
    """Trace-time constant gather / interpolation matrices (tiny, exact in bf16)."""
    prows = B * HP * HP

    # MaxPool2d(2,2): 4 candidate gathers stacked along rows -> one matmul.
    gpool = np.zeros((4 * prows, rpad), np.float32)
    for d in range(4):
        dh, dw = d // 2, d % 2
        for b in range(B):
            for ph in range(HP):
                for pw in range(HP):
                    gpool[d * prows + b * 16 + ph * 4 + pw,
                          b * 81 + (2 * ph + dh) * 9 + (2 * pw + dw)] = 1.0

    # 3x3 "same" conv shift/selection matrices stacked along rows -> one matmul.
    s2 = np.zeros((9 * prows, prows), np.float32)
    for k in range(9):
        kh, kw = k // 3, k % 3
        for b in range(B):
            for ho in range(HP):
                for wo in range(HP):
                    hi, wi = ho + kh - 1, wo + kw - 1
                    if 0 <= hi < HP and 0 <= wi < HP:
                        s2[k * prows + b * 16 + ho * 4 + wo,
                           b * 16 + hi * 4 + wi] = 1.0

    # Bilinear upsample 4x4 -> 9x9 as a block-diagonal (rpad, B*16) matmul (f32).
    m = _bilinear_matrix(HP, HOUT)          # (9, 4)
    u = np.kron(m, m)                       # (81, 16)
    ubig = np.zeros((rpad, prows), np.float32)
    for b in range(B):
        ubig[b * 81:(b + 1) * 81, b * 16:(b + 1) * 16] = u

    return gpool, s2, ubig


def _make_fused_kernel(n_valid, prows, eps=1e-5):
    def kernel(xc_ref, w1_ref, b1_ref, gp_ref, s2_ref, w2_ref, b2_ref,
               ub_ref, gamma_ref, beta_ref, out_ref):
        f32 = jnp.float32
        bf16 = jnp.bfloat16

        # ---- conv3 (5x5 valid) + row compaction: ONE bf16 MXU matmul over im2col.
        identity = jnp.dot(xc_ref[...], w1_ref[...],
                           preferred_element_type=f32) + b1_ref[...]   # (rpad, 128) f32
        identity_b = identity.astype(bf16)

        # ---- MaxPool2d(2,2): one stacked gather matmul + 3 VPU maxes.
        pg = jnp.dot(gp_ref[...], identity_b, preferred_element_type=f32)  # (4*prows, 128)
        pooled = jnp.maximum(
            jnp.maximum(pg[0 * prows:1 * prows], pg[1 * prows:2 * prows]),
            jnp.maximum(pg[2 * prows:3 * prows], pg[3 * prows:4 * prows]))  # (prows, 128)
        pooled_b = pooled.astype(bf16)

        # ---- Conv2d(128,128,3,pad=1): one stacked shift matmul, then 9 full-K
        #      (prows,128)@(128,128) bf16 weight matmuls on static 32-row slices.
        shifted = jnp.dot(s2_ref[...], pooled_b,
                          preferred_element_type=f32).astype(bf16)      # (9*prows, 128)
        y = None
        for k in range(9):
            t = jnp.dot(shifted[k * prows:(k + 1) * prows], w2_ref[k],
                        preferred_element_type=f32)
            y = t if y is None else y + t
        y = y + b2_ref[...]                                              # (prows, 128) f32

        # ---- bilinear upsample (block-diag matmul, f32) + sigmoid + residual.
        up = jnp.dot(ub_ref[...], y, preferred_element_type=f32)        # (rpad, 128)
        sig = pl.reciprocal(1.0 + jnp.exp(-up), approx=True)            # EUP exp + recip
        z = identity * (1.0 + sig)

        # ---- BatchNorm2d (training batch stats, biased var, pad rows masked) + ReLU.
        row = lax.broadcasted_iota(jnp.int32, (z.shape[0], 1), 0)
        mask = row < n_valid
        zm = jnp.where(mask, z, 0.0)
        mean = jnp.sum(zm, axis=0, keepdims=True) / float(n_valid)
        zc = z - mean
        zcm = jnp.where(mask, zc, 0.0)
        var = jnp.sum(zcm * zcm, axis=0, keepdims=True) / float(n_valid)
        inv = gamma_ref[...] * lax.rsqrt(var + eps)
        out_ref[...] = jnp.maximum(zc * inv + beta_ref[...], 0.0)

    return kernel


def res_addnet_forward(x_nchw, params):
    B, Cin, Hin, Win = x_nchw.shape
    assert (Cin, Hin, Win) == (CIN, HIN, HIN), \
        "conv3(64,128,5,valid) + res_unit(up_size=9) implies a 64x13x13 input"

    rvalid = B * HOUT * HOUT                 # 162 output rows
    rpad = _round_up(rvalid, 16)             # sublane-clean even for bf16 tiles
    prows = B * HP * HP                      # 32 pooled rows

    gpool, s2, ubig = _build_tables(B, rpad)

    # Wrapper-side im2col: (rpad, KPAD) bf16 slab; row = b*81 + h*9 + w,
    # col = (kh*5 + kw)*64 + c; zero padded on both axes.
    x_nhwc = jnp.transpose(x_nchw, (0, 2, 3, 1)).astype(jnp.float32)     # (B,13,13,64)
    patches = [x_nhwc[:, kh:kh + HOUT, kw:kw + HOUT, :]
               for kh in range(5) for kw in range(5)]
    xcol = jnp.stack(patches, axis=3).reshape(rvalid, KCOL)
    xcol = jnp.pad(xcol, ((0, rpad - rvalid), (0, KPAD - KCOL)))
    xcol = xcol.astype(jnp.bfloat16)

    # Reshaped / per-tap weights.
    w1col = jnp.transpose(params["conv3_w"], (2, 3, 1, 0)).reshape(KCOL, C)
    w1col = jnp.pad(w1col, ((0, KPAD - KCOL), (0, 0))).astype(jnp.bfloat16)
    b1 = params["conv3_b"].reshape(1, C).astype(jnp.float32)
    w2r = jnp.transpose(params["at_conv_w"], (2, 3, 1, 0)).reshape(9, C, C)
    w2r = w2r.astype(jnp.bfloat16)
    b2 = params["at_conv_b"].reshape(1, C).astype(jnp.float32)
    gamma = params["bn_gamma"].reshape(1, C).astype(jnp.float32)
    beta = params["bn_beta"].reshape(1, C).astype(jnp.float32)

    args = (xcol, w1col, b1,
            jnp.asarray(gpool, jnp.bfloat16),   # 0/1 -> exact in bf16
            jnp.asarray(s2, jnp.bfloat16),      # 0/1 -> exact in bf16
            w2r, b2,
            jnp.asarray(ubig, jnp.float32),     # keep bilinear weights f32
            gamma, beta)

    def _spec(a):
        nd = a.ndim
        return pl.BlockSpec(a.shape, lambda i, _nd=nd: (0,) * _nd)

    out2d = pl.pallas_call(
        _make_fused_kernel(rvalid, prows),
        out_shape=jax.ShapeDtypeStruct((rpad, C), jnp.float32),
        grid=(1,),
        in_specs=[_spec(a) for a in args],
        out_specs=pl.BlockSpec((rpad, C), lambda i: (0, 0)),
        compiler_params=pltpu.CompilerParams(
            dimension_semantics=("arbitrary",)),
    )(*args)

    out = out2d[:rvalid].reshape(B, HOUT, HOUT, C)
    return jnp.transpose(out, (0, 3, 1, 2))                              # (B, 128, 9, 9)


def init_params(key):
    ks = jax.random.split(key, 6)
    return {
        "conv3_w": jax.random.normal(ks[0], (128, 64, 5, 5), jnp.float32) * 0.02,
        "conv3_b": jax.random.normal(ks[1], (128,), jnp.float32) * 0.02,
        "at_conv_w": jax.random.normal(ks[2], (128, 128, 3, 3), jnp.float32) * 0.02,
        "at_conv_b": jax.random.normal(ks[3], (128,), jnp.float32) * 0.02,
        "bn_gamma": 1.0 + 0.1 * jax.random.normal(ks[4], (128,), jnp.float32),
        "bn_beta": 0.1 * jax.random.normal(ks[5], (128,), jnp.float32),
    }


if __name__ == "__main__":
    key = jax.random.PRNGKey(0)
    kp, kx = jax.random.split(key)
    params = init_params(kp)
    # Input NCHW: 13x13 spatial so conv3(5x5, valid) -> 9x9, matching up_size=9.
    x = jax.random.normal(kx, (2, 64, 13, 13), jnp.float32)
    out = jax.jit(res_addnet_forward)(x, params)
    out = jax.block_until_ready(out)
    assert out.shape == (2, 128, 9, 9)
    assert bool(jnp.all(jnp.isfinite(out)))
    assert bool(jnp.all(out >= 0.0))   # post-ReLU
    print("KERNEL_OK")
</pallas_src>

<mosaic_0001>
module attributes {stable_mosaic.version = 11 : i64} {
  func.func @kernel(%arg0: i32, %arg1: memref<176x1664xbf16, #tpu.memory_space<vmem>>, %arg2: memref<1664x128xbf16, #tpu.memory_space<vmem>>, %arg3: memref<1x128xf32, #tpu.memory_space<vmem>>, %arg4: memref<128x176xbf16, #tpu.memory_space<vmem>>, %arg5: memref<288x32xbf16, #tpu.memory_space<vmem>>, %arg6: memref<9x128x128xbf16, #tpu.memory_space<vmem>>, %arg7: memref<1x128xf32, #tpu.memory_space<vmem>>, %arg8: memref<176x32xf32, #tpu.memory_space<vmem>>, %arg9: memref<1x128xf32, #tpu.memory_space<vmem>>, %arg10: memref<1x128xf32, #tpu.memory_space<vmem>>, %arg11: memref<176x128xf32, #tpu.memory_space<vmem>>) attributes {dimension_semantics = [#tpu.dimension_semantics<arbitrary>], iteration_bounds = array<i64: 1>, scalar_prefetch = 0 : i64, scratch_operands = 0 : i64, tpu.core_type = #tpu.core_type<tc>, window_params = [{pipeline_mode = #tpu.pipeline_mode<synchronous>, transform_indices = @transform_0, window_bounds = array<i64: 176, 1664>}, {pipeline_mode = #tpu.pipeline_mode<synchronous>, transform_indices = @transform_1, window_bounds = array<i64: 1664, 128>}, {pipeline_mode = #tpu.pipeline_mode<synchronous>, transform_indices = @transform_2, window_bounds = array<i64: 1, 128>}, {pipeline_mode = #tpu.pipeline_mode<synchronous>, transform_indices = @transform_3, window_bounds = array<i64: 128, 176>}, {pipeline_mode = #tpu.pipeline_mode<synchronous>, transform_indices = @transform_4, window_bounds = array<i64: 288, 32>}, {pipeline_mode = #tpu.pipeline_mode<synchronous>, transform_indices = @transform_5, window_bounds = array<i64: 9, 128, 128>}, {pipeline_mode = #tpu.pipeline_mode<synchronous>, transform_indices = @transform_6, window_bounds = array<i64: 1, 128>}, {pipeline_mode = #tpu.pipeline_mode<synchronous>, transform_indices = @transform_7, window_bounds = array<i64: 176, 32>}, {pipeline_mode = #tpu.pipeline_mode<synchronous>, transform_indices = @transform_8, window_bounds = array<i64: 1, 128>}, {pipeline_mode = #tpu.pipeline_mode<synchronous>, transform_indices = @transform_9, window_bounds = array<i64: 1, 128>}, {pipeline_mode = #tpu.pipeline_mode<synchronous>, transform_indices = @transform_10, window_bounds = array<i64: 176, 128>}]} {
    %c0 = arith.constant 0 : index
    %c0_0 = arith.constant 0 : index
    %0 = vector.load %arg1[%c0, %c0_0] : memref<176x1664xbf16, #tpu.memory_space<vmem>>, vector<176x1664xbf16>
    %c0_1 = arith.constant 0 : index
    %c0_2 = arith.constant 0 : index
    %1 = vector.load %arg2[%c0_1, %c0_2] : memref<1664x128xbf16, #tpu.memory_space<vmem>>, vector<1664x128xbf16>
    %cst = arith.constant dense<0.000000e+00> : vector<176x128xf32>
    %2 = tpu.matmul %0, %1, %cst {dimension_numbers = #tpu.dot_dimension_numbers<[1], [0], [0], [1], [0, 0, 1, 1], [], []>} : vector<176x1664xbf16>, vector<1664x128xbf16>, vector<176x128xf32> -> vector<176x128xf32>
    %c0_3 = arith.constant 0 : index
    %c0_4 = arith.constant 0 : index
    %3 = vector.load %arg3[%c0_3, %c0_4] : memref<1x128xf32, #tpu.memory_space<vmem>>, vector<1x128xf32>
    %4 = vector.broadcast %3 : vector<1x128xf32> to vector<176x128xf32>
    %5 = arith.addf %2, %4 : vector<176x128xf32>
    %6 = arith.truncf %5 : vector<176x128xf32> to vector<176x128xbf16>
    %c0_5 = arith.constant 0 : index
    %c0_6 = arith.constant 0 : index
    %7 = vector.load %arg4[%c0_5, %c0_6] : memref<128x176xbf16, #tpu.memory_space<vmem>>, vector<128x176xbf16>
    %cst_7 = arith.constant dense<0.000000e+00> : vector<128x128xf32>
    %8 = tpu.matmul %7, %6, %cst_7 {dimension_numbers = #tpu.dot_dimension_numbers<[1], [0], [0], [1], [0, 0, 1, 1], [], []>} : vector<128x176xbf16>, vector<176x128xbf16>, vector<128x128xf32> -> vector<128x128xf32>
    %9 = vector.extract_strided_slice %8 {offsets = [0, 0], sizes = [32, 128], strides = [1, 1]} : vector<128x128xf32> to vector<32x128xf32>
    %10 = vector.extract_strided_slice %8 {offsets = [32, 0], sizes = [32, 128], strides = [1, 1]} : vector<128x128xf32> to vector<32x128xf32>
    %11 = arith.maximumf %9, %10 : vector<32x128xf32>
    %12 = vector.extract_strided_slice %8 {offsets = [64, 0], sizes = [32, 128], strides = [1, 1]} : vector<128x128xf32> to vector<32x128xf32>
    %13 = vector.extract_strided_slice %8 {offsets = [96, 0], sizes = [32, 128], strides = [1, 1]} : vector<128x128xf32> to vector<32x128xf32>
    %14 = arith.maximumf %12, %13 : vector<32x128xf32>
    %15 = arith.maximumf %11, %14 : vector<32x128xf32>
    %16 = arith.truncf %15 : vector<32x128xf32> to vector<32x128xbf16>
    %c0_8 = arith.constant 0 : index
    %c0_9 = arith.constant 0 : index
    %17 = vector.load %arg5[%c0_8, %c0_9] : memref<288x32xbf16, #tpu.memory_space<vmem>>, vector<288x32xbf16>
    %cst_10 = arith.constant dense<0.000000e+00> : vector<288x128xf32>
    %18 = tpu.matmul %17, %16, %cst_10 {dimension_numbers = #tpu.dot_dimension_numbers<[1], [0], [0], [1], [0, 0, 1, 1], [], []>} : vector<288x32xbf16>, vector<32x128xbf16>, vector<288x128xf32> -> vector<288x128xf32>
    %19 = arith.truncf %18 : vector<288x128xf32> to vector<288x128xbf16>
    %20 = vector.extract_strided_slice %19 {offsets = [0, 0], sizes = [32, 128], strides = [1, 1]} : vector<288x128xbf16> to vector<32x128xbf16>
    %c0_11 = arith.constant 0 : index
    %c0_12 = arith.constant 0 : index
    %c0_13 = arith.constant 0 : index
    %21 = vector.load %arg6[%c0_11, %c0_12, %c0_13] : memref<9x128x128xbf16, #tpu.memory_space<vmem>>, vector<1x128x128xbf16>
    %22 = vector.shape_cast %21 : vector<1x128x128xbf16> to vector<128x128xbf16>
    %cst_14 = arith.constant dense<0.000000e+00> : vector<32x128xf32>
    %23 = tpu.matmul %20, %22, %cst_14 {dimension_numbers = #tpu.dot_dimension_numbers<[1], [0], [0], [1], [0, 0, 1, 1], [], []>} : vector<32x128xbf16>, vector<128x128xbf16>, vector<32x128xf32> -> vector<32x128xf32>
    %24 = vector.extract_strided_slice %19 {offsets = [32, 0], sizes = [32, 128], strides = [1, 1]} : vector<288x128xbf16> to vector<32x128xbf16>
    %c1 = arith.constant 1 : index
    %c0_15 = arith.constant 0 : index
    %c0_16 = arith.constant 0 : index
    %25 = vector.load %arg6[%c1, %c0_15, %c0_16] : memref<9x128x128xbf16, #tpu.memory_space<vmem>>, vector<1x128x128xbf16>
    %26 = vector.shape_cast %25 : vector<1x128x128xbf16> to vector<128x128xbf16>
    %cst_17 = arith.constant dense<0.000000e+00> : vector<32x128xf32>
    %27 = tpu.matmul %24, %26, %cst_17 {dimension_numbers = #tpu.dot_dimension_numbers<[1], [0], [0], [1], [0, 0, 1, 1], [], []>} : vector<32x128xbf16>, vector<128x128xbf16>, vector<32x128xf32> -> vector<32x128xf32>
    %28 = arith.addf %23, %27 : vector<32x128xf32>
    %29 = vector.extract_strided_slice %19 {offsets = [64, 0], sizes = [32, 128], strides = [1, 1]} : vector<288x128xbf16> to vector<32x128xbf16>
    %c2 = arith.constant 2 : index
    %c0_18 = arith.constant 0 : index
    %c0_19 = arith.constant 0 : index
    %30 = vector.load %arg6[%c2, %c0_18, %c0_19] : memref<9x128x128xbf16, #tpu.memory_space<vmem>>, vector<1x128x128xbf16>
    %31 = vector.shape_cast %30 : vector<1x128x128xbf16> to vector<128x128xbf16>
    %cst_20 = arith.constant dense<0.000000e+00> : vector<32x128xf32>
    %32 = tpu.matmul %29, %31, %cst_20 {dimension_numbers = #tpu.dot_dimension_numbers<[1], [0], [0], [1], [0, 0, 1, 1], [], []>} : vector<32x128xbf16>, vector<128x128xbf16>, vector<32x128xf32> -> vector<32x128xf32>
    %33 = arith.addf %28, %32 : vector<32x128xf32>
    %34 = vector.extract_strided_slice %19 {offsets = [96, 0], sizes = [32, 128], strides = [1, 1]} : vector<288x128xbf16> to vector<32x128xbf16>
    %c3 = arith.constant 3 : index
    %c0_21 = arith.constant 0 : index
    %c0_22 = arith.constant 0 : index
    %35 = vector.load %arg6[%c3, %c0_21, %c0_22] : memref<9x128x128xbf16, #tpu.memory_space<vmem>>, vector<1x128x128xbf16>
    %36 = vector.shape_cast %35 : vector<1x128x128xbf16> to vector<128x128xbf16>
    %cst_23 = arith.constant dense<0.000000e+00> : vector<32x128xf32>
    %37 = tpu.matmul %34, %36, %cst_23 {dimension_numbers = #tpu.dot_dimension_numbers<[1], [0], [0], [1], [0, 0, 1, 1], [], []>} : vector<32x128xbf16>, vector<128x128xbf16>, vector<32x128xf32> -> vector<32x128xf32>
    %38 = arith.addf %33, %37 : vector<32x128xf32>
    %39 = vector.extract_strided_slice %19 {offsets = [128, 0], sizes = [32, 128], strides = [1, 1]} : vector<288x128xbf16> to vector<32x128xbf16>
    %c4 = arith.constant 4 : index
    %c0_24 = arith.constant 0 : index
    %c0_25 = arith.constant 0 : index
    %40 = vector.load %arg6[%c4, %c0_24, %c0_25] : memref<9x128x128xbf16, #tpu.memory_space<vmem>>, vector<1x128x128xbf16>
    %41 = vector.shape_cast %40 : vector<1x128x128xbf16> to vector<128x128xbf16>
    %cst_26 = arith.constant dense<0.000000e+00> : vector<32x128xf32>
    %42 = tpu.matmul %39, %41, %cst_26 {dimension_numbers = #tpu.dot_dimension_numbers<[1], [0], [0], [1], [0, 0, 1, 1], [], []>} : vector<32x128xbf16>, vector<128x128xbf16>, vector<32x128xf32> -> vector<32x128xf32>
    %43 = arith.addf %38, %42 : vector<32x128xf32>
    %44 = vector.extract_strided_slice %19 {offsets = [160, 0], sizes = [32, 128], strides = [1, 1]} : vector<288x128xbf16> to vector<32x128xbf16>
    %c5 = arith.constant 5 : index
    %c0_27 = arith.constant 0 : index
    %c0_28 = arith.constant 0 : index
    %45 = vector.load %arg6[%c5, %c0_27, %c0_28] : memref<9x128x128xbf16, #tpu.memory_space<vmem>>, vector<1x128x128xbf16>
    %46 = vector.shape_cast %45 : vector<1x128x128xbf16> to vector<128x128xbf16>
    %cst_29 = arith.constant dense<0.000000e+00> : vector<32x128xf32>
    %47 = tpu.matmul %44, %46, %cst_29 {dimension_numbers = #tpu.dot_dimension_numbers<[1], [0], [0], [1], [0, 0, 1, 1], [], []>} : vector<32x128xbf16>, vector<128x128xbf16>, vector<32x128xf32> -> vector<32x128xf32>
    %48 = arith.addf %43, %47 : vector<32x128xf32>
    %49 = vector.extract_strided_slice %19 {offsets = [192, 0], sizes = [32, 128], strides = [1, 1]} : vector<288x128xbf16> to vector<32x128xbf16>
    %c6 = arith.constant 6 : index
    %c0_30 = arith.constant 0 : index
    %c0_31 = arith.constant 0 : index
    %50 = vector.load %arg6[%c6, %c0_30, %c0_31] : memref<9x128x128xbf16, #tpu.memory_space<vmem>>, vector<1x128x128xbf16>
    %51 = vector.shape_cast %50 : vector<1x128x128xbf16> to vector<128x128xbf16>
    %cst_32 = arith.constant dense<0.000000e+00> : vector<32x128xf32>
    %52 = tpu.matmul %49, %51, %cst_32 {dimension_numbers = #tpu.dot_dimension_numbers<[1], [0], [0], [1], [0, 0, 1, 1], [], []>} : vector<32x128xbf16>, vector<128x128xbf16>, vector<32x128xf32> -> vector<32x128xf32>
    %53 = arith.addf %48, %52 : vector<32x128xf32>
    %54 = vector.extract_strided_slice %19 {offsets = [224, 0], sizes = [32, 128], strides = [1, 1]} : vector<288x128xbf16> to vector<32x128xbf16>
    %c7 = arith.constant 7 : index
    %c0_33 = arith.constant 0 : index
    %c0_34 = arith.constant 0 : index
    %55 = vector.load %arg6[%c7, %c0_33, %c0_34] : memref<9x128x128xbf16, #tpu.memory_space<vmem>>, vector<1x128x128xbf16>
    %56 = vector.shape_cast %55 : vector<1x128x128xbf16> to vector<128x128xbf16>
    %cst_35 = arith.constant dense<0.000000e+00> : vector<32x128xf32>
    %57 = tpu.matmul %54, %56, %cst_35 {dimension_numbers = #tpu.dot_dimension_numbers<[1], [0], [0], [1], [0, 0, 1, 1], [], []>} : vector<32x128xbf16>, vector<128x128xbf16>, vector<32x128xf32> -> vector<32x128xf32>
    %58 = arith.addf %53, %57 : vector<32x128xf32>
    %59 = vector.extract_strided_slice %19 {offsets = [256, 0], sizes = [32, 128], strides = [1, 1]} : vector<288x128xbf16> to vector<32x128xbf16>
    %c8 = arith.constant 8 : index
    %c0_36 = arith.constant 0 : index
    %c0_37 = arith.constant 0 : index
    %60 = vector.load %arg6[%c8, %c0_36, %c0_37] : memref<9x128x128xbf16, #tpu.memory_space<vmem>>, vector<1x128x128xbf16>
    %61 = vector.shape_cast %60 : vector<1x128x128xbf16> to vector<128x128xbf16>
    %cst_38 = arith.constant dense<0.000000e+00> : vector<32x128xf32>
    %62 = tpu.matmul %59, %61, %cst_38 {dimension_numbers = #tpu.dot_dimension_numbers<[1], [0], [0], [1], [0, 0, 1, 1], [], []>} : vector<32x128xbf16>, vector<128x128xbf16>, vector<32x128xf32> -> vector<32x128xf32>
    %63 = arith.addf %58, %62 : vector<32x128xf32>
    %c0_39 = arith.constant 0 : index
    %c0_40 = arith.constant 0 : index
    %64 = vector.load %arg7[%c0_39, %c0_40] : memref<1x128xf32, #tpu.memory_space<vmem>>, vector<1x128xf32>
    %65 = vector.broadcast %64 : vector<1x128xf32> to vector<32x128xf32>
    %66 = arith.addf %63, %65 : vector<32x128xf32>
    %c0_41 = arith.constant 0 : index
    %c0_42 = arith.constant 0 : index
    %67 = vector.load %arg8[%c0_41, %c0_42] : memref<176x32xf32, #tpu.memory_space<vmem>>, vector<176x32xf32>
    %cst_43 = arith.constant dense<0.000000e+00> : vector<176x128xf32>
    %68 = tpu.matmul %67, %66, %cst_43 {dimension_numbers = #tpu.dot_dimension_numbers<[1], [0], [0], [1], [0, 0, 1, 1], [], []>} : vector<176x32xf32>, vector<32x128xf32>, vector<176x128xf32> -> vector<176x128xf32>
    %cst_44 = arith.constant 0.000000e+00 : f32
    %69 = vector.broadcast %cst_44 : f32 to vector<176x128xf32>
    %70 = arith.subf %69, %68 : vector<176x128xf32>
    %71 = math.exp %70 : vector<176x128xf32>
    %cst_45 = arith.constant 1.000000e+00 : f32
    %72 = vector.broadcast %cst_45 : f32 to vector<176x128xf32>
    %73 = arith.addf %72, %71 : vector<176x128xf32>
    %74 = tpu.reciprocal %73 {approx = true} : vector<176x128xf32> -> vector<176x128xf32>
    %cst_46 = arith.constant 1.000000e+00 : f32
    %75 = vector.broadcast %cst_46 : f32 to vector<176x128xf32>
    %76 = arith.addf %75, %74 : vector<176x128xf32>
    %77 = arith.mulf %5, %76 : vector<176x128xf32>
    %78 = tpu.iota {dimensions = array<i32: 0>} : vector<176x1xi32>
    %c162_i32 = arith.constant 162 : i32
    %79 = vector.broadcast %c162_i32 : i32 to vector<176x1xi32>
    %80 = arith.cmpi slt, %78, %79 : vector<176x1xi32>
    %cst_47 = arith.constant 0.000000e+00 : f32
    %81 = vector.shape_cast %80 : vector<176x1xi1> to vector<176x1xi1>
    %82 = vector.broadcast %81 : vector<176x1xi1> to vector<176x128xi1>
    %83 = vector.broadcast %cst_47 : f32 to vector<176x128xf32>
    %84 = arith.select %82, %77, %83 : vector<176x128xi1>, vector<176x128xf32>
    %cst_48 = arith.constant dense<0.000000e+00> : vector<128xf32>
    %85 = vector.multi_reduction <add>, %84, %cst_48 [0] : vector<176x128xf32> to vector<128xf32>
    %86 = vector.shape_cast %85 : vector<128xf32> to vector<1x128xf32>
    %cst_49 = arith.constant 1.620000e+02 : f32
    %87 = vector.broadcast %cst_49 : f32 to vector<1x128xf32>
    %88 = arith.divf %86, %87 : vector<1x128xf32>
    %89 = vector.broadcast %88 : vector<1x128xf32> to vector<176x128xf32>
    %90 = arith.subf %77, %89 : vector<176x128xf32>
    %cst_50 = arith.constant 0.000000e+00 : f32
    %91 = vector.shape_cast %80 : vector<176x1xi1> to vector<176x1xi1>
    %92 = vector.broadcast %91 : vector<176x1xi1> to vector<176x128xi1>
    %93 = vector.broadcast %cst_50 : f32 to vector<176x128xf32>
    %94 = arith.select %92, %90, %93 : vector<176x128xi1>, vector<176x128xf32>
    %95 = arith.mulf %94, %94 : vector<176x128xf32>
    %cst_51 = arith.constant dense<0.000000e+00> : vector<128xf32>
    %96 = vector.multi_reduction <add>, %95, %cst_51 [0] : vector<176x128xf32> to vector<128xf32>
    %97 = vector.shape_cast %96 : vector<128xf32> to vector<1x128xf32>
    %cst_52 = arith.constant 1.620000e+02 : f32
    %98 = vector.broadcast %cst_52 : f32 to vector<1x128xf32>
    %99 = arith.divf %97, %98 : vector<1x128xf32>
    %c0_53 = arith.constant 0 : index
    %c0_54 = arith.constant 0 : index
    %100 = vector.load %arg9[%c0_53, %c0_54] : memref<1x128xf32, #tpu.memory_space<vmem>>, vector<1x128xf32>
    %cst_55 = arith.constant 9.99999974E-6 : f32
    %101 = vector.broadcast %cst_55 : f32 to vector<1x128xf32>
    %102 = arith.addf %99, %101 : vector<1x128xf32>
    %103 = math.rsqrt %102 : vector<1x128xf32>
    %104 = arith.mulf %100, %103 : vector<1x128xf32>
    %105 = vector.broadcast %104 : vector<1x128xf32> to vector<176x128xf32>
    %106 = arith.mulf %90, %105 : vector<176x128xf32>
    %c0_56 = arith.constant 0 : index
    %c0_57 = arith.constant 0 : index
    %107 = vector.load %arg10[%c0_56, %c0_57] : memref<1x128xf32, #tpu.memory_space<vmem>>, vector<1x128xf32>
    %108 = vector.broadcast %107 : vector<1x128xf32> to vector<176x128xf32>
    %109 = arith.addf %106, %108 : vector<176x128xf32>
    %cst_58 = arith.constant 0.000000e+00 : f32
    %110 = vector.broadcast %cst_58 : f32 to vector<176x128xf32>
    %111 = arith.maximumf %109, %110 : vector<176x128xf32>
    %c0_59 = arith.constant 0 : index
    %c0_60 = arith.constant 0 : index
    %112 = vector.load %arg11[%c0_59, %c0_60] : memref<176x128xf32, #tpu.memory_space<vmem>>, vector<176x128xf32>
    tpu.vector_store %arg11[%c0_59, %c0_60], %111 {strides = array<i32>} : memref<176x128xf32, #tpu.memory_space<vmem>>, vector<176x128xf32>,
    return
  }
  func.func @transform_0(%arg0: i32) -> (i32, i32) {
    %c0_i32 = arith.constant 0 : i32
    %c0_i32_0 = arith.constant 0 : i32
    %c0_i32_1 = arith.constant 0 : i32
    return %c0_i32, %c0_i32_0 : i32, i32
  }
  func.func @transform_1(%arg0: i32) -> (i32, i32) {
    %c0_i32 = arith.constant 0 : i32
    %c0_i32_0 = arith.constant 0 : i32
    %c0_i32_1 = arith.constant 0 : i32
    return %c0_i32, %c0_i32_0 : i32, i32
  }
  func.func @transform_2(%arg0: i32) -> (i32, i32) {
    %c0_i32 = arith.constant 0 : i32
    %c0_i32_0 = arith.constant 0 : i32
    %c0_i32_1 = arith.constant 0 : i32
    return %c0_i32, %c0_i32_0 : i32, i32
  }
  func.func @transform_3(%arg0: i32) -> (i32, i32) {
    %c0_i32 = arith.constant 0 : i32
    %c0_i32_0 = arith.constant 0 : i32
    %c0_i32_1 = arith.constant 0 : i32
    return %c0_i32, %c0_i32_0 : i32, i32
  }
  func.func @transform_4(%arg0: i32) -> (i32, i32) {
    %c0_i32 = arith.constant 0 : i32
    %c0_i32_0 = arith.constant 0 : i32
    %c0_i32_1 = arith.constant 0 : i32
    return %c0_i32, %c0_i32_0 : i32, i32
  }
  func.func @transform_5(%arg0: i32) -> (i32, i32, i32) {
    %c0_i32 = arith.constant 0 : i32
    %c0_i32_0 = arith.constant 0 : i32
    %c0_i32_1 = arith.constant 0 : i32
    %c0_i32_2 = arith.constant 0 : i32
    return %c0_i32, %c0_i32_0, %c0_i32_1 : i32, i32, i32
  }
  func.func @transform_6(%arg0: i32) -> (i32, i32) {
    %c0_i32 = arith.constant 0 : i32
    %c0_i32_0 = arith.constant 0 : i32
    %c0_i32_1 = arith.constant 0 : i32
    return %c0_i32, %c0_i32_0 : i32, i32
  }
  func.func @transform_7(%arg0: i32) -> (i32, i32) {
    %c0_i32 = arith.constant 0 : i32
    %c0_i32_0 = arith.constant 0 : i32
    %c0_i32_1 = arith.constant 0 : i32
    return %c0_i32, %c0_i32_0 : i32, i32
  }
  func.func @transform_8(%arg0: i32) -> (i32, i32) {
    %c0_i32 = arith.constant 0 : i32
    %c0_i32_0 = arith.constant 0 : i32
    %c0_i32_1 = arith.constant 0 : i32
    return %c0_i32, %c0_i32_0 : i32, i32
  }
  func.func @transform_9(%arg0: i32) -> (i32, i32) {
    %c0_i32 = arith.constant 0 : i32
    %c0_i32_0 = arith.constant 0 : i32
    %c0_i32_1 = arith.constant 0 : i32
    return %c0_i32, %c0_i32_0 : i32, i32
  }
  func.func @transform_10(%arg0: i32) -> (i32, i32) {
    %c0_i32 = arith.constant 0 : i32
    %c0_i32_0 = arith.constant 0 : i32
    %c0_i32_1 = arith.constant 0 : i32
    return %c0_i32, %c0_i32_0 : i32, i32
  }
}

</mosaic_0001>

<bundles_post_ra>
// kernel: res_addnet_forward.1
= control target key start
LH: loop header
LB: loop body
LE: loop exit
PB: predicated region body
PF: predicated region fallthrough
CT: control target
= control target key end

     0   :  { %vm7066_vm0 = vmmov 0   ;;  %vm2701_vm1 = vcmask 392192   ;;  %vm2963_vm2 = vcmask 261120   ;;  %s9039_s1 = inlined_call_operand.vmem [shape: bf16[1664,128], index: 1, kind: input, shape index: {}]   ;;  %s9040_s0 = inlined_call_operand.vmem [shape: bf16[176,1664], index: 0, kind: input, shape index: {}]   ;;  %s9041_s2 = inlined_call_operand.vmem [shape: f32[1,128], index: 2, kind: input, shape index: {}]   ;;  %s9042_s3 = inlined_call_operand.vmem [shape: bf16[128,176], index: 3, kind: input, shape index: {}]   ;;  %s9043_s4 = inlined_call_operand.vmem [shape: bf16[288,32], index: 4, kind: input, shape index: {}]   ;;  %s9044_s5 = inlined_call_operand.vmem [shape: bf16[9,128,128], index: 5, kind: input, shape index: {}]   ;;  %s9045_s7 = inlined_call_operand.vmem [shape: f32[176,32], index: 7, kind: input, shape index: {}]   ;;  %s9046_s6 = inlined_call_operand.vmem [shape: f32[1,128], index: 6, kind: input, shape index: {}]   ;;  %s9047_s8 = inlined_call_operand.vmem [shape: f32[1,128], index: 8, kind: input, shape index: {}]   ;;  %s9048_s9 = inlined_call_operand.vmem [shape: f32[1,128], index: 9, kind: input, shape index: {}]   ;;  %s9049_s10 = inlined_call_operand.vmem [shape: f32[176,128], index: 10, kind: output, shape index: {}]  }
   0x1   :  { %v6548_v0 = vld [vmem:[%s9039_s1 + $0x78] sm:$0xff]   ;;  %v6552_v4 = vld [vmem:[%s9039_s1 + $0x70] sm:$0xff]   ;;  %v6556_v8 = vld [vmem:[%s9039_s1 + $0x68] sm:$0xff]  }
   0x2   :  { %v6549_v1 = vld [vmem:[%s9039_s1 + $0x38] sm:$0xff]   ;;  %5569 = vmatprep.subr.bf16.mxu0 %v6548_v0  ;;  %v6553_v5 = vld [vmem:[%s9039_s1 + $0x30] sm:$0xff]   ;;  %v6557_v9 = vld [vmem:[%s9039_s1 + $0x28] sm:$0xff]  }
   0x3   :  { %v6550_v2 = vld [vmem:[%s9039_s1 + $0xf8] sm:$0xff]   ;;  %5570 = vmatpush3.bf16.msra.mxu0 %v6549_v1  ;;  %v6554_v6 = vld [vmem:[%s9039_s1 + $0xf0] sm:$0xff]   ;;  %v6558_v10 = vld [vmem:[%s9039_s1 + $0xe8] sm:$0xff]  }
   0x4   :  { %v6551_v3 = vld [vmem:[%s9039_s1 + $0xb8] sm:$0xff]   ;;  %5651 = vmatprep.subr.bf16.mxu1 %v6550_v2  ;;  %5571 = vmatprep.subr.bf16.mxu0 %v6552_v4  ;;  %v6555_v7 = vld [vmem:[%s9039_s1 + $0xb0] sm:$0xff]   ;;  %v6559_v11 = vld [vmem:[%s9039_s1 + $0xa8] sm:$0xff]  }
   0x5   :  { %5652 = vmatpush3.bf16.msra.mxu1 %v6551_v3  ;;  %v6560_v12 = vld [vmem:[%s9039_s1 + $0x60] sm:$0xff]   ;;  %v6564_v16 = vld [vmem:[%s9039_s1 + $0x58] sm:$0xff]   ;;  %v6568_v20 = vld [vmem:[%s9039_s1 + $0x50] sm:$0xff]  }
   0x6   :  { %5653 = vmatprep.subr.bf16.mxu1 %v6554_v6  ;;  %v6561_v13 = vld [vmem:[%s9039_s1 + $0x20] sm:$0xff]   ;;  %v6565_v17 = vld [vmem:[%s9039_s1 + $0x18] sm:$0xff]   ;;  %v6569_v21 = vld [vmem:[%s9039_s1 + $0x10] sm:$0xff]  }
   0x7   :  { %5572 = vmatpush3.bf16.msra.mxu0 %v6553_v5  ;;  %v6562_v14 = vld [vmem:[%s9039_s1 + $0xe0] sm:$0xff]   ;;  %v6566_v18 = vld [vmem:[%s9039_s1 + $0xd8] sm:$0xff]   ;;  %v6570_v22 = vld [vmem:[%s9039_s1 + $0xd0] sm:$0xff]  }
   0x8   :  { %5573 = vmatprep.subr.bf16.mxu0 %v6556_v8  ;;  %v6563_v15 = vld [vmem:[%s9039_s1 + $0xa0] sm:$0xff]   ;;  %v6567_v19 = vld [vmem:[%s9039_s1 + $0x98] sm:$0xff]   ;;  %v6571_v23 = vld [vmem:[%s9039_s1 + $0x90] sm:$0xff]  }
   0x9   :  { %5654 = vmatpush3.bf16.msra.mxu1 %v6555_v7  ;;  %v6572_v24 = vld [vmem:[%s9039_s1 + $0x48] sm:$0xff]   ;;  %v6576_v28 = vld [vmem:[%s9039_s1 + $0x40] sm:$0xff]   ;;  %v6595_v41 = vld [vmem:[%s9040_s0 + $0xdc] ss:$52 sps:$4 sm:$0xff]  }
   0xa   :  { %5655 = vmatprep.subr.bf16.mxu1 %v6558_v10  ;;  %v6573_v25 = vld [vmem:[%s9039_s1 + $0x8] sm:$0xff]   ;;  %v6577_v29 = vld [vmem:[%s9039_s1] sm:$0xff]   ;;  %v6598_v43 = vld [vmem:[%s9040_s0 + $0x13c] ss:$52 sps:$4 sm:$0xff]  }
   0xb   :  { %5574 = vmatpush3.bf16.msra.mxu0 %v6557_v9  ;;  %v6574_v26 = vld [vmem:[%s9039_s1 + $0xc8] sm:$0xff]   ;;  %v6578_v30 = vld [vmem:[%s9039_s1 + $0xc0] sm:$0xff]   ;;  %v6625_v46 = vld [vmem:[%s9039_s1 + $0x178] sm:$0xff]  }
   0xc   :  { %5575 = vmatprep.subr.bf16.mxu0 %v6560_v12  ;;  %v6575_v27 = vld [vmem:[%s9039_s1 + $0x88] sm:$0xff]   ;;  %v6579_v31 = vld [vmem:[%s9040_s0] ss:$52 sps:$4 sm:$0xff]   ;;  %v6581_v32 = vld [vmem:[%s9040_s0 + $0x4] ss:$52 sps:$4 sm:$0xff]  }
   0xd   :  { %5656 = vmatpush3.bf16.msra.mxu1 %v6559_v11  ;;  %v6582_v33 = vld [vmem:[%s9039_s1 + $0x80] sm:$0xff]   ;;  %1787 = vmatprep.mubr.bf16.mxu0 %v6581_v32  ;;  %v6583_v34 = vld [vmem:[%s9040_s0 + $0x8] ss:$52 sps:$4 sm:$0xff]   ;;  %v6597_v44 = vld [vmem:[%s9040_s0 + $0xd8] ss:$52 sps:$4 sm:$0xff]  }
   0xe   :  { %5657 = vmatprep.subr.bf16.mxu1 %v6562_v14  ;;  %v6585_v35 = vld [vmem:[%s9040_s0 + $0xc] ss:$52 sps:$4 sm:$0xff]   ;;  %v6589_v37 = vld [vmem:[%s9040_s0 + $0x74] ss:$52 sps:$4 sm:$0xff]   ;;  %v6591_v40 = vld [vmem:[%s9040_s0 + $0x70] ss:$52 sps:$4 sm:$0xff]  }
   0xf   :  { %5576 = vmatpush3.bf16.msra.mxu0 %v6561_v13  ;;  %v6586_v36 = vld [vmem:[%s9040_s0 + $0x6c] ss:$52 sps:$4 sm:$0xff]   ;;  %1908 = vmatprep.mubr.bf16.mxu1 %v6585_v35  ;;  %v6588_v38 = vld [vmem:[%s9040_s0 + $0x68] ss:$52 sps:$4 sm:$0xff]   ;;  %v6594_v42 = vld [vmem:[%s9040_s0 + $0xd0] ss:$52 sps:$4 sm:$0xff]  }
  0x10   :  { %5577 = vmatprep.subr.bf16.mxu0 %v6564_v16  ;;  %v6592_v39 = vld [vmem:[%s9040_s0 + $0xd4] ss:$52 sps:$4 sm:$0xff]   ;;  %v6601_v45 = vld [vmem:[%s9040_s0 + $0x144] ss:$52 sps:$4 sm:$0xff]   ;;  %v6607_v52 = vld [vmem:[%s9040_s0 + $0x1ac] ss:$52 sps:$4 sm:$0xff]  }
  0x11   :  { %5658 = vmatpush3.bf16.msra.mxu1 %v6563_v15  ;;  %v6600_v47 = vld [vmem:[%s9040_s0 + $0x138] ss:$52 sps:$4 sm:$0xff]   ;;  %v6603_v50 = vld [vmem:[%s9040_s0 + $0x140] ss:$52 sps:$4 sm:$0xff]   ;;  %v6609_v60 = vld [vmem:[%s9040_s0 + $0x1a8] ss:$52 sps:$4 sm:$0xff]  }
  0x12   :  { %5659 = vmatprep.subr.bf16.mxu1 %v6566_v18  ;;  %v6628_v48 = vld [vmem:[%s9039_s1 + $0x138] sm:$0xff]   ;;  %v6632_v54 = vld [vmem:[%s9039_s1 + $0x170] sm:$0xff]   ;;  %v6639_v59 = vld [vmem:[%s9039_s1 + $0x168] sm:$0xff]  }
  0x13   :  { %5578 = vmatpush3.bf16.msra.mxu0 %v6565_v17  ;;  %v6604_v49 = vld [vmem:[%s9040_s0 + $0x1a4] ss:$52 sps:$4 sm:$0xff]   ;;  %v6633_v55 = vld [vmem:[%s9039_s1 + $0x130] sm:$0xff]   ;;  %v6610_v61 = vld [vmem:[%s9040_s0 + $0x20c] ss:$52 sps:$4 sm:$0xff]  }
  0x14   :  { %5579 = vmatprep.subr.bf16.mxu0 %v6568_v20  ;;  %v6630_v51 = vld [vmem:[%s9039_s1 + $0x1f8] sm:$0xff]   ;;  %v6634_v56 = vld [vmem:[%s9039_s1 + $0x1f0] sm:$0xff]   ;;  %v6642_v63 = vld [vmem:[%s9039_s1 + $0x128] sm:$0xff]  }
  0x15   :  { %5660 = vmatpush3.bf16.msra.mxu1 %v6567_v19  ;;  %v6631_v53 = vld [vmem:[%s9039_s1 + $0x1b8] sm:$0xff]   ;;  %v6606_v57 = vld [vmem:[%s9040_s0 + $0x1a0] ss:$52 sps:$4 sm:$0xff]   ;;  %v6644_v0 = vld [vmem:[%s9039_s1 + $0x1e8] sm:$0xff]  }
  0x16   :  { %5661 = vmatprep.subr.bf16.mxu1 %v6570_v22  ;;  %v6637_v58 = vld [vmem:[%s9039_s1 + $0x1b0] sm:$0xff]   ;;  %v6645_v1 = vld [vmem:[%s9039_s1 + $0x1a8] sm:$0xff]   ;;  %v6646_v2 = vld [vmem:[%s9039_s1 + $0x160] sm:$0xff]  }
  0x17   :  { %5580 = vmatpush3.bf16.msra.mxu0 %v6569_v21  ;;  %v6613_v62 = vld [vmem:[%s9040_s0 + $0x214] ss:$52 sps:$4 sm:$0xff]   ;;  %v6647_v4 = vld [vmem:[%s9039_s1 + $0x120] sm:$0xff]   ;;  %v6653_v9 = vld [vmem:[%s9039_s1 + $0x158] sm:$0xff]  }
  0x18   :  { %5581 = vmatprep.subr.bf16.mxu0 %v6572_v24  ;;  %v6612_v3 = vld [vmem:[%s9040_s0 + $0x208] ss:$52 sps:$4 sm:$0xff]   ;;  %v6648_v5 = vld [vmem:[%s9039_s1 + $0x1e0] sm:$0xff]   ;;  %v6660_v16 = vld [vmem:[%s9039_s1 + $0x150] sm:$0xff]  }
  0x19   :  { %5662 = vmatpush3.bf16.msra.mxu1 %v6571_v23  ;;  %v6616_v6 = vld [vmem:[%s9040_s0 + $0x274] ss:$52 sps:$4 sm:$0xff]   ;;  %v6651_v7 = vld [vmem:[%s9039_s1 + $0x1a0] sm:$0xff]   ;;  %v6619_v10 = vld [vmem:[%s9040_s0 + $0x27c] ss:$52 sps:$4 sm:$0xff]  }
  0x1a   :  { %5663 = vmatprep.subr.bf16.mxu1 %v6574_v26  ;;  %v6615_v8 = vld [vmem:[%s9040_s0 + $0x210] ss:$52 sps:$4 sm:$0xff]   ;;  %v6656_v11 = vld [vmem:[%s9039_s1 + $0x118] sm:$0xff]   ;;  %v6667_v22 = vld [vmem:[%s9039_s1 + $0x148] sm:$0xff]  }
  0x1b   :  { %5582 = vmatpush3.bf16.msra.mxu0 %v6573_v25  ;;  %v6618_v12 = vld [vmem:[%s9040_s0 + $0x270] ss:$52 sps:$4 sm:$0xff]   ;;  %v6658_v13 = vld [vmem:[%s9039_s1 + $0x1d8] sm:$0xff]   ;;  %v6670_v24 = vld [vmem:[%s9039_s1 + $0x108] sm:$0xff]  }
  0x1c   :  { %5583 = vmatprep.subr.bf16.mxu0 %v6576_v28  ;;  %v6622_v14 = vld [vmem:[%s9040_s0 + $0x2dc] ss:$52 sps:$4 sm:$0xff]   ;;  %v6621_v19 = vld [vmem:[%s9040_s0 + $0x278] ss:$52 sps:$4 sm:$0xff]   ;;  %v6629_v26 = vld [vmem:[%s9040_s0 + $0x2e0] ss:$52 sps:$4 sm:$0xff]  }
  0x1d   :  { %5664 = vmatpush3.bf16.msra.mxu1 %v6575_v27  ;;  %v6659_v15 = vld [vmem:[%s9039_s1 + $0x198] sm:$0xff]   ;;  %v6661_v17 = vld [vmem:[%s9039_s1 + $0x110] sm:$0xff]   ;;  %v6672_v27 = vld [vmem:[%s9039_s1 + $0x1c8] sm:$0xff]  }
  0x1e   :  { %5665 = vmatprep.subr.bf16.mxu1 %v6578_v30  ;;  %v6662_v18 = vld [vmem:[%s9039_s1 + $0x1d0] sm:$0xff]   ;;  %v6626_v20 = vld [vmem:[%s9040_s0 + $0x2e4] ss:$52 sps:$4 sm:$0xff]   ;;  %v6640_v28 = vld [vmem:[%s9040_s0 + $0x34c] ss:$52 sps:$4 sm:$0xff]  }
  0x1f   :  { %5584 = vmatpush3.bf16.msra.mxu0 %v6577_v29  ;;  %v6665_v21 = vld [vmem:[%s9039_s1 + $0x190] sm:$0xff]   ;;  %v6624_v23 = vld [vmem:[%s9040_s0 + $0x2d8] ss:$52 sps:$4 sm:$0xff]   ;;  %v6674_v30 = vld [vmem:[%s9039_s1 + $0x140] sm:$0xff]  }
  0x20   :  { %5733 = vmatprep.subr.bf16.mxu0 %v6625_v46  ;;  %v6635_v25 = vld [vmem:[%s9040_s0 + $0x344] ss:$52 sps:$4 sm:$0xff]   ;;  %v6673_v29 = vld [vmem:[%s9039_s1 + $0x188] sm:$0xff]   ;;  %v6683_v46 = vld [vmem:[%s9040_s0 + $0x1c] ss:$52 sps:$4 sm:$0xff]  }
  0x21   :  { %5666 = vmatpush3.bf16.msra.mxu1 %v6582_v33  ;;  %v6676_v32 = vld [vmem:[%s9039_s1 + $0x1c0] sm:$0xff]  }
  0x22   :  { %1788 = vmatmul.mubr.bf16.vlgmr.msra.gmra.mxu0 %v6579_v31  ;;  %5815 = vmatprep.subr.bf16.mxu1 %v6630_v51  ;;  %v6675_v31 = vld [vmem:[%s9039_s1 + $0x100] sm:$0xff]   ;;  %v6726_v51 = vld [vmem:[%s9039_s1 + $0x238] sm:$0xff]  }
  0x23   :  { %1795 = vmatprep.mubr.bf16.mxu0 %v6586_v36  ;;  %5734 = vmatpush3.bf16.msra.mxu0 %v6628_v48  ;;  %v6680_v33 = vld [vmem:[%s9039_s1 + $0x180] sm:$0xff]   ;;  %v6643_v36 = vld [vmem:[%s9040_s0 + $0x348] ss:$52 sps:$4 sm:$0xff]  }
  0x24   :  { %1909 = vmatmul.mubr.bf16.vlgmr.msra.gmra.mxu1 %v6583_v34  ;;  %5735 = vmatprep.subr.bf16.mxu0 %v6632_v54  ;;  %v6638_v34 = vld [vmem:[%s9040_s0 + $0x340] ss:$52 sps:$4 sm:$0xff]   ;;  %v6677_v48 = vld [vmem:[%s9040_s0 + $0x10] ss:$52 sps:$4 sm:$0xff]   ;;  %v6729_v54 = vld [vmem:[%s9039_s1 + $0x2b8] sm:$0xff]  }
  0x25   :  { %1916 = vmatprep.mubr.bf16.mxu1 %v6589_v37  ;;  %5816 = vmatpush3.bf16.msra.mxu1 %v6631_v53  ;;  %v6649_v35 = vld [vmem:[%s9040_s0 + $0x3ac] ss:$52 sps:$4 sm:$0xff]   ;;  %v6654_v37 = vld [vmem:[%s9040_s0 + $0x3b4] ss:$52 sps:$4 sm:$0xff]   ;;  %v6687_v53 = vld [vmem:[%s9040_s0 + $0x84] ss:$52 sps:$4 sm:$0xff]  }
  0x26   :  { %5817 = vmatprep.subr.bf16.mxu1 %v6634_v56  ;;  %v6732_v56 = vld [vmem:[%s9039_s1 + $0x2f0] sm:$0xff]  }
  0x27   :  { %5736 = vmatpush3.bf16.msra.mxu0 %v6633_v55  ;;  %v6731_v55 = vld [vmem:[%s9039_s1 + $0x230] sm:$0xff]  }
  0x28   :  { %5737 = vmatprep.subr.bf16.mxu0 %v6639_v59  ;;  %v6690_v59 = vld [vmem:[%s9040_s0 + $0xe4] ss:$52 sps:$4 sm:$0xff]  }
  0x29   :  { %5818 = vmatpush3.bf16.msra.mxu1 %v6637_v58  ;;  %v6737_v58 = vld [vmem:[%s9039_s1 + $0x268] sm:$0xff]  }
  0x2a   :  { %1796 = vmatmul.mubr.bf16.gmra.mxu0 %v6588_v38  ;;  %5819 = vmatprep.subr.bf16.mxu1 %v6644_v0  ;;  %v6652_v38 = vld [vmem:[%s9040_s0 + $0x3a8] ss:$52 sps:$4 sm:$0xff]   ;;  %v6693_v0 = vld [vmem:[%s9040_s0 + $0xec] ss:$52 sps:$4 sm:$0xff]  }
  0x2b   :  { %1803 = vmatprep.mubr.bf16.mxu0 %v6592_v39  ;;  %5738 = vmatpush3.bf16.msra.mxu0 %v6642_v63  ;;  %v6663_v39 = vld [vmem:[%s9040_s0 + $0x414] ss:$52 sps:$4 sm:$0xff]  }
  0x2c   :  { %1917 = vmatmul.mubr.bf16.gmra.mxu1 %v6591_v40  ;;  %5739 = vmatprep.subr.bf16.mxu0 %v6646_v2  ;;  %v6657_v40 = vld [vmem:[%s9040_s0 + $0x3b0] ss:$52 sps:$4 sm:$0xff]   ;;  %v6742_v63 = vld [vmem:[%s9039_s1 + $0x2e8] sm:$0xff]  }
  0x2d   :  { %1924 = vmatprep.mubr.bf16.mxu1 %v6595_v41  ;;  %5820 = vmatpush3.bf16.msra.mxu1 %v6645_v1  ;;  %v6668_v41 = vld [vmem:[%s9040_s0 + $0x41c] ss:$52 sps:$4 sm:$0xff]   ;;  %v6743_v1 = vld [vmem:[%s9039_s1 + $0x2a8] sm:$0xff]   ;;  %v6744_v2 = vld [vmem:[%s9039_s1 + $0x260] sm:$0xff]  }
  0x2e   :  { %5821 = vmatprep.subr.bf16.mxu1 %v6648_v5  ;;  %v6692_v5 = vld [vmem:[%s9040_s0 + $0xe0] ss:$52 sps:$4 sm:$0xff]  }
  0x2f   :  { %5740 = vmatpush3.bf16.msra.mxu0 %v6647_v4  ;;  %v6746_v4 = vld [vmem:[%s9039_s1 + $0x2e0] sm:$0xff]  }
  0x30   :  { %5741 = vmatprep.subr.bf16.mxu0 %v6653_v9  ;;  %v6696_v9 = vld [vmem:[%s9040_s0 + $0x14c] ss:$52 sps:$4 sm:$0xff]  }
  0x31   :  { %5822 = vmatpush3.bf16.msra.mxu1 %v6651_v7  ;;  %v6751_v7 = vld [vmem:[%s9039_s1 + $0x258] sm:$0xff]  }
  0x32   :  { %1804 = vmatmul.mubr.bf16.gmra.mxu0 %v6594_v42  ;;  %5823 = vmatprep.subr.bf16.mxu1 %v6658_v13  ;;  %v6666_v42 = vld [vmem:[%s9040_s0 + $0x410] ss:$52 sps:$4 sm:$0xff]   ;;  %v6757_v13 = vld [vmem:[%s9039_s1 + $0x298] sm:$0xff]  }
  0x33   :  { %1811 = vmatprep.mubr.bf16.mxu0 %v6598_v43  ;;  %5742 = vmatpush3.bf16.msra.mxu0 %v6656_v11  ;;  %v6679_v43 = vld [vmem:[%s9040_s0 + $0x14] ss:$52 sps:$4 sm:$0xff]   ;;  %v6754_v11 = vld [vmem:[%s9039_s1 + $0x218] sm:$0xff]  }
  0x34   :  { %1925 = vmatmul.mubr.bf16.gmra.mxu1 %v6597_v44  ;;  %5743 = vmatprep.subr.bf16.mxu0 %v6660_v16  ;;  %v6671_v44 = vld [vmem:[%s9040_s0 + $0x418] ss:$52 sps:$4 sm:$0xff]   ;;  %v6759_v16 = vld [vmem:[%s9039_s1 + $0x210] sm:$0xff]  }
  0x35   :  { %1932 = vmatprep.mubr.bf16.mxu1 %v6601_v45  ;;  %5824 = vmatpush3.bf16.msra.mxu1 %v6659_v15  ;;  %v6723_v45 = vld [vmem:[%s9039_s1 + $0x278] sm:$0xff]  }
  0x36   :  { %5825 = vmatprep.subr.bf16.mxu1 %v6662_v18  ;;  %v6698_v15 = vld [vmem:[%s9040_s0 + $0x148] ss:$52 sps:$4 sm:$0xff]  }
  0x37   :  { %5744 = vmatpush3.bf16.msra.mxu0 %v6661_v17  ;;  %v6760_v17 = vld [vmem:[%s9039_s1 + $0x2d0] sm:$0xff]  }
  0x38   :  { %5745 = vmatprep.subr.bf16.mxu0 %v6667_v22  ;;  %v6702_v18 = vld [vmem:[%s9040_s0 + $0x1b4] ss:$52 sps:$4 sm:$0xff]   ;;  %v6705_v22 = vld [vmem:[%s9040_s0 + $0x1bc] ss:$52 sps:$4 sm:$0xff]  }
  0x39   :  { %5826 = vmatpush3.bf16.msra.mxu1 %v6665_v21  ;;  %v6765_v21 = vld [vmem:[%s9039_s1 + $0x248] sm:$0xff]  }
  0x3a   :  { %1812 = vmatmul.mubr.bf16.gmra.mxu0 %v6600_v47  ;;  %5827 = vmatprep.subr.bf16.mxu1 %v6672_v27  ;;  %v6728_v47 = vld [vmem:[%s9039_s1 + $0x2f8] sm:$0xff]   ;;  %v6771_v27 = vld [vmem:[%s9039_s1 + $0x288] sm:$0xff]  }
  0x3b   :  { %1819 = vmatprep.mubr.bf16.mxu0 %v6604_v49  ;;  %5746 = vmatpush3.bf16.msra.mxu0 %v6670_v24  ;;  %v6684_v49 = vld [vmem:[%s9040_s0 + $0x7c] ss:$52 sps:$4 sm:$0xff]  }
  0x3c   :  { %1933 = vmatmul.mubr.bf16.gmra.mxu1 %v6603_v50  ;;  %5747 = vmatprep.subr.bf16.mxu0 %v6674_v30  ;;  %v6681_v50 = vld [vmem:[%s9040_s0 + $0x18] ss:$52 sps:$4 sm:$0xff]   ;;  %v6704_v24 = vld [vmem:[%s9040_s0 + $0x1b0] ss:$52 sps:$4 sm:$0xff]  }
  0x3d   :  { %1940 = vmatprep.mubr.bf16.mxu1 %v6607_v52  ;;  %5828 = vmatpush3.bf16.msra.mxu1 %v6673_v29  ;;  %v6730_v52 = vld [vmem:[%s9039_s1 + $0x270] sm:$0xff]   ;;  %v6773_v29 = vld [vmem:[%s9039_s1 + $0x200] sm:$0xff]  }
  0x3e   :  { %5829 = vmatprep.subr.bf16.mxu1 %v6676_v32  ;;  %v6774_v30 = vld [vmem:[%s9039_s1 + $0x2c0] sm:$0xff]  }
  0x3f   :  { %5748 = vmatpush3.bf16.msra.mxu0 %v6675_v31  ;;  %v6707_v31 = vld [vmem:[%s9040_s0 + $0x1b8] ss:$52 sps:$4 sm:$0xff]  }
  0x40   :  { %5897 = vmatprep.subr.bf16.mxu0 %v6723_v45  ;;  %v6711_v32 = vld [vmem:[%s9040_s0 + $0x224] ss:$52 sps:$4 sm:$0xff]  }
  0x41   :  { %5830 = vmatpush3.bf16.msra.mxu1 %v6680_v33  ;;  %v6778_v33 = vld [vmem:[%s9039_s1 + $0x280] sm:$0xff]  }
  0x42   :  { %1820 = vmatmul.mubr.bf16.gmra.mxu0 %v6606_v57  ;;  %5979 = vmatprep.subr.bf16.mxu1 %v6728_v47  ;;  %v6686_v57 = vld [vmem:[%s9040_s0 + $0x78] ss:$52 sps:$4 sm:$0xff]   ;;  %v6727_v45 = vld [vmem:[%s9040_s0 + $0x2f0] ss:$52 sps:$4 sm:$0xff]  }
  0x43   :  { %1827 = vmatprep.mubr.bf16.mxu0 %v6610_v61  ;;  %v6740_v61 = vld [vmem:[%s9039_s1 + $0x228] sm:$0xff]   ;;  %v6736_v47 = vld [vmem:[%s9040_s0 + $0x350] ss:$52 sps:$4 sm:$0xff]  }
  0x44   :  { %1941 = vmatmul.mubr.bf16.gmra.mxu1 %v6609_v60  ;;  %v6735_v60 = vld [vmem:[%s9039_s1 + $0x2b0] sm:$0xff]  }
  0x45   :  { %1948 = vmatprep.mubr.bf16.mxu1 %v6613_v62  ;;  %v6689_v62 = vld [vmem:[%s9040_s0 + $0x80] ss:$52 sps:$4 sm:$0xff]  }
  0x4a   :  { %1828 = vmatmul.mubr.bf16.gmra.mxu0 %v6612_v3  ;;  %v6745_v3 = vld [vmem:[%s9039_s1 + $0x220] sm:$0xff]  }
  0x4b   :  { %1835 = vmatprep.mubr.bf16.mxu0 %v6616_v6  ;;  %v6749_v6 = vld [vmem:[%s9039_s1 + $0x2a0] sm:$0xff]  }
  0x4c   :  { %1949 = vmatmul.mubr.bf16.gmra.mxu1 %v6615_v8  ;;  %v6695_v8 = vld [vmem:[%s9040_s0 + $0xe8] ss:$52 sps:$4 sm:$0xff]  }
  0x4d   :  { %1956 = vmatprep.mubr.bf16.mxu1 %v6619_v10  ;;  %v6699_v10 = vld [vmem:[%s9040_s0 + $0x154] ss:$52 sps:$4 sm:$0xff]  }
  0x52   :  { %1836 = vmatmul.mubr.bf16.gmra.mxu0 %v6618_v12  ;;  %v6756_v12 = vld [vmem:[%s9039_s1 + $0x2d8] sm:$0xff]  }
  0x53   :  { %1843 = vmatprep.mubr.bf16.mxu0 %v6622_v14  ;;  %v6758_v14 = vld [vmem:[%s9039_s1 + $0x250] sm:$0xff]  }
  0x54   :  { %1957 = vmatmul.mubr.bf16.gmra.mxu1 %v6621_v19  ;;  %v6763_v19 = vld [vmem:[%s9039_s1 + $0x290] sm:$0xff]  }
  0x55   :  { %1964 = vmatprep.mubr.bf16.mxu1 %v6626_v20  ;;  %v6701_v20 = vld [vmem:[%s9040_s0 + $0x150] ss:$52 sps:$4 sm:$0xff]  }
  0x5a   :  { %1844 = vmatmul.mubr.bf16.gmra.mxu0 %v6624_v23  ;;  %v6768_v23 = vld [vmem:[%s9039_s1 + $0x208] sm:$0xff]  }
  0x5b   :  { %1851 = vmatprep.mubr.bf16.mxu0 %v6635_v25  ;;  %v6770_v25 = vld [vmem:[%s9039_s1 + $0x2c8] sm:$0xff]  }
  0x5c   :  { %1965 = vmatmul.mubr.bf16.gmra.mxu1 %v6629_v26  ;;  %v6708_v26 = vld [vmem:[%s9040_s0 + $0x21c] ss:$52 sps:$4 sm:$0xff]  }
  0x5d   :  { %1972 = vmatprep.mubr.bf16.mxu1 %v6640_v28  ;;  %v6772_v28 = vld [vmem:[%s9039_s1 + $0x240] sm:$0xff]  }
  0x62   :  { %1852 = vmatmul.mubr.bf16.gmra.mxu0 %v6638_v34  ;;  %v7065_v34 = vmov 0.0  }
  0x63   :  { %1859 = vmatprep.mubr.bf16.mxu0 %v6649_v35  ;;  %v6710_v35 = vld [vmem:[%s9040_s0 + $0x218] ss:$52 sps:$4 sm:$0xff]  }
  0x64   :  { %1973 = vmatmul.mubr.bf16.gmra.mxu1 %v6643_v36  ;;  %v6714_v36 = vld [vmem:[%s9040_s0 + $0x284] ss:$52 sps:$4 sm:$0xff]  }
  0x65   :  { %1980 = vmatprep.mubr.bf16.mxu1 %v6654_v37  ;;  %v6713_v37 = vld [vmem:[%s9040_s0 + $0x220] ss:$52 sps:$4 sm:$0xff]  }
  0x6a   :  { %1860 = vmatmul.mubr.bf16.gmra.mxu0 %v6652_v38  ;;  %v6717_v38 = vld [vmem:[%s9040_s0 + $0x28c] ss:$52 sps:$4 sm:$0xff]  }
  0x6b   :  { %1867 = vmatprep.mubr.bf16.mxu0 %v6663_v39  ;;  %v6716_v39 = vld [vmem:[%s9040_s0 + $0x280] ss:$52 sps:$4 sm:$0xff]  }
  0x6c   :  { %1981 = vmatmul.mubr.bf16.gmra.mxu1 %v6657_v40  ;;  %v6720_v40 = vld [vmem:[%s9040_s0 + $0x2ec] ss:$52 sps:$4 sm:$0xff]  }
  0x6d   :  { %1988 = vmatprep.mubr.bf16.mxu1 %v6668_v41  ;;  %v6719_v41 = vld [vmem:[%s9040_s0 + $0x288] ss:$52 sps:$4 sm:$0xff]  }
  0x72   :  { %1868 = vmatmul.mubr.bf16.gmra.mxu0 %v6666_v42  ;;  %v6724_v42 = vld [vmem:[%s9040_s0 + $0x2f4] ss:$52 sps:$4 sm:$0xff]  }
  0x73   :  { %2029 = vmatprep.mubr.bf16.mxu0 %v6679_v43  ;;  %v6722_v43 = vld [vmem:[%s9040_s0 + $0x2e8] ss:$52 sps:$4 sm:$0xff]  }
  0x74   :  { %1989 = vmatmul.mubr.bf16.gmra.mxu1 %v6671_v44  ;;  %v6733_v44 = vld [vmem:[%s9040_s0 + $0x354] ss:$52 sps:$4 sm:$0xff]  }
  0x75   :  { %2150 = vmatprep.mubr.bf16.mxu1 %v6683_v46  ;;  %v6738_v46 = vld [vmem:[%s9040_s0 + $0x35c] ss:$52 sps:$4 sm:$0xff]  }
  0x7a   :  { %2030 = vmatmul.mubr.bf16.vlgmr.msra.gmra.mxu0 %v6677_v48  ;;  %v6747_v48 = vld [vmem:[%s9040_s0 + $0x3bc] ss:$52 sps:$4 sm:$0xff]  }
  0x7b   :  { %2037 = vmatprep.mubr.bf16.mxu0 %v6684_v49  ;;  %5898 = vmatpush3.bf16.msra.mxu0 %v6726_v51  ;;  %v6741_v49 = vld [vmem:[%s9040_s0 + $0x358] ss:$52 sps:$4 sm:$0xff]  }
  0x7c   :  { %5899 = vmatprep.subr.bf16.mxu0 %v6730_v52  ;;  %2151 = vmatmul.mubr.bf16.vlgmr.msra.gmra.mxu1 %v6681_v50  ;;  %v6752_v50 = vld [vmem:[%s9040_s0 + $0x3c4] ss:$52 sps:$4 sm:$0xff]  }
  0x7d   :  { %2158 = vmatprep.mubr.bf16.mxu1 %v6687_v53  ;;  %5980 = vmatpush3.bf16.msra.mxu1 %v6729_v54  ;;  %v6750_v51 = vld [vmem:[%s9040_s0 + $0x3b8] ss:$52 sps:$4 sm:$0xff]   ;;  %v6755_v53 = vld [vmem:[%s9040_s0 + $0x3c0] ss:$52 sps:$4 sm:$0xff]  }
  0x7e   :  { %5981 = vmatprep.subr.bf16.mxu1 %v6732_v56  ;;  %v6761_v52 = vld [vmem:[%s9040_s0 + $0x424] ss:$52 sps:$4 sm:$0xff]   ;;  %v6766_v54 = vld [vmem:[%s9040_s0 + $0x42c] ss:$52 sps:$4 sm:$0xff]  }
  0x7f   :  { %5900 = vmatpush3.bf16.msra.mxu0 %v6731_v55  ;;  %v6764_v55 = vld [vmem:[%s9040_s0 + $0x420] ss:$52 sps:$4 sm:$0xff]   ;;  %v6777_v56 = vld [vmem:[%s9040_s0 + $0x24] ss:$52 sps:$4 sm:$0xff]  }
  0x80   :  { %5901 = vmatprep.subr.bf16.mxu0 %v6737_v58  ;;  %v6781_v58 = vld [vmem:[%s9040_s0 + $0x2c] ss:$52 sps:$4 sm:$0xff]  }
  0x81   :  { %5982 = vmatpush3.bf16.msra.mxu1 %v6735_v60  ;;  %v6782_v60 = vld [vmem:[%s9040_s0 + $0x8c] ss:$52 sps:$4 sm:$0xff]  }
  0x82   :  { %2038 = vmatmul.mubr.bf16.gmra.mxu0 %v6686_v57  ;;  %5983 = vmatprep.subr.bf16.mxu1 %v6742_v63  ;;  %v6769_v57 = vld [vmem:[%s9040_s0 + $0x428] ss:$52 sps:$4 sm:$0xff]  }
  0x83   :  { %2045 = vmatprep.mubr.bf16.mxu0 %v6690_v59  ;;  %5902 = vmatpush3.bf16.msra.mxu0 %v6740_v61  ;;  %v6775_v59 = vld [vmem:[%s9040_s0 + $0x20] ss:$52 sps:$4 sm:$0xff]   ;;  %v6824_v61 = vld [vmem:[%s9039_s1 + $0x338] sm:$0xff]  }
  0x84   :  { %5903 = vmatprep.subr.bf16.mxu0 %v6744_v2  ;;  %2159 = vmatmul.mubr.bf16.gmra.mxu1 %v6689_v62  ;;  %v6779_v62 = vld [vmem:[%s9040_s0 + $0x28] ss:$52 sps:$4 sm:$0xff]  }
  0x85   :  { %2166 = vmatprep.mubr.bf16.mxu1 %v6693_v0  ;;  %5984 = vmatpush3.bf16.msra.mxu1 %v6743_v1  ;;  %v6785_v63 = vld [vmem:[%s9040_s0 + $0x94] ss:$52 sps:$4 sm:$0xff]  }
  0x86   :  { %5985 = vmatprep.subr.bf16.mxu1 %v6746_v4  ;;  %v6825_v0 = vld [vmem:[%s9039_s1 + $0x330] sm:$0xff]   ;;  %v6784_v1 = vld [vmem:[%s9040_s0 + $0x88] ss:$52 sps:$4 sm:$0xff]  }
  0x87   :  { %5904 = vmatpush3.bf16.msra.mxu0 %v6745_v3  ;;  %v6788_v2 = vld [vmem:[%s9040_s0 + $0xf4] ss:$52 sps:$4 sm:$0xff]   ;;  %v6787_v4 = vld [vmem:[%s9040_s0 + $0x90] ss:$52 sps:$4 sm:$0xff]  }
  0x88   :  { %5905 = vmatprep.subr.bf16.mxu0 %v6751_v7  ;;  %v6832_v3 = vld [vmem:[%s9039_s1 + $0x328] sm:$0xff]   ;;  %v6790_v7 = vld [vmem:[%s9040_s0 + $0xf0] ss:$52 sps:$4 sm:$0xff]  }
  0x89   :  { %5986 = vmatpush3.bf16.msra.mxu1 %v6749_v6  ;;  %v6833_v6 = vld [vmem:[%s9039_s1 + $0x320] sm:$0xff]  }
  0x8a   :  { %2046 = vmatmul.mubr.bf16.gmra.mxu0 %v6692_v5  ;;  %5987 = vmatprep.subr.bf16.mxu1 %v6756_v12  ;;  %v6791_v5 = vld [vmem:[%s9040_s0 + $0xfc] ss:$52 sps:$4 sm:$0xff]   ;;  %v6797_v12 = vld [vmem:[%s9040_s0 + $0x164] ss:$52 sps:$4 sm:$0xff]  }
  0x8b   :  { %2053 = vmatprep.mubr.bf16.mxu0 %v6696_v9  ;;  %5906 = vmatpush3.bf16.msra.mxu0 %v6754_v11  ;;  %v6840_v9 = vld [vmem:[%s9039_s1 + $0x318] sm:$0xff]  }
  0x8c   :  { %2167 = vmatmul.mubr.bf16.gmra.mxu1 %v6695_v8  ;;  %5907 = vmatprep.subr.bf16.mxu0 %v6758_v14  ;;  %v6794_v8 = vld [vmem:[%s9040_s0 + $0x15c] ss:$52 sps:$4 sm:$0xff]   ;;  %v7743_v14 = vld [vmem:[%s9041_s2] ss:$0 sm:$0xff] }
  0x8d   :  { %2174 = vmatprep.mubr.bf16.mxu1 %v6699_v10  ;;  %5988 = vmatpush3.bf16.msra.mxu1 %v6757_v13  ;;  %v6793_v10 = vld [vmem:[%s9040_s0 + $0xf8] ss:$52 sps:$4 sm:$0xff]   ;;  %v6841_v13 = vld [vmem:[%s9039_s1 + $0x310] sm:$0xff]  }
  0x8e   :  { %5989 = vmatprep.subr.bf16.mxu1 %v6760_v17 }
  0x8f   :  { %5908 = vmatpush3.bf16.msra.mxu0 %v6759_v16 }
  0x90   :  { %5909 = vmatprep.subr.bf16.mxu0 %v6765_v21 }
  0x91   :  { %5990 = vmatpush3.bf16.msra.mxu1 %v6763_v19  ;;  %v6796_v19 = vld [vmem:[%s9040_s0 + $0x158] ss:$52 sps:$4 sm:$0xff]  }
  0x92   :  { %2054 = vmatmul.mubr.bf16.gmra.mxu0 %v6698_v15  ;;  %5991 = vmatprep.subr.bf16.mxu1 %v6770_v25 }
  0x93   :  { %2061 = vmatprep.mubr.bf16.mxu0 %v6702_v18  ;;  %5910 = vmatpush3.bf16.msra.mxu0 %v6768_v23  ;;  %v6848_v23 = vld [vmem:[%s9039_s1 + $0x308] sm:$0xff]  }
  0x94   :  { %2175 = vmatmul.mubr.bf16.gmra.mxu1 %v6701_v20  ;;  %5911 = vmatprep.subr.bf16.mxu0 %v6772_v28  ;;  %v6799_v28 = vld [vmem:[%s9040_s0 + $0x160] ss:$52 sps:$4 sm:$0xff]  }
  0x95   :  { %2182 = vmatprep.mubr.bf16.mxu1 %v6705_v22  ;;  %5992 = vmatpush3.bf16.msra.mxu1 %v6771_v27  ;;  %v6800_v22 = vld [vmem:[%s9040_s0 + $0x1c4] ss:$52 sps:$4 sm:$0xff]  }
  0x96   :  { %5993 = vmatprep.subr.bf16.mxu1 %v6774_v30 }
  0x97   :  { %5912 = vmatpush3.bf16.msra.mxu0 %v6773_v29 }
  0x98   :  { %6216 = vmatprep.subr.bf16.mxu0 %v7065_v34 }
  0x99   :  { %5994 = vmatpush3.bf16.msra.mxu1 %v6778_v33 }
  0x9a   :  { %2062 = vmatmul.mubr.bf16.gmra.mxu0 %v6704_v24 }
  0x9b   :  { %2069 = vmatprep.mubr.bf16.mxu0 %v6708_v26 }
  0x9c   :  { %2183 = vmatmul.mubr.bf16.gmra.mxu1 %v6707_v31  ;;  %v6803_v31 = vld [vmem:[%s9040_s0 + $0x1cc] ss:$52 sps:$4 sm:$0xff]  }
  0x9d   :  { %2190 = vmatprep.mubr.bf16.mxu1 %v6711_v32 }
  0xa2   :  { %2070 = vmatmul.mubr.bf16.gmra.mxu0 %v6710_v35  ;;  %v6849_v35 = vld [vmem:[%s9039_s1 + $0x300] sm:$0xff]  }
  0xa3   :  { %2077 = vmatprep.mubr.bf16.mxu0 %v6714_v36 }
  0xa4   :  { %2191 = vmatmul.mubr.bf16.gmra.mxu1 %v6713_v37 }
  0xa5   :  { %2198 = vmatprep.mubr.bf16.mxu1 %v6717_v38 }
  0xaa   :  { %2078 = vmatmul.mubr.bf16.gmra.mxu0 %v6716_v39 }
  0xab   :  { %2085 = vmatprep.mubr.bf16.mxu0 %v6720_v40 }
  0xac   :  { %2199 = vmatmul.mubr.bf16.gmra.mxu1 %v6719_v41 }
  0xad   :  { %2206 = vmatprep.mubr.bf16.mxu1 %v6724_v42  ;;  %v6802_v42 = vld [vmem:[%s9040_s0 + $0x1c0] ss:$52 sps:$4 sm:$0xff]  }
  0xb2   :  { %2086 = vmatmul.mubr.bf16.gmra.mxu0 %v6722_v43 }
  0xb3   :  { %2093 = vmatprep.mubr.bf16.mxu0 %v6733_v44 }
  0xb4   :  { %2207 = vmatmul.mubr.bf16.gmra.mxu1 %v6727_v45  ;;  %v6806_v45 = vld [vmem:[%s9040_s0 + $0x22c] ss:$52 sps:$4 sm:$0xff]  }
  0xb5   :  { %2214 = vmatprep.mubr.bf16.mxu1 %v6738_v46 }
  0xba   :  { %2094 = vmatmul.mubr.bf16.gmra.mxu0 %v6736_v47 }
  0xbb   :  { %2101 = vmatprep.mubr.bf16.mxu0 %v6747_v48 }
  0xbc   :  { %2215 = vmatmul.mubr.bf16.gmra.mxu1 %v6741_v49 }
  0xbd   :  { %2222 = vmatprep.mubr.bf16.mxu1 %v6752_v50  ;;  %v6805_v50 = vld [vmem:[%s9040_s0 + $0x1c8] ss:$52 sps:$4 sm:$0xff]  }
  0xc2   :  { %2102 = vmatmul.mubr.bf16.gmra.mxu0 %v6750_v51 }
  0xc3   :  { %2109 = vmatprep.mubr.bf16.mxu0 %v6761_v52 }
  0xc4   :  { %2223 = vmatmul.mubr.bf16.gmra.mxu1 %v6755_v53  ;;  %v6809_v53 = vld [vmem:[%s9040_s0 + $0x234] ss:$52 sps:$4 sm:$0xff]  }
  0xc5   :  { %2230 = vmatprep.mubr.bf16.mxu1 %v6766_v54 }
  0xca   :  { %2110 = vmatmul.mubr.bf16.gmra.mxu0 %v6764_v55 }
  0xcb   :  { %2271 = vmatprep.mubr.bf16.mxu0 %v6777_v56 }
  0xcc   :  { %2231 = vmatmul.mubr.bf16.gmra.mxu1 %v6769_v57 }
  0xcd   :  { %2392 = vmatprep.mubr.bf16.mxu1 %v6781_v58 }
  0xd2   :  { %2272 = vmatmul.mubr.bf16.vlgmr.msra.gmra.mxu0 %v6775_v59 }
  0xd3   :  { %2279 = vmatprep.mubr.bf16.mxu0 %v6782_v60  ;;  %6217 = vmatpush3.bf16.msra.mxu0 %v6824_v61 }
  0xd4   :  { %6218 = vmatprep.subr.bf16.mxu0 %v7065_v34  ;;  %2393 = vmatmul.mubr.bf16.vlgmr.msra.gmra.mxu1 %v6779_v62  ;;  %v6808_v62 = vld [vmem:[%s9040_s0 + $0x228] ss:$52 sps:$4 sm:$0xff]  }
  0xd5   :  { %2400 = vmatprep.mubr.bf16.mxu1 %v6785_v63 }
  0xd7   :  { %6219 = vmatpush3.bf16.msra.mxu0 %v6825_v0 }
  0xd8   :  { %6220 = vmatprep.subr.bf16.mxu0 %v7065_v34 }
  0xda   :  { %2280 = vmatmul.mubr.bf16.gmra.mxu0 %v6784_v1  ;;  %v6814_v1 = vld [vmem:[%s9040_s0 + $0x294] ss:$52 sps:$4 sm:$0xff]  }
  0xdb   :  { %2287 = vmatprep.mubr.bf16.mxu0 %v6788_v2  ;;  %6221 = vmatpush3.bf16.msra.mxu0 %v6832_v3 }
  0xdc   :  { %6222 = vmatprep.subr.bf16.mxu0 %v7065_v34  ;;  %2401 = vmatmul.mubr.bf16.gmra.mxu1 %v6787_v4 }
  0xdd   :  { %2408 = vmatprep.mubr.bf16.mxu1 %v6791_v5 }
  0xdf   :  { %6223 = vmatpush3.bf16.msra.mxu0 %v6833_v6  ;;  %v6811_v6 = vld [vmem:[%s9040_s0 + $0x230] ss:$52 sps:$4 sm:$0xff]  }
  0xe0   :  { %6224 = vmatprep.subr.bf16.mxu0 %v7065_v34 }
  0xe2   :  { %v5585_v11 = vpop.f32.mrf.mxu0  ;;  %2288 = vmatmul.mubr.bf16.gmra.mxu0 %v6790_v7 }
  0xe3   :  { %2295 = vmatprep.mubr.bf16.mxu0 %v6794_v8  ;;  %6225 = vmatpush3.bf16.msra.mxu0 %v6840_v9  ;;  %v6817_v9 = vld [vmem:[%s9040_s0 + $0x29c] ss:$52 sps:$4 sm:$0xff]  }
  0xe4   :  { %v5586_v15 = vpop.f32.mrf.mxu0  ;;  %6226 = vmatprep.subr.bf16.mxu0 %v7065_v34  ;;  %v5667_v17 = vpop.f32.mrf.mxu1  ;;  %2409 = vmatmul.mubr.bf16.gmra.mxu1 %v6793_v10 }
  0xe5   :  { %v5587_v16 = vadd.f32 %v5586_v15, %v5585_v11  ;;  %2416 = vmatprep.mubr.bf16.mxu1 %v6797_v12 }
  0xe6   :  { %v5588_v18 = vpop.f32.mrf.mxu0  ;;  %v5668_v21 = vpop.f32.mrf.mxu1 }
  0xe7   :  { %v1790_v20 = vadd.f32 %v5587_v16, %v7743_v14  ;;  %6227 = vmatpush3.bf16.msra.mxu0 %v6841_v13  ;;  %v5669_v24 = vadd.f32 %v5668_v21, %v5667_v17 }
  0xe8   :  { %v5589_v25 = vpop.f32.mrf.mxu0  ;;  %6228 = vmatprep.subr.bf16.mxu0 %v7065_v34  ;;  %v5670_v27 = vpop.f32.mrf.mxu1 }
  0xe9   :  { %v5590_v26 = vadd.f32 %v5589_v25, %v5588_v18  ;;  %v7760_v29 = vadd.f32 %v5669_v24, %v1790_v20 }
  0xea   :  { %v5591_v30 = vpop.f32.mrf.mxu0  ;;  %2296 = vmatmul.mubr.bf16.gmra.mxu0 %v6796_v19  ;;  %v5671_v33 = vpop.f32.mrf.mxu1  ;;  %v6812_v19 = vld [vmem:[%s9040_s0 + $0x290] ss:$52 sps:$4 sm:$0xff]  }
  0xeb   :  { %v1793_v32 = vadd.f32 %v5590_v26, %v7743_v14  ;;  %2303 = vmatprep.mubr.bf16.mxu0 %v6800_v22  ;;  %6229 = vmatpush3.bf16.msra.mxu0 %v6848_v23  ;;  %v5672_v36 = vadd.f32 %v5671_v33, %v5670_v27  ;;  %v6820_v22 = vld [vmem:[%s9040_s0 + $0x2fc] ss:$52 sps:$4 sm:$0xff]   ;;  %v6815_v27 = vld [vmem:[%s9040_s0 + $0x298] ss:$52 sps:$4 sm:$0xff]  }
  0xec   :  { %v5592_v37 = vpop.f32.mrf.mxu0  ;;  %6230 = vmatprep.subr.bf16.mxu0 %v7065_v34  ;;  %v5673_v39 = vpop.f32.mrf.mxu1  ;;  %2417 = vmatmul.mubr.bf16.gmra.mxu1 %v6799_v28 }
  0xed   :  { %v5593_v38 = vadd.f32 %v5592_v37, %v5591_v30  ;;  %v7770_v40 = vadd.f32 %v5672_v36, %v1793_v32  ;;  %2424 = vmatprep.mubr.bf16.mxu1 %v6803_v31  ;;  %v6823_v31 = vld [vmem:[%s9040_s0 + $0x304] ss:$52 sps:$4 sm:$0xff]  }
  0xee   :  { %v5594_v41 = vpop.f32.mrf.mxu0  ;;  %v5674_v44 = vpop.f32.mrf.mxu1 }
  0xef   :  { %v1798_v43 = vadd.f32 %v5593_v38, %v7743_v14  ;;  %6231 = vmatpush3.bf16.msra.mxu0 %v6849_v35  ;;  %v5675_v46 = vadd.f32 %v5674_v44, %v5673_v39 }
  0xf0   :  { %v5595_v47 = vpop.f32.mrf.mxu0  ;;  %v5676_v49 = vpop.f32.mrf.mxu1 }
  0xf1   :  { %v5596_v48 = vadd.f32 %v5595_v47, %v5594_v41  ;;  %v7782_v51 = vadd.f32 %v5675_v46, %v1798_v43 }
  0xf2   :  { %v5597_v52 = vpop.f32.mrf.mxu0  ;;  %2304 = vmatmul.mubr.bf16.gmra.mxu0 %v6802_v42  ;;  %v5677_v55 = vpop.f32.mrf.mxu1  ;;  %v6818_v42 = vld [vmem:[%s9040_s0 + $0x2f8] ss:$52 sps:$4 sm:$0xff]  }
  0xf3   :  { %v1801_v54 = vadd.f32 %v5596_v48, %v7743_v14  ;;  %2311 = vmatprep.mubr.bf16.mxu0 %v6806_v45  ;;  %v5678_v56 = vadd.f32 %v5677_v55, %v5676_v49  ;;  %v6828_v45 = vld [vmem:[%s9040_s0 + $0x364] ss:$52 sps:$4 sm:$0xff]  }
  0xf4   :  { %v5598_v57 = vpop.f32.mrf.mxu0  ;;  %v5679_v59 = vpop.f32.mrf.mxu1  ;;  %2425 = vmatmul.mubr.bf16.gmra.mxu1 %v6805_v50  ;;  %v6821_v50 = vld [vmem:[%s9040_s0 + $0x300] ss:$52 sps:$4 sm:$0xff]  }
  0xf5   :  { %v5599_v58 = vadd.f32 %v5598_v57, %v5597_v52  ;;  %v7788_v60 = vadd.f32 %v5678_v56, %v1801_v54  ;;  %2432 = vmatprep.mubr.bf16.mxu1 %v6809_v53  ;;  %v6831_v54 = vld [vmem:[%s9040_s0 + $0x36c] ss:$52 sps:$4 sm:$0xff]  }
  0xf6   :  { %v5600_v61 = vpop.f32.mrf.mxu0  ;;  %v5680_v0 = vpop.f32.mrf.mxu1 }
  0xf7   :  { %v1806_v63 = vadd.f32 %v5599_v58, %v7743_v14  ;;  %v5681_v2 = vadd.f32 %v5680_v0, %v5679_v59  ;;  %v6826_v0 = vld [vmem:[%s9040_s0 + $0x360] ss:$52 sps:$4 sm:$0xff]  }
  0xf8   :  { %v5601_v3 = vpop.f32.mrf.mxu0  ;;  %v5682_v5 = vpop.f32.mrf.mxu1 }
  0xf9   :  { %v5602_v4 = vadd.f32 %v5601_v3, %v5600_v61  ;;  %v7800_v7 = vadd.f32 %v5681_v2, %v1806_v63  ;;  %v6836_v3 = vld [vmem:[%s9040_s0 + $0x3cc] ss:$52 sps:$4 sm:$0xff]  }
  0xfa   :  { %v5603_v8 = vpop.f32.mrf.mxu0  ;;  %2312 = vmatmul.mubr.bf16.gmra.mxu0 %v6808_v62  ;;  %v5683_v11 = vpop.f32.mrf.mxu1 }
  0xfb   :  { %v1809_v10 = vadd.f32 %v5602_v4, %v7743_v14  ;;  %2319 = vmatprep.mubr.bf16.mxu0 %v6814_v1  ;;  %v5684_v12 = vadd.f32 %v5683_v11, %v5682_v5 }
  0xfc   :  { %v5604_v13 = vpop.f32.mrf.mxu0  ;;  %v5685_v16 = vpop.f32.mrf.mxu1  ;;  %2433 = vmatmul.mubr.bf16.gmra.mxu1 %v6811_v6 }
  0xfd   :  { %v5605_v15 = vadd.f32 %v5604_v13, %v5603_v8  ;;  %v7806_v17 = vadd.f32 %v5684_v12, %v1809_v10  ;;  %2440 = vmatprep.mubr.bf16.mxu1 %v6817_v9  ;;  %v6829_v9 = vld [vmem:[%s9040_s0 + $0x368] ss:$52 sps:$4 sm:$0xff]  }
  0xfe   :  { %v5606_v18 = vpop.f32.mrf.mxu0  ;;  %v5686_v21 = vpop.f32.mrf.mxu1  ;;  %v6839_v12 = vld [vmem:[%s9040_s0 + $0x3d4] ss:$52 sps:$4 sm:$0xff]  }
  0xff   :  { %v1814_v20 = vadd.f32 %v5605_v15, %v7743_v14  ;;  %v5687_v23 = vadd.f32 %v5686_v21, %v5685_v16 }
 0x100   :  { %v5607_v24 = vpop.f32.mrf.mxu0  ;;  %v5688_v26 = vpop.f32.mrf.mxu1 }
 0x101   :  { %v5608_v25 = vadd.f32 %v5607_v24, %v5606_v18  ;;  %v7818_v28 = vadd.f32 %v5687_v23, %v1814_v20  ;;  %v6834_v23 = vld [vmem:[%s9040_s0 + $0x3c8] ss:$52 sps:$4 sm:$0xff]  }
 0x102   :  { %v5609_v30 = vpop.f32.mrf.mxu0  ;;  %2320 = vmatmul.mubr.bf16.gmra.mxu0 %v6812_v19  ;;  %v5689_v33 = vpop.f32.mrf.mxu1 }
 0x103   :  { %v1817_v32 = vadd.f32 %v5608_v25, %v7743_v14  ;;  %2327 = vmatprep.mubr.bf16.mxu0 %v6820_v22  ;;  %v5690_v35 = vadd.f32 %v5689_v33, %v5688_v26  ;;  %v6844_v26 = vld [vmem:[%s9040_s0 + $0x434] ss:$52 sps:$4 sm:$0xff]   ;;  %v6837_v33 = vld [vmem:[%s9040_s0 + $0x3d0] ss:$52 sps:$4 sm:$0xff]  }
 0x104   :  { %v5610_v36 = vpop.f32.mrf.mxu0  ;;  %v5691_v38 = vpop.f32.mrf.mxu1  ;;  %2441 = vmatmul.mubr.bf16.gmra.mxu1 %v6815_v27 }
 0x105   :  { %v5611_v37 = vadd.f32 %v5610_v36, %v5609_v30  ;;  %v7824_v39 = vadd.f32 %v5690_v35, %v1817_v32  ;;  %2448 = vmatprep.mubr.bf16.mxu1 %v6823_v31 }
 0x106   :  { %v5612_v41 = vpop.f32.mrf.mxu0  ;;  %v5692_v44 = vpop.f32.mrf.mxu1 }
 0x107   :  { %v1822_v43 = vadd.f32 %v5611_v37, %v7743_v14  ;;  %v5693_v46 = vadd.f32 %v5692_v44, %v5691_v38  ;;  %v6847_v37 = vld [vmem:[%s9040_s0 + $0x43c] ss:$52 sps:$4 sm:$0xff]  }
 0x108   :  { %v5613_v47 = vpop.f32.mrf.mxu0  ;;  %v5694_v49 = vpop.f32.mrf.mxu1 }
 0x109   :  { %v5614_v48 = vadd.f32 %v5613_v47, %v5612_v41  ;;  %v7836_v52 = vadd.f32 %v5693_v46, %v1822_v43 }
 0x10a   :  { %v5615_v53 = vpop.f32.mrf.mxu0  ;;  %2328 = vmatmul.mubr.bf16.gmra.mxu0 %v6818_v42  ;;  %v5695_v56 = vpop.f32.mrf.mxu1 }
 0x10b   :  { %v1825_v55 = vadd.f32 %v5614_v48, %v7743_v14  ;;  %2335 = vmatprep.mubr.bf16.mxu0 %v6828_v45  ;;  %v5696_v57 = vadd.f32 %v5695_v56, %v5694_v49  ;;  %v6842_v48 = vld [vmem:[%s9040_s0 + $0x430] ss:$52 sps:$4 sm:$0xff]  }
 0x10c   :  { %v5616_v58 = vpop.f32.mrf.mxu0  ;;  %v5697_v61 = vpop.f32.mrf.mxu1  ;;  %2449 = vmatmul.mubr.bf16.gmra.mxu1 %v6821_v50 }
 0x10d   :  { %v5617_v59 = vadd.f32 %v5616_v58, %v5615_v53  ;;  %v7842_v62 = vadd.f32 %v5696_v57, %v1825_v55  ;;  %2456 = vmatprep.mubr.bf16.mxu1 %v6831_v54  ;;  %v6845_v57 = vld [vmem:[%s9040_s0 + $0x438] ss:$52 sps:$4 sm:$0xff]  }
 0x10e   :  { %v5618_v63 = vpop.f32.mrf.mxu0  ;;  %v5698_v2 = vpop.f32.mrf.mxu1 }
 0x10f   :  { %v1830_v1 = vadd.f32 %v5617_v59, %v7743_v14  ;;  %v5699_v4 = vadd.f32 %v5698_v2, %v5697_v61 }
 0x110   :  { %v5619_v5 = vpop.f32.mrf.mxu0  ;;  %v5700_v8 = vpop.f32.mrf.mxu1 }
 0x111   :  { %v5620_v6 = vadd.f32 %v5619_v5, %v5618_v63  ;;  %v7854_v10 = vadd.f32 %v5699_v4, %v1830_v1 }
 0x112   :  { %v5621_v11 = vpop.f32.mrf.mxu0  ;;  %2336 = vmatmul.mubr.bf16.gmra.mxu0 %v6826_v0  ;;  %v5701_v15 = vpop.f32.mrf.mxu1 }
 0x113   :  { %v1833_v13 = vadd.f32 %v5620_v6, %v7743_v14  ;;  %2343 = vmatprep.mubr.bf16.mxu0 %v6836_v3  ;;  %v5702_v16 = vadd.f32 %v5701_v15, %v5700_v8  ;;  %v6850_v6 = vld [vmem:[%s9040_s0 + $0x30] ss:$52 sps:$4 sm:$0xff]  }
 0x114   :  { %v5622_v18 = vpop.f32.mrf.mxu0  ;;  %v5703_v20 = vpop.f32.mrf.mxu1  ;;  %2457 = vmatmul.mubr.bf16.gmra.mxu1 %v6829_v9 }
 0x115   :  { %v5623_v19 = vadd.f32 %v5622_v18, %v5621_v11  ;;  %v7860_v21 = vadd.f32 %v5702_v16, %v1833_v13  ;;  %2464 = vmatprep.mubr.bf16.mxu1 %v6839_v12 }
 0x116   :  { %v5624_v22 = vpop.f32.mrf.mxu0  ;;  %v5704_v25 = vpop.f32.mrf.mxu1 }
 0x117   :  { %v1838_v24 = vadd.f32 %v5623_v19, %v7743_v14  ;;  %v5705_v27 = vadd.f32 %v5704_v25, %v5703_v20 }
 0x118   :  { %v5625_v30 = vpop.f32.mrf.mxu0  ;;  %v5706_v32 = vpop.f32.mrf.mxu1 }
 0x119   :  { %v5626_v31 = vadd.f32 %v5625_v30, %v5624_v22  ;;  %v7872_v35 = vadd.f32 %v5705_v27, %v1838_v24  ;;  %v6851_v30 = vld [vmem:[%s9040_s0 + $0x98] ss:$52 sps:$4 sm:$0xff]  }
 0x11a   :  { %v5627_v36 = vpop.f32.mrf.mxu0  ;;  %2344 = vmatmul.mubr.bf16.gmra.mxu0 %v6834_v23  ;;  %v5707_v41 = vpop.f32.mrf.mxu1 }
 0x11b   :  { %v1841_v38 = vadd.f32 %v5626_v31, %v7743_v14  ;;  %2351 = vmatprep.mubr.bf16.mxu0 %v6844_v26  ;;  %v5708_v42 = vadd.f32 %v5707_v41, %v5706_v32 }
 0x11c   :  { %v5628_v43 = vpop.f32.mrf.mxu0  ;;  %v5709_v45 = vpop.f32.mrf.mxu1  ;;  %2465 = vmatmul.mubr.bf16.gmra.mxu1 %v6837_v33 }
 0x11d   :  { %v5629_v44 = vadd.f32 %v5628_v43, %v5627_v36  ;;  %v7878_v46 = vadd.f32 %v5708_v42, %v1841_v38  ;;  %2472 = vmatprep.mubr.bf16.mxu1 %v6847_v37 }
 0x11e   :  { %v5630_v47 = vpop.f32.mrf.mxu0  ;;  %v5710_v50 = vpop.f32.mrf.mxu1 }
 0x11f   :  { %v1846_v49 = vadd.f32 %v5629_v44, %v7743_v14  ;;  %v5711_v53 = vadd.f32 %v5710_v50, %v5709_v45 }
 0x120   :  { %v5631_v54 = vpop.f32.mrf.mxu0  ;;  %v5712_v56 = vpop.f32.mrf.mxu1 }
 0x121   :  { %v5632_v55 = vadd.f32 %v5631_v54, %v5630_v47  ;;  %v7887_v58 = vadd.f32 %v5711_v53, %v1846_v49  ;;  %v6852_v54 = vld [vmem:[%s9040_s0 + $0x100] ss:$52 sps:$4 sm:$0xff]  }
 0x122   :  { %v5633_v59 = vpop.f32.mrf.mxu0  ;;  %2352 = vmatmul.mubr.bf16.gmra.mxu0 %v6842_v48  ;;  %v5713_v63 = vpop.f32.mrf.mxu1 }
 0x123   :  { %v1849_v61 = vadd.f32 %v5632_v55, %v7743_v14  ;;  %6232 = vmatprep.mubr.msk.bf16.mxu0 %vm7066_vm0, %v7065_v34  ;;  %v5714_v0 = vadd.f32 %v5713_v63, %v5712_v56 }
 0x124   :  { %v5634_v1 = vpop.f32.mrf.mxu0  ;;  %v5715_v3 = vpop.f32.mrf.mxu1  ;;  %2473 = vmatmul.mubr.bf16.gmra.mxu1 %v6845_v57 }
 0x125   :  { %v5635_v2 = vadd.f32 %v5634_v1, %v5633_v59  ;;  %v7892_v4 = vadd.f32 %v5714_v0, %v1849_v61 }
 0x126   :  { %v5636_v5 = vpop.f32.mrf.mxu0  ;;  %v5716_v9 = vpop.f32.mrf.mxu1 }
 0x127   :  { %v1854_v8 = vadd.f32 %v5635_v2, %v7743_v14  ;;  %v5717_v11 = vadd.f32 %v5716_v9, %v5715_v3 }
 0x128   :  { %v5637_v12 = vpop.f32.mrf.mxu0  ;;  %v5718_v15 = vpop.f32.mrf.mxu1 }
 0x129   :  { %v5638_v13 = vadd.f32 %v5637_v12, %v5636_v5  ;;  %v7898_v16 = vadd.f32 %v5717_v11, %v1854_v8 }
 0x12a   :  { %v5639_v18 = vpop.f32.mrf.mxu0  ;;  %6233 = vmatmul.mubr.bf16.vlgmr.msra.gmra.mxu0 %v6850_v6  ;;  %v5719_v20 = vpop.f32.mrf.mxu1 }
 0x12b   :  { %v1857_v19 = vadd.f32 %v5638_v13, %v7743_v14  ;;  %6236 = vmatprep.mubr.msk.bf16.mxu0 %vm7066_vm0, %v7065_v34  ;;  %v5720_v22 = vadd.f32 %v5719_v20, %v5718_v15  ;;  %v6853_v13 = vld [vmem:[%s9040_s0 + $0x168] ss:$52 sps:$4 sm:$0xff]  }
 0x12c   :  { %v5640_v23 = vpop.f32.mrf.mxu0  ;;  %v5721_v25 = vpop.f32.mrf.mxu1 }
 0x12d   :  { %v5641_v24 = vadd.f32 %v5640_v23, %v5639_v18  ;;  %v7903_v26 = vadd.f32 %v5720_v22, %v1857_v19 }
 0x12e   :  { %v5642_v27 = vpop.f32.mrf.mxu0  ;;  %v5722_v32 = vpop.f32.mrf.mxu1 }
 0x12f   :  { %v1862_v31 = vadd.f32 %v5641_v24, %v7743_v14  ;;  %v5723_v33 = vadd.f32 %v5722_v32, %v5721_v25 }
 0x130   :  { %v5643_v36 = vpop.f32.mrf.mxu0  ;;  %v5724_v38 = vpop.f32.mrf.mxu1 }
 0x131   :  { %v5644_v37 = vadd.f32 %v5643_v36, %v5642_v27  ;;  %v7909_v41 = vadd.f32 %v5723_v33, %v1862_v31 }
 0x132   :  { %v5645_v42 = vpop.f32.mrf.mxu0  ;;  %6237 = vmatmul.mubr.bf16.gmra.mxu0 %v6851_v30  ;;  %v5725_v44 = vpop.f32.mrf.mxu1 }
 0x133   :  { %v1865_v43 = vadd.f32 %v5644_v37, %v7743_v14  ;;  %6240 = vmatprep.mubr.msk.bf16.mxu0 %vm7066_vm0, %v7065_v34  ;;  %v5726_v45 = vadd.f32 %v5725_v44, %v5724_v38  ;;  %v6854_v37 = vld [vmem:[%s9040_s0 + $0x1d0] ss:$52 sps:$4 sm:$0xff]  }
 0x134   :  { %v5646_v47 = vpop.f32.mrf.mxu0  ;;  %v5727_v49 = vpop.f32.mrf.mxu1 }
 0x135   :  { %v5647_v48 = vadd.f32 %v5646_v47, %v5645_v42  ;;  %v7914_v50 = vadd.f32 %v5726_v45, %v1865_v43 }
 0x136   :  { %v5648_v53 = vpop.f32.mrf.mxu0  ;;  %v5728_v56 = vpop.f32.mrf.mxu1 }
 0x137   :  { %v1870_v55 = vadd.f32 %v5647_v48, %v7743_v14  ;;  %v5729_v57 = vadd.f32 %v5728_v56, %v5727_v49 }
 0x138   :  { %v5649_v59 = vpop.f32.mrf.mxu0  ;;  %v5730_v63 = vpop.f32.mrf.mxu1 }
 0x139   :  { %v5650_v61 = vadd.f32 %v5649_v59, %v5648_v53  ;;  %v7920_v0 = vadd.f32 %v5729_v57, %v1870_v55 }
 0x13a   :  { %v5749_v1 = vpop.f32.mrf.mxu0  ;;  %6241 = vmatmul.mubr.bf16.gmra.mxu0 %v6852_v54  ;;  %v5731_v3 = vpop.f32.mrf.mxu1 }
 0x13b   :  { %v1873_v2 = vadd.f32 %v5650_v61, %v7743_v14  ;;  %6244 = vmatprep.mubr.msk.bf16.mxu0 %vm7066_vm0, %v7065_v34  ;;  %v5732_v5 = vadd.f32 %v5731_v3, %v5730_v63  ;;  %v6855_v61 = vld [vmem:[%s9040_s0 + $0x238] ss:$52 sps:$4 sm:$0xff]  }
 0x13c   :  { %v5750_v6 = vpop.f32.mrf.mxu0  ;;  %v5831_v9 = vpop.f32.mrf.mxu1 }
 0x13d   :  { %v5751_v8 = vadd.f32 %v5750_v6, %v5749_v1  ;;  %v7925_v11 = vadd.f32 %v5732_v5, %v1873_v2 }
 0x13e   :  { %v5752_v12 = vpop.f32.mrf.mxu0  ;;  %v5832_v18 = vpop.f32.mrf.mxu1 }
 0x13f   :  { %v2032_v15 = vadd.f32 %v5751_v8, %v7760_v29  ;;  %v5833_v19 = vadd.f32 %v5832_v18, %v5831_v9 }
 0x140   :  { %v5753_v14 = vpop.f32.mrf.mxu0  ;;  %v5834_v22 = vpop.f32.mrf.mxu1 }
 0x141   :  { %v5754_v20 = vadd.f32 %v5753_v14, %v5752_v12  ;;  %v7931_v23 = vadd.f32 %v5833_v19, %v2032_v15 }
 0x142   :  { %v5755_v24 = vpop.f32.mrf.mxu0  ;;  %6245 = vmatmul.mubr.bf16.gmra.mxu0 %v6853_v13  ;;  %v5835_v27 = vpop.f32.mrf.mxu1 }
 0x143   :  { %v2035_v25 = vadd.f32 %v5754_v20, %v7770_v40  ;;  %6248 = vmatprep.mubr.msk.bf16.mxu0 %vm7066_vm0, %v7065_v34  ;;  %v5836_v30 = vadd.f32 %v5835_v27, %v5834_v22  ;;  %v6856_v20 = vld [vmem:[%s9040_s0 + $0x2a0] ss:$52 sps:$4 sm:$0xff]  }
 0x144   :  { %v5756_v31 = vpop.f32.mrf.mxu0  ;;  %v5837_v33 = vpop.f32.mrf.mxu1 }
 0x145   :  { %v5757_v32 = vadd.f32 %v5756_v31, %v5755_v24  ;;  %v7936_v29 = vadd.f32 %v5836_v30, %v2035_v25 }
 0x146   :  { %v5758_v36 = vpop.f32.mrf.mxu0  ;;  %v5838_v42 = vpop.f32.mrf.mxu1 }
 0x147   :  { %v2040_v38 = vadd.f32 %v5757_v32, %v7782_v51  ;;  %v5839_v43 = vadd.f32 %v5838_v42, %v5837_v33 }
 0x148   :  { %v5759_v40 = vpop.f32.mrf.mxu0  ;;  %v5840_v45 = vpop.f32.mrf.mxu1 }
 0x149   :  { %v5760_v44 = vadd.f32 %v5759_v40, %v5758_v36  ;;  %v7942_v47 = vadd.f32 %v5839_v43, %v2040_v38 }
 0x14a   :  { %v5761_v48 = vpop.f32.mrf.mxu0  ;;  %6249 = vmatmul.mubr.bf16.gmra.mxu0 %v6854_v37  ;;  %v5841_v53 = vpop.f32.mrf.mxu1 }
 0x14b   :  { %v2043_v49 = vadd.f32 %v5760_v44, %v7788_v60  ;;  %6252 = vmatprep.mubr.msk.bf16.mxu0 %vm7066_vm0, %v7065_v34  ;;  %v5842_v54 = vadd.f32 %v5841_v53, %v5840_v45  ;;  %v6857_v44 = vld [vmem:[%s9040_s0 + $0x308] ss:$52 sps:$4 sm:$0xff]  }
 0x14c   :  { %v5762_v55 = vpop.f32.mrf.mxu0  ;;  %v5843_v57 = vpop.f32.mrf.mxu1 }
 0x14d   :  { %v5763_v56 = vadd.f32 %v5762_v55, %v5761_v48  ;;  %v7947_v51 = vadd.f32 %v5842_v54, %v2043_v49 }
 0x14e   :  { %v5764_v59 = vpop.f32.mrf.mxu0  ;;  %v5844_v1 = vpop.f32.mrf.mxu1 }
 0x14f   :  { %v2048_v63 = vadd.f32 %v5763_v56, %v7800_v7  ;;  %v5845_v2 = vadd.f32 %v5844_v1, %v5843_v57 }
 0x150   :  { %v5765_v60 = vpop.f32.mrf.mxu0  ;;  %v5846_v5 = vpop.f32.mrf.mxu1 }
 0x151   :  { %v5766_v3 = vadd.f32 %v5765_v60, %v5764_v59  ;;  %v7953_v6 = vadd.f32 %v5845_v2, %v2048_v63 }
 0x152   :  { %v5767_v8 = vpop.f32.mrf.mxu0  ;;  %6253 = vmatmul.mubr.bf16.gmra.mxu0 %v6855_v61  ;;  %v5847_v12 = vpop.f32.mrf.mxu1 }
 0x153   :  { %v2051_v9 = vadd.f32 %v5766_v3, %v7806_v17  ;;  %6256 = vmatprep.mubr.msk.bf16.mxu0 %vm7066_vm0, %v7065_v34  ;;  %v5848_v13 = vadd.f32 %v5847_v12, %v5846_v5  ;;  %v6858_v3 = vld [vmem:[%s9040_s0 + $0x370] ss:$52 sps:$4 sm:$0xff]  }
 0x154   :  { %v5768_v15 = vpop.f32.mrf.mxu0  ;;  %v5849_v19 = vpop.f32.mrf.mxu1 }
 0x155   :  { %v5769_v18 = vadd.f32 %v5768_v15, %v5767_v8  ;;  %v7958_v7 = vadd.f32 %v5848_v13, %v2051_v9 }
 0x156   :  { %v5770_v14 = vpop.f32.mrf.mxu0  ;;  %v5850_v24 = vpop.f32.mrf.mxu1 }
 0x157   :  { %v2056_v22 = vadd.f32 %v5769_v18, %v7818_v28  ;;  %v5851_v25 = vadd.f32 %v5850_v24, %v5849_v19 }
 0x158   :  { %v5771_v17 = vpop.f32.mrf.mxu0  ;;  %v5852_v30 = vpop.f32.mrf.mxu1 }
 0x159   :  { %v5772_v27 = vadd.f32 %v5771_v17, %v5770_v14  ;;  %v7964_v31 = vadd.f32 %v5851_v25, %v2056_v22 }
 0x15a   :  { %v5773_v32 = vpop.f32.mrf.mxu0  ;;  %6257 = vmatmul.mubr.bf16.gmra.mxu0 %v6856_v20  ;;  %v5853_v36 = vpop.f32.mrf.mxu1 }
 0x15b   :  { %v2059_v33 = vadd.f32 %v5772_v27, %v7824_v39  ;;  %6260 = vmatprep.mubr.msk.bf16.mxu0 %vm7066_vm0, %v7065_v34  ;;  %v5854_v37 = vadd.f32 %v5853_v36, %v5852_v30  ;;  %v6859_v27 = vld [vmem:[%s9040_s0 + $0x3d8] ss:$52 sps:$4 sm:$0xff]  }
 0x15c   :  { %v5774_v38 = vpop.f32.mrf.mxu0  ;;  %v5855_v43 = vpop.f32.mrf.mxu1 }
 0x15d   :  { %v5775_v42 = vadd.f32 %v5774_v38, %v5773_v32  ;;  %v7969_v28 = vadd.f32 %v5854_v37, %v2059_v33 }
 0x15e   :  { %v5776_v40 = vpop.f32.mrf.mxu0  ;;  %v5856_v48 = vpop.f32.mrf.mxu1 }
 0x15f   :  { %v2064_v45 = vadd.f32 %v5775_v42, %v7836_v52  ;;  %v5857_v49 = vadd.f32 %v5856_v48, %v5855_v43 }
 0x160   :  { %v5777_v39 = vpop.f32.mrf.mxu0  ;;  %v5858_v54 = vpop.f32.mrf.mxu1 }
 0x161   :  { %v5778_v53 = vadd.f32 %v5777_v39, %v5776_v40  ;;  %v7975_v55 = vadd.f32 %v5857_v49, %v2064_v45 }
 0x162   :  { %v5779_v56 = vpop.f32.mrf.mxu0  ;;  %6261 = vmatmul.mubr.bf16.gmra.mxu0 %v6857_v44  ;;  %v5859_v59 = vpop.f32.mrf.mxu1 }
 0x163   :  { %v2067_v57 = vadd.f32 %v5778_v53, %v7842_v62  ;;  %6264 = vmatprep.mubr.msk.bf16.mxu0 %vm7066_vm0, %v7065_v34  ;;  %v5860_v61 = vadd.f32 %v5859_v59, %v5858_v54  ;;  %v6860_v53 = vld [vmem:[%s9040_s0 + $0x440] ss:$52 sps:$4 sm:$0xff]  }
 0x164   :  { %v5780_v63 = vpop.f32.mrf.mxu0  ;;  %v5861_v2 = vpop.f32.mrf.mxu1 }
 0x165   :  { %v5781_v1 = vadd.f32 %v5780_v63, %v5779_v56  ;;  %v7980_v52 = vadd.f32 %v5860_v61, %v2067_v57 }
 0x166   :  { %v5782_v60 = vpop.f32.mrf.mxu0  ;;  %v5862_v8 = vpop.f32.mrf.mxu1 }
 0x167   :  { %v2072_v5 = vadd.f32 %v5781_v1, %v7854_v10  ;;  %v5863_v9 = vadd.f32 %v5862_v8, %v5861_v2 }
 0x168   :  { %v5783_v62 = vpop.f32.mrf.mxu0  ;;  %v5864_v13 = vpop.f32.mrf.mxu1 }
 0x169   :  { %v5784_v12 = vadd.f32 %v5783_v62, %v5782_v60  ;;  %v7986_v15 = vadd.f32 %v5863_v9, %v2072_v5 }
 0x16a   :  { %v5785_v18 = vpop.f32.mrf.mxu0  ;;  %6265 = vmatmul.mubr.bf16.gmra.mxu0 %v6858_v3  ;;  %v5865_v14 = vpop.f32.mrf.mxu1 }
 0x16b   :  { %v2075_v19 = vadd.f32 %v5784_v12, %v7860_v21  ;;  %6268 = vmatprep.mubr.msk.bf16.mxu0 %vm7066_vm0, %v7065_v34  ;;  %v5866_v20 = vadd.f32 %v5865_v14, %v5864_v13 }
 0x16c   :  { %v5786_v22 = vpop.f32.mrf.mxu0  ;;  %v5867_v25 = vpop.f32.mrf.mxu1 }
 0x16d   :  { %v5787_v24 = vadd.f32 %v5786_v22, %v5785_v18  ;;  %v7991_v10 = vadd.f32 %v5866_v20, %v2075_v19 }
 0x16e   :  { %v5788_v17 = vpop.f32.mrf.mxu0  ;;  %v5868_v32 = vpop.f32.mrf.mxu1 }
 0x16f   :  { %v2080_v30 = vadd.f32 %v5787_v24, %v7872_v35  ;;  %v5869_v33 = vadd.f32 %v5868_v32, %v5867_v25 }
 0x170   :  { %v5789_v21 = vpop.f32.mrf.mxu0  ;;  %v5870_v37 = vpop.f32.mrf.mxu1 }
 0x171   :  { %v5790_v36 = vadd.f32 %v5789_v21, %v5788_v17  ;;  %v7997_v38 = vadd.f32 %v5869_v33, %v2080_v30 }
 0x172   :  { %v5791_v42 = vpop.f32.mrf.mxu0  ;;  %6269 = vmatmul.mubr.bf16.gmra.mxu0 %v6859_v27  ;;  %v5871_v40 = vpop.f32.mrf.mxu1 }
 0x173   :  { %v2083_v43 = vadd.f32 %v5790_v36, %v7878_v46  ;;  %6272 = vmatprep.mubr.msk.bf16.mxu0 %vm7066_vm0, %v7065_v34  ;;  %v5872_v44 = vadd.f32 %v5871_v40, %v5870_v37 }
 0x174   :  { %v5792_v45 = vpop.f32.mrf.mxu0  ;;  %v5873_v49 = vpop.f32.mrf.mxu1 }
 0x175   :  { %v5793_v48 = vadd.f32 %v5792_v45, %v5791_v42  ;;  %v8002_v35 = vadd.f32 %v5872_v44, %v2083_v43 }
 0x176   :  { %v5794_v39 = vpop.f32.mrf.mxu0  ;;  %v5874_v56 = vpop.f32.mrf.mxu1 }
 0x177   :  { %v2088_v54 = vadd.f32 %v5793_v48, %v7887_v58  ;;  %v5875_v57 = vadd.f32 %v5874_v56, %v5873_v49 }
 0x178   :  { %v5795_v46 = vpop.f32.mrf.mxu0  ;;  %v5876_v61 = vpop.f32.mrf.mxu1 }
 0x179   :  { %v5796_v59 = vadd.f32 %v5795_v46, %v5794_v39  ;;  %v8008_v63 = vadd.f32 %v5875_v57, %v2088_v54 }
 0x17a   :  { %v5797_v34 = vpop.f32.mrf.mxu0  ;;  %6273 = vmatmul.mubr.bf16.gmra.mxu0 %v6860_v53  ;;  %v5877_v2 = vpop.f32.mrf.mxu1 }
 0x17b   :  { %v2091_v1 = vadd.f32 %v5796_v59, %v7892_v4  ;;  %v5878_v60 = vadd.f32 %v5877_v2, %v5876_v61 }
 0x17c   :  { %v5798_v3 = vpop.f32.mrf.mxu0  ;;  %v5879_v8 = vpop.f32.mrf.mxu1 }
 0x17d   :  { %v5799_v5 = vadd.f32 %v5798_v3, %v5797_v34  ;;  %v8011_v9 = vadd.f32 %v5878_v60, %v2091_v1 }
 0x17e   :  { %v5800_v62 = vpop.f32.mrf.mxu0  ;;  %v5880_v12 = vpop.f32.mrf.mxu1 }
 0x17f   :  { %v2096_v58 = vadd.f32 %v5799_v5, %v7898_v16  ;;  %v5881_v13 = vadd.f32 %v5880_v12, %v5879_v8 }
 0x180   :  { %v5801_v18 = vpop.f32.mrf.mxu0  ;;  %v5882_v14 = vpop.f32.mrf.mxu1 }
 0x181   :  { %v5802_v19 = vadd.f32 %v5801_v18, %v5800_v62  ;;  %v8014_v20 = vadd.f32 %v5881_v13, %v2096_v58 }
 0x182   :  { %v5803_v22 = vpop.f32.mrf.mxu0  ;;  %v5883_v24 = vpop.f32.mrf.mxu1 }
 0x183   :  { %v2099_v4 = vadd.f32 %v5802_v19, %v7903_v26  ;;  %v5884_v25 = vadd.f32 %v5883_v24, %v5882_v14 }
 0x184   :  { %v5804_v17 = vpop.f32.mrf.mxu0  ;;  %v5885_v30 = vpop.f32.mrf.mxu1 }
 0x185   :  { %v5805_v27 = vadd.f32 %v5804_v17, %v5803_v22  ;;  %v8017_v32 = vadd.f32 %v5884_v25, %v2099_v4 }
 0x186   :  { %v5806_v33 = vpop.f32.mrf.mxu0  ;;  %v5886_v21 = vpop.f32.mrf.mxu1 }
 0x187   :  { %v2104_v16 = vadd.f32 %v5805_v27, %v7909_v41  ;;  %v5887_v36 = vadd.f32 %v5886_v21, %v5885_v30 }
 0x188   :  { %v5807_v37 = vpop.f32.mrf.mxu0  ;;  %v5888_v43 = vpop.f32.mrf.mxu1 }
 0x189   :  { %v5808_v42 = vadd.f32 %v5807_v37, %v5806_v33  ;;  %v8020_v40 = vadd.f32 %v5887_v36, %v2104_v16 }
 0x18a   :  { %v5809_v44 = vpop.f32.mrf.mxu0  ;;  %v5889_v45 = vpop.f32.mrf.mxu1 }
 0x18b   :  { %v2107_v26 = vadd.f32 %v5808_v42, %v7914_v50  ;;  %v5890_v48 = vadd.f32 %v5889_v45, %v5888_v43 }
 0x18c   :  { %v5810_v49 = vpop.f32.mrf.mxu0  ;;  %v5891_v53 = vpop.f32.mrf.mxu1 }
 0x18d   :  { %v5811_v39 = vadd.f32 %v5810_v49, %v5809_v44  ;;  %v8023_v54 = vadd.f32 %v5890_v48, %v2107_v26 }
 0x18e   :  { %v5812_v56 = vpop.f32.mrf.mxu0  ;;  %v5892_v57 = vpop.f32.mrf.mxu1 }
 0x18f   :  { %v2112_v41 = vadd.f32 %v5811_v39, %v7920_v0  ;;  %v5893_v46 = vadd.f32 %v5892_v57, %v5891_v53 }
 0x190   :  { %v5813_v59 = vpop.f32.mrf.mxu0  ;;  %v5894_v34 = vpop.f32.mrf.mxu1 }
 0x191   :  { %v5814_v61 = vadd.f32 %v5813_v59, %v5812_v56  ;;  %v8026_v1 = vadd.f32 %v5893_v46, %v2112_v41 }
 0x192   :  { %v5913_v2 = vpop.f32.mrf.mxu0  ;;  %v5895_v60 = vpop.f32.mrf.mxu1 }
 0x193   :  { %v2115_v50 = vadd.f32 %v5814_v61, %v7925_v11  ;;  %v5896_v3 = vadd.f32 %v5895_v60, %v5894_v34 }
 0x194   :  { %v5914_v5 = vpop.f32.mrf.mxu0  ;;  %v5995_v62 = vpop.f32.mrf.mxu1 }
 0x195   :  { %v5915_v8 = vadd.f32 %v5914_v5, %v5913_v2  ;;  %v8029_v58 = vadd.f32 %v5896_v3, %v2115_v50 }
 0x196   :  { %v5916_v12 = vpop.f32.mrf.mxu0  ;;  %v5996_v13 = vpop.f32.mrf.mxu1 }
 0x197   :  { %v2274_v0 = vadd.f32 %v5915_v8, %v7931_v23  ;;  %v5997_v18 = vadd.f32 %v5996_v13, %v5995_v62 }
 0x198   :  { %v5917_v19 = vpop.f32.mrf.mxu0  ;;  %v5998_v22 = vpop.f32.mrf.mxu1 }
 0x199   :  { %v5918_v14 = vadd.f32 %v5917_v19, %v5916_v12  ;;  %v8032_v24 = vadd.f32 %v5997_v18, %v2274_v0 }
 0x19a   :  { %v5919_v4 = vpop.f32.mrf.mxu0  ;;  %v5999_v25 = vpop.f32.mrf.mxu1 }
 0x19b   :  { %v2277_v11 = vadd.f32 %v5918_v14, %v7936_v29  ;;  %v6000_v17 = vadd.f32 %v5999_v25, %v5998_v22 }
 0x19c   :  { %v5920_v27 = vpop.f32.mrf.mxu0  ;;  %v6001_v33 = vpop.f32.mrf.mxu1 }
 0x19d   :  { %v5921_v30 = vadd.f32 %v5920_v27, %v5919_v4  ;;  %v8035_v21 = vadd.f32 %v6000_v17, %v2277_v11 }
 0x19e   :  { %v5922_v16 = vpop.f32.mrf.mxu0  ;;  %v6002_v36 = vpop.f32.mrf.mxu1 }
 0x19f   :  { %v2282_v23 = vadd.f32 %v5921_v30, %v7942_v47  ;;  %v6003_v37 = vadd.f32 %v6002_v36, %v6001_v33 }
 0x1a0   :  { %v5923_v42 = vpop.f32.mrf.mxu0  ;;  %v6004_v44 = vpop.f32.mrf.mxu1 }
 0x1a1   :  { %v5924_v43 = vadd.f32 %v5923_v42, %v5922_v16  ;;  %v8038_v45 = vadd.f32 %v6003_v37, %v2282_v23 }
 0x1a2   :  { %v5925_v26 = vpop.f32.mrf.mxu0  ;;  %v6005_v48 = vpop.f32.mrf.mxu1 }
 0x1a3   :  { %v2285_v29 = vadd.f32 %v5924_v43, %v7947_v51  ;;  %v6006_v49 = vadd.f32 %v6005_v48, %v6004_v44  ;;  %v9050_v51 = vmov 0  }
 0x1a4   :  { %v5926_v39 = vpop.f32.mrf.mxu0  ;;  %v6007_v56 = vpop.f32.mrf.mxu1  ;;  %2726 = vmatprep.subr.bf16.mxu1 %v9050_v51 }
 0x1a5   :  { %v5927_v53 = vadd.f32 %v5926_v39, %v5925_v26  ;;  %v8041_v57 = vadd.f32 %v6006_v49, %v2285_v29 }
 0x1a6   :  { %v5928_v41 = vpop.f32.mrf.mxu0  ;;  %v6008_v46 = vpop.f32.mrf.mxu1 }
 0x1a7   :  { %v2290_v47 = vadd.f32 %v5927_v53, %v7953_v6  ;;  %v6009_v59 = vadd.f32 %v6008_v46, %v6007_v56 }
 0x1a8   :  { %v5929_v61 = vpop.f32.mrf.mxu0  ;;  %v8059_v22 = vpop.f32.mrf.mxu1 }
 0x1a9   :  { %v5930_v34 = vadd.f32 %v5929_v61, %v5928_v41  ;;  %v8044_v50 = vadd.f32 %v6009_v59, %v2290_v47 }
 0x1aa   :  { %v5931_v2 = vpop.f32.mrf.mxu0  ;;  %v8064_v17 = vpop.f32.mrf.mxu1 }
 0x1ab   :  { %v8047_v60 = vadd.f32 %v5930_v34, %v7958_v7 }
 0x1ac   :  { %v5932_v3 = vpop.f32.mrf.mxu0  ;;  %v8069_v16 = vpop.f32.mrf.mxu1 }
 0x1ad   :  { %v5933_v5 = vadd.f32 %v5932_v3, %v5931_v2 }
 0x1ae   :  { %v5934_v8 = vpop.f32.mrf.mxu0  ;;  %v8074_v42 = vpop.f32.mrf.mxu1 }
 0x1af   :  { %v8051_v62 = vadd.f32 %v5933_v5, %v7964_v31  ;;  %v6863_v5 = vld [vmem:[%s9042_s3 + $0x4] ss:$8 sps:$4 sm:$0xff]  }
 0x1b0   :  { %v5935_v6 = vpop.f32.mrf.mxu0  ;;  %v8079_v29 = vpop.f32.mrf.mxu1  ;;  %5301 = vmatprep.mubr.msk.bf16.mxu1 %vm2701_vm1, %v6863_v5 }
 0x1b1   :  { %v5936_v12 = vadd.f32 %v5935_v6, %v5934_v8 }
 0x1b2   :  { %v5937_v0 = vpop.f32.mrf.mxu0  ;;  %v8084_v53 = vpop.f32.mrf.mxu1 }
 0x1b3   :  { %v8054_v13 = vadd.f32 %v5936_v12, %v7969_v28 }
 0x1b4   :  { %v5938_v18 = vpop.f32.mrf.mxu0  ;;  %v8089_v46 = vpop.f32.mrf.mxu1 }
 0x1b5   :  { %v5939_v19 = vadd.f32 %v5938_v18, %v5937_v0 }
 0x1b6   :  { %v5940_v14 = vpop.f32.mrf.mxu0  ;;  %v8094_v2 = vpop.f32.mrf.mxu1 }
 0x1b7   :  { %v8057_v7 = vadd.f32 %v5939_v19, %v7975_v55 }
 0x1b8   :  { %v5941_v4 = vpop.f32.mrf.mxu0  ;;  %v8103_v6 = vpop.f32.mrf.mxu1 }
 0x1b9   :  { %v5942_v11 = vadd.f32 %v5941_v4, %v5940_v14 }
 0x1ba   :  { %v5943_v25 = vpop.f32.mrf.mxu0  ;;  %v8108_v19 = vpop.f32.mrf.mxu1 }
 0x1bb   :  { %v8062_v31 = vadd.f32 %v5942_v11, %v7980_v52 }
 0x1bc   :  { %v5944_v27 = vpop.f32.mrf.mxu0 }
 0x1bd   :  { %v5945_v30 = vadd.f32 %v5944_v27, %v5943_v25 }
 0x1be   :  { %v5946_v28 = vpop.f32.mrf.mxu0 }
 0x1bf   :  { %v8067_v33 = vadd.f32 %v5945_v30, %v7986_v15 }
 0x1c0   :  { %v5947_v55 = vpop.f32.mrf.mxu0 }
 0x1c1   :  { %v5948_v23 = vadd.f32 %v5947_v55, %v5946_v28 }
 0x1c2   :  { %v5949_v36 = vpop.f32.mrf.mxu0 }
 0x1c3   :  { %v8072_v37 = vadd.f32 %v5948_v23, %v7991_v10 }
 0x1c4   :  { %v5950_v52 = vpop.f32.mrf.mxu0 }
 0x1c5   :  { %v5951_v43 = vadd.f32 %v5950_v52, %v5949_v36 }
 0x1c6   :  { %v5952_v44 = vpop.f32.mrf.mxu0 }
 0x1c7   :  { %v8077_v26 = vadd.f32 %v5951_v43, %v7997_v38 }
 0x1c8   :  { %v5953_v15 = vpop.f32.mrf.mxu0 }
 0x1c9   :  { %v5954_v48 = vadd.f32 %v5953_v15, %v5952_v44 }
 0x1ca   :  { %v5955_v49 = vpop.f32.mrf.mxu0 }
 0x1cb   :  { %v8082_v39 = vadd.f32 %v5954_v48, %v8002_v35 }
 0x1cc   :  { %v5956_v10 = vpop.f32.mrf.mxu0 }
 0x1cd   :  { %v5957_v56 = vadd.f32 %v5956_v10, %v5955_v49 }
 0x1ce   :  { %v5958_v41 = vpop.f32.mrf.mxu0 }
 0x1cf   :  { %v8087_v47 = vadd.f32 %v5957_v56, %v8008_v63 }
 0x1d0   :  { %v5959_v38 = vpop.f32.mrf.mxu0 }
 0x1d1   :  { %v5960_v59 = vadd.f32 %v5959_v38, %v5958_v41 }
 0x1d2   :  { %v5961_v61 = vpop.f32.mrf.mxu0 }
 0x1d3   :  { %v8092_v34 = vadd.f32 %v5960_v59, %v8011_v9 }
 0x1d4   :  { %v5962_v35 = vpop.f32.mrf.mxu0 }
 0x1d5   :  { %v5963_v3 = vadd.f32 %v5962_v35, %v5961_v61 }
 0x1d6   :  { %v5964_v8 = vpop.f32.mrf.mxu0 }
 0x1d7   :  { %v8100_v63 = vadd.f32 %v5963_v3, %v8014_v20  ;;  %v8113_v20 = vpop.f32.mrf.mxu1 }
 0x1d8   :  { %v5965_v12 = vpop.f32.mrf.mxu0 }
 0x1d9   :  { %9052 = vst [vmem:[#allocation2_spill] sm:$0xff] %v8100_v63  ;;  %v5966_v9 = vadd.f32 %v5965_v12, %v5964_v8  ;;  %v8118_v23 = vpop.f32.mrf.mxu1 }
 0x1da   :  { %v5967_v0 = vpop.f32.mrf.mxu0 }
 0x1db   :  { %v8106_v18 = vadd.f32 %v5966_v9, %v8017_v32  ;;  %v6028_v44 = vpop.f32.mrf.mxu1 }
 0x1dc   :  { %v5968_v14 = vpop.f32.mrf.mxu0 }
 0x1dd   :  { %9053 = vst [vmem:[#allocation3_spill] sm:$0xff] %v8106_v18  ;;  %v5969_v4 = vadd.f32 %v5968_v14, %v5967_v0 }
 0x1de   :  { %v5970_v11 = vpop.f32.mrf.mxu0 }
 0x1df   :  { %v8111_v25 = vadd.f32 %v5969_v4, %v8020_v40 }
 0x1e0   :  { %v5971_v27 = vpop.f32.mrf.mxu0 }
 0x1e1   :  { %9054 = vst [vmem:[#allocation4_spill] sm:$0xff] %v8111_v25  ;;  %v5972_v30 = vadd.f32 %v5971_v27, %v5970_v11 }
 0x1e2   :  { %v5973_v28 = vpop.f32.mrf.mxu0 }
 0x1e3   :  { %v8116_v55 = vadd.f32 %v5972_v30, %v8023_v54  ;;  %v6029_v54 = vpop.f32.mrf.mxu1 }
 0x1e4   :  { %v5974_v32 = vpop.f32.mrf.mxu0 }
 0x1e5   :  { %9055 = vst [vmem:[#allocation5_spill] sm:$0xff] %v8116_v55  ;;  %v5975_v36 = vadd.f32 %v5974_v32, %v5973_v28  ;;  %v6031_v59 = vpop.f32.mrf.mxu1 }
 0x1e6   :  { %v5976_v52 = vpop.f32.mrf.mxu0 }
 0x1e7   :  { %v8121_v43 = vadd.f32 %v5975_v36, %v8026_v1  ;;  %v6032_v3 = vpop.f32.mrf.mxu1 }
 0x1e8   :  { %v5977_v15 = vpop.f32.mrf.mxu0 }
 0x1e9   :  { %9056 = vst [vmem:[#allocation6_spill] sm:$0xff] %v8121_v43  ;;  %v5978_v40 = vadd.f32 %v5977_v15, %v5976_v52 }
 0x1ea   :  { %v2515_v48 = vpop.f32.mrf.mxu0 }
 0x1eb   :  { %v8124_v49 = vadd.f32 %v5978_v40, %v8029_v58  ;;  %v8127_v10 = vadd.f32 %v2515_v48, %v8032_v24  ;;  %v6034_v24 = vpop.f32.mrf.mxu1 }
 0x1ec   :  { %v6234_v56 = vpop.f32.mrf.mxu0 }
 0x1ee   :  { %v2518_v41 = vpop.f32.mrf.mxu0 }
 0x1ef   :  { %v8130_v38 = vadd.f32 %v2518_v41, %v8035_v21  ;;  %v6035_v21 = vpop.f32.mrf.mxu1 }
 0x1f0   :  { %v6235_v61 = vpop.f32.mrf.mxu0 }
 0x1f1   :  { %v6037_v11 = vpop.f32.mrf.mxu1 }
 0x1f2   :  { %v2523_v1 = vpop.f32.mrf.mxu0 }
 0x1f3   :  { %v8133_v35 = vadd.f32 %v2523_v1, %v8038_v45  ;;  %v6038_v30 = vpop.f32.mrf.mxu1 }
 0x1f4   :  { %v6238_v5 = vpop.f32.mrf.mxu0  ;;  %v6039_v51 = vadd.f32 %v6038_v30, %v6037_v11 }
 0x1f6   :  { %v2526_v8 = vpop.f32.mrf.mxu0 }
 0x1f7   :  { %v8136_v58 = vadd.f32 %v2526_v8, %v8041_v57  ;;  %v6040_v57 = vpop.f32.mrf.mxu1 }
 0x1f8   :  { %v6239_v12 = vpop.f32.mrf.mxu0 }
 0x1f9   :  { %v6041_v15 = vpop.f32.mrf.mxu1 }
 0x1fa   :  { %v2531_v9 = vpop.f32.mrf.mxu0  ;;  %v6042_v63 = vadd.f32 %v6041_v15, %v6040_v57 }
 0x1fb   :  { %v8139_v0 = vadd.f32 %v2531_v9, %v8044_v50  ;;  %v8149_v48 = vpop.f32.mrf.mxu1 }
 0x1fc   :  { %v6242_v14 = vpop.f32.mrf.mxu0  ;;  %9057 = vst [vmem:[#allocation7_spill] sm:$0xff] %v8149_v48  ;;  %v2451_v48 = vadd.f32 %v6039_v51, %v8087_v47 }
 0x1fd   :  { %v8151_v61 = vpop.f32.mrf.mxu1 }
 0x1fe   :  { %v8141_v4 = vpop.f32.mrf.mxu0  ;;  %9058 = vst [vmem:[#allocation8_spill] sm:$0xff] %v8151_v61 }
 0x1ff   :  { %v8153_v8 = vpop.f32.mrf.mxu1 }
 0x200   :  { %v6243_v27 = vpop.f32.mrf.mxu0  ;;  %9059 = vst [vmem:[#allocation9_spill] sm:$0xff] %v8153_v8  ;;  %v6030_v8 = vadd.f32 %v6029_v54, %v6028_v44 }
 0x201   :  { %v8155_v14 = vpop.f32.mrf.mxu1 }
 0x202   :  { %v8143_v45 = vpop.f32.mrf.mxu0  ;;  %9060 = vst [vmem:[#allocation10_spill] sm:$0xff] %v8155_v14 }
 0x204   :  { %v6246_v28 = vpop.f32.mrf.mxu0 }
 0x206   :  { %v8145_v32 = vpop.f32.mrf.mxu0 }
 0x208   :  { %v6247_v36 = vpop.f32.mrf.mxu0 }
 0x209   :  { %v8157_v36 = vpop.f32.mrf.mxu1 }
 0x20a   :  { %v8147_v52 = vpop.f32.mrf.mxu0 }
 0x20b   :  { %v8159_v25 = vpop.f32.mrf.mxu1 }
 0x20c   :  { %v6250_v40 = vpop.f32.mrf.mxu0 }
 0x20d   :  { %v8168_v11 = vpop.f32.mrf.mxu1 }
 0x20e   :  { %v2550_v50 = vpop.f32.mrf.mxu0 }
 0x210   :  { %v6251_v56 = vpop.f32.mrf.mxu0 }
 0x211   :  { %v6036_v56 = vadd.f32 %v6035_v21, %v6034_v24  ;;  %v6027_v24 = vadd.f32 %v8118_v23, %v8113_v20  ;;  %v9061_v20 = vmov 0  }
 0x212   :  { %v2555_v41 = vpop.f32.mrf.mxu0 }
 0x213   :  { %v2435_v23 = vadd.f32 %v6027_v24, %v8067_v33  ;;  %v6015_v33 = vadd.f32 %v8074_v42, %v8069_v16  ;;  %v2602_v24 = vpack.c.bf16 %v8130_v38, %v8127_v10 }
 0x214   :  { %v6254_v1 = vpop.f32.mrf.mxu0 }
 0x215   :  { %v6033_v1 = vadd.f32 %v6032_v3, %v6031_v59  ;;  %v8197_v21 = vadd.f32 %v2555_v41, %v2435_v23  ;;  %v9065_v23 = vld [vmem:[#allocation5_spill] sm:$0xff] }
 0x216   :  { %v2558_v5 = vpop.f32.mrf.mxu0 }
 0x217   :  { %v2443_v59 = vadd.f32 %v6033_v1, %v8077_v26  ;;  %v6021_v26 = vadd.f32 %v8094_v2, %v8089_v46  ;;  %v2603_v1 = vpack.c.bf16 %v8136_v58, %v8133_v35 }
 0x218   :  { %v6255_v12 = vpop.f32.mrf.mxu0 }
 0x219   :  { %v2454_v12 = vadd.f32 %v6042_v63, %v8092_v34  ;;  %v2438_v34 = vadd.f32 %v6030_v8, %v8072_v37  ;;  %v6018_v37 = vadd.f32 %v8084_v53, %v8079_v29  ;;  %v2427_v46 = vadd.f32 %v6021_v26, %v8057_v7 }
 0x21a   :  { %v2563_v9 = vpop.f32.mrf.mxu0  ;;  %v2419_v7 = vadd.f32 %v6015_v33, %v8051_v62 }
 0x21b   :  { %v8182_v63 = vadd.f32 %v2563_v9, %v2443_v59  ;;  %v8188_v44 = vadd.f32 %v2558_v5, %v2438_v34  ;;  %v2422_v53 = vadd.f32 %v6018_v37, %v8054_v13  ;;  %v8211_v41 = vadd.f32 %v8147_v52, %v2427_v46  ;;  %v9062_v59 = vld [vmem:[#allocation6_spill] sm:$0xff]  ;;  %v9063_v34 = vld [vmem:[#allocation9_spill] sm:$0xff] }
 0x21c   :  { %v6258_v27 = vpop.f32.mrf.mxu0  ;;  %v8222_v13 = vadd.f32 %v8143_v45, %v2419_v7  ;;  %v6861_v7 = vld [vmem:[%s9042_s3] ss:$8 sps:$4 sm:$0xff]  }
 0x21d   :  { %v2446_v27 = vadd.f32 %v6036_v56, %v8082_v39  ;;  %v6024_v39 = vadd.f32 %v8108_v19, %v8103_v6  ;;  %v8216_v16 = vadd.f32 %v8145_v32, %v2422_v53 }
 0x21e   :  { %v2566_v28 = vpop.f32.mrf.mxu0 }
 0x21f   :  { %v8173_v3 = vadd.f32 %v2566_v28, %v2446_v27  ;;  %v2430_v19 = vadd.f32 %v6024_v39, %v8062_v31  ;;  %v6012_v31 = vadd.f32 %v8064_v17, %v8059_v22  ;;  %v2605_v62 = vpack.c.bf16 %v8216_v16, %v8222_v13 }
 0x220   :  { %v6259_v40 = vpop.f32.mrf.mxu0 }
 0x221   :  { %v2608_v54 = vpack.c.bf16 %v8173_v3, %v8182_v63  ;;  %v8203_v2 = vadd.f32 %v2550_v50, %v2430_v19  ;;  %v2414_v22 = vadd.f32 %v6012_v31, %v8047_v60 }
 0x222   :  { %v2571_v18 = vpop.f32.mrf.mxu0 }
 0x223   :  { %v8164_v14 = vadd.f32 %v2571_v18, %v2451_v48  ;;  %v6053_v18 = vpop.f32.mrf.mxu1  ;;  %v2607_v48 = vpack.c.bf16 %v8188_v44, %v8197_v21  ;;  %v2606_v42 = vpack.c.bf16 %v8203_v2, %v8211_v41  ;;  %v8226_v8 = vadd.f32 %v8141_v4, %v2414_v22  ;;  %v6872_v22 = vld [vmem:[%s9042_s3 + $0x30] ss:$8 sps:$4 sm:$0xff]  }
 0x224   :  { %v6262_v61 = vpop.f32.mrf.mxu0 }
 0x225   :  { %v6055_v57 = vpop.f32.mrf.mxu1  ;;  %v2604_v60 = vpack.c.bf16 %v8226_v8, %v8139_v0 }
 0x226   :  { %v2574_v55 = vpop.f32.mrf.mxu0 }
 0x227   :  { %v8166_v43 = vadd.f32 %v2574_v55, %v2454_v12  ;;  %v6056_v61 = vpop.f32.mrf.mxu1  ;;  %v6054_v12 = vadd.f32 %v6053_v18, %v8168_v11 }
 0x228   :  { %v6263_v30 = vpop.f32.mrf.mxu0  ;;  %v6057_v4 = vadd.f32 %v6056_v61, %v6055_v57 }
 0x229   :  { %v2609_v51 = vpack.c.bf16 %v8166_v43, %v8164_v14  ;;  %v6058_v17 = vpop.f32.mrf.mxu1  ;;  %v6051_v30 = vadd.f32 %v8159_v25, %v8157_v36  ;;  %v2470_v11 = vadd.f32 %v6054_v12, %v9065_v23  ;;  %v9068_v36 = vld [vmem:[#allocation4_spill] sm:$0xff] }
 0x22a   :  { %v8177_v47 = vpop.f32.mrf.mxu0 }
 0x22b   :  { %2727 = vmatpush1.bf16.msra.mxu1 %v2609_v51  ;;  %v6059_v9 = vpop.f32.mrf.mxu1  ;;  %v2475_v51 = vadd.f32 %v6057_v4, %v9062_v59  ;;  %v2467_v37 = vadd.f32 %v6051_v30, %v9068_v36  ;;  %v6903_v59 = vld [vmem:[%s9044_s5 + $0x78] sm:$0xff]  }
 0x22c   :  { %v6266_v55 = vpop.f32.mrf.mxu0  ;;  %2728 = vmatprep.subr.bf16.mxu1 %v9061_v20  ;;  %v6060_v40 = vadd.f32 %v6059_v9, %v6058_v17  ;;  %v6873_v17 = vld [vmem:[%s9042_s3 + $0x44] ss:$8 sps:$4 sm:$0xff]   ;;  %6316 = vmatprep.subr.bf16.mxu0 %v6903_v59 }
 0x22d   :  { %v9064_v55 = vld [vmem:[#allocation10_spill] sm:$0xff]  ;;  %6317 = vmatpush3.bf16.msra.mxu0 %v6903_v59 }
 0x22e   :  { %v8192_v6 = vpop.f32.mrf.mxu0  ;;  %v2478_v27 = vadd.f32 %v6060_v40, %v8124_v49  ;;  %v6048_v26 = vadd.f32 %v9064_v55, %v9063_v34  ;;  %v9066_v49 = vld [vmem:[#allocation7_spill] sm:$0xff]  ;;  %v6885_v40 = vld [vmem:[%s9043_s4] sm:$0xff]  }
 0x22f   :  { %2729 = vmatpush1.bf16.msra.mxu1 %v2608_v54  ;;  %v9067_v54 = vld [vmem:[#allocation8_spill] sm:$0xff]  ;;  %v6879_v9 = vld [vmem:[%s9042_s3 + $0x64] ss:$8 sps:$4 sm:$0xff]  }
 0x230   :  { %v6267_v15 = vpop.f32.mrf.mxu0  ;;  %2730 = vmatprep.subr.bf16.mxu1 %v9061_v20  ;;  %v6045_v25 = vadd.f32 %v9067_v54, %v9066_v49  ;;  %v6905_v55 = vld [vmem:[%s9044_s5 + $0x68] sm:$0xff]  }
 0x231   :  { %v9069_v15 = vld [vmem:[#allocation3_spill] sm:$0xff] }
 0x232   :  { %v2587_v29 = vpop.f32.mrf.mxu0  ;;  %v2462_v33 = vadd.f32 %v6048_v26, %v9069_v15 }
 0x233   :  { %2731 = vmatpush1.bf16.msra.mxu1 %v2607_v48  ;;  %v8260_v46 = vadd.f32 %v2587_v29, %v2467_v37  ;;  %v9070_v48 = vld [vmem:[#allocation2_spill] sm:$0xff] }
 0x234   :  { %v6270_v5 = vpop.f32.mrf.mxu0  ;;  %2732 = vmatprep.subr.bf16.mxu1 %v9061_v20  ;;  %v2459_v31 = vadd.f32 %v6045_v25, %v9070_v48  ;;  %v8265_v53 = vadd.f32 %v8192_v6, %v2462_v33  ;;  %v6864_v6 = vld [vmem:[%s9042_s3 + $0x14] ss:$8 sps:$4 sm:$0xff]  }
 0x236   :  { %v2590_v50 = vpop.f32.mrf.mxu0  ;;  %v8270_v5 = vadd.f32 %v8177_v47, %v2459_v31  ;;  %v6866_v47 = vld [vmem:[%s9042_s3 + $0x10] ss:$8 sps:$4 sm:$0xff]  }
 0x237   :  { %2733 = vmatpush1.bf16.msra.mxu1 %v2606_v42  ;;  %v8255_v19 = vadd.f32 %v2590_v50, %v2470_v11  ;;  %v6869_v42 = vld [vmem:[%s9042_s3 + $0x20] ss:$8 sps:$4 sm:$0xff]   ;;  %v6870_v50 = vld [vmem:[%s9042_s3 + $0x34] ss:$8 sps:$4 sm:$0xff]  }
 0x238   :  { %v6271_v52 = vpop.f32.mrf.mxu0  ;;  %2734 = vmatprep.subr.bf16.mxu1 %v9061_v20  ;;  %v2610_v29 = vpack.c.bf16 %v8265_v53, %v8270_v5  ;;  %v6906_v11 = vld [vmem:[%s9044_s5 + $0x60] sm:$0xff]  }
 0x239   :  { %v2611_v61 = vpack.c.bf16 %v8255_v19, %v8260_v46  ;;  %v6875_v52 = vld [vmem:[%s9042_s3 + $0x40] ss:$8 sps:$4 sm:$0xff]  }
 0x23a   :  { %v2595_v32 = vpop.f32.mrf.mxu0 }
 0x23b   :  { %2735 = vmatpush1.bf16.msra.mxu1 %v2605_v62  ;;  %v8249_v18 = vadd.f32 %v2595_v32, %v2475_v51  ;;  %v6876_v62 = vld [vmem:[%s9042_s3 + $0x54] ss:$8 sps:$4 sm:$0xff]   ;;  %v6878_v32 = vld [vmem:[%s9042_s3 + $0x50] ss:$8 sps:$4 sm:$0xff]  }
 0x23c   :  { %v6274_v28 = vpop.f32.mrf.mxu0  ;;  %2736 = vmatprep.subr.bf16.mxu1 %v9061_v20  ;;  %v6904_v51 = vld [vmem:[%s9044_s5 + $0x70] sm:$0xff]  }
 0x23d   :  { %v6881_v28 = vld [vmem:[%s9042_s3 + $0x60] ss:$8 sps:$4 sm:$0xff]   ;;  %6318 = vmatprep.subr.bf16.mxu0 %v6904_v51 }
 0x23e   :  { %v2598_v45 = vpop.f32.mrf.mxu0  ;;  %6319 = vmatpush3.bf16.msra.mxu0 %v6904_v51 }
 0x23f   :  { %2737 = vmatpush1.bf16.msra.mxu1 %v2604_v60  ;;  %v8244_v39 = vadd.f32 %v2598_v45, %v2478_v27  ;;  %v6882_v60 = vld [vmem:[%s9042_s3 + $0x74] ss:$8 sps:$4 sm:$0xff]   ;;  %v6884_v45 = vld [vmem:[%s9042_s3 + $0x70] ss:$8 sps:$4 sm:$0xff]   ;;  %6320 = vmatprep.subr.bf16.mxu0 %v6905_v55 }
 0x240   :  { %v6275_v56 = vpop.f32.mrf.mxu0  ;;  %2738 = vmatprep.subr.bf16.mxu1 %v9061_v20 }
 0x241   :  { %v2612_v57 = vpack.c.bf16 %v8244_v39, %v8249_v18 }
 0x242   :  { %6321 = vmatpush3.bf16.msra.mxu0 %v6905_v55 }
 0x243   :  { %2739 = vmatpush1.bf16.msra.mxu1 %v2603_v1  ;;  %6322 = vmatprep.subr.bf16.mxu0 %v6906_v11 }
 0x244   :  { %2740 = vmatprep.subr.bf16.mxu1 %v9061_v20 }
 0x246   :  { %6323 = vmatpush3.bf16.msra.mxu0 %v6906_v11  ;;  %v6891_v11 = vld [vmem:[%s9043_s4 + $0x30] sm:$0xff]  }
 0x247   :  { %2741 = vmatpush1.bf16.msra.mxu1 %v2602_v24 }
 0x248   :  { %2752 = vmatprep.subr.bf16.mxu1 %v9061_v20 }
 0x24b   :  { %2753 = vmatpush2.bf16.msra.mxu1 %v2612_v57 }
 0x24c   :  { %2754 = vmatprep.subr.bf16.mxu1 %v9061_v20 }
 0x24f   :  { %2755 = vmatpush2.bf16.msra.mxu1 %v2611_v61 }
 0x250   :  { %2756 = vmatprep.subr.bf16.mxu1 %v9061_v20  ;;  %v6867_v20 = vld [vmem:[%s9042_s3 + $0x24] ss:$8 sps:$4 sm:$0xff]  }
 0x253   :  { %2757 = vmatpush2.bf16.msra.mxu1 %v2610_v29 }
 0x256   :  { %2759 = vmatmul.mubr.bf16.vlgmr.msra.gmra.mxu1 %v6861_v7 }
 0x257   :  { %5302 = vmatprep.mubr.msk.bf16.mxu1 %vm2701_vm1, %v6864_v6 }
 0x25e   :  { %2767 = vmatmul.mubr.bf16.gmra.mxu1 %v6866_v47 }
 0x25f   :  { %5303 = vmatprep.mubr.msk.bf16.mxu1 %vm2701_vm1, %v6867_v20 }
 0x266   :  { %2775 = vmatmul.mubr.bf16.gmra.mxu1 %v6869_v42 }
 0x267   :  { %5304 = vmatprep.mubr.msk.bf16.mxu1 %vm2701_vm1, %v6870_v50 }
 0x26e   :  { %2783 = vmatmul.mubr.bf16.gmra.mxu1 %v6872_v22 }
 0x26f   :  { %5305 = vmatprep.mubr.msk.bf16.mxu1 %vm2701_vm1, %v6873_v17 }
 0x276   :  { %2791 = vmatmul.mubr.bf16.gmra.mxu1 %v6875_v52 }
 0x277   :  { %5306 = vmatprep.mubr.msk.bf16.mxu1 %vm2701_vm1, %v6876_v62 }
 0x27e   :  { %2799 = vmatmul.mubr.bf16.gmra.mxu1 %v6878_v32 }
 0x27f   :  { %5307 = vmatprep.mubr.msk.bf16.mxu1 %vm2701_vm1, %v6879_v9 }
 0x286   :  { %2807 = vmatmul.mubr.bf16.gmra.mxu1 %v6881_v28 }
 0x287   :  { %5308 = vmatprep.mubr.msk.bf16.mxu1 %vm2701_vm1, %v6882_v60 }
 0x28e   :  { %2815 = vmatmul.mubr.bf16.gmra.mxu1 %v6884_v45 }
 0x28f   :  { %6280 = vmatprep.mubr.msk.bf16.mxu1 %vm2963_vm2, %v6885_v40 }
 0x316   :  { %v2760_v56 = vpop.f32.mrf.mxu1 }
 0x318   :  { %v2762_v4 = vpop.f32.mrf.mxu1 }
 0x31a   :  { %v2763_v1 = vpop.f32.mrf.mxu1 }
 0x31c   :  { %v2765_v12 = vpop.f32.mrf.mxu1 }
 0x31e   :  { %v2768_v27 = vpop.f32.mrf.mxu1 }
 0x320   :  { %v2770_v30 = vpop.f32.mrf.mxu1 }
 0x322   :  { %v2771_v24 = vpop.f32.mrf.mxu1 }
 0x324   :  { %v2773_v34 = vpop.f32.mrf.mxu1 }
 0x326   :  { %v2776_v26 = vpop.f32.mrf.mxu1 }
 0x327   :  { %v2823_v12 = vmax.f32 %v2760_v56, %v2776_v26  ;;  %v6888_v56 = vld [vmem:[%s9043_s4 + $0x18] sm:$0xff]   ;;  %v6890_v26 = vld [vmem:[%s9043_s4 + $0x28] sm:$0xff]  }
 0x328   :  { %v2778_v23 = vpop.f32.mrf.mxu1 }
 0x32a   :  { %v2779_v49 = vpop.f32.mrf.mxu1 }
 0x32b   :  { %v2824_v32 = vmax.f32 %v2763_v1, %v2779_v49  ;;  %v6886_v1 = vld [vmem:[%s9043_s4 + $0x8] sm:$0xff]   ;;  %v6892_v49 = vld [vmem:[%s9043_s4 + $0x38] sm:$0xff]  }
 0x32c   :  { %v2781_v54 = vpop.f32.mrf.mxu1 }
 0x32d   :  { %v6893_v54 = vld [vmem:[%s9043_s4 + $0x40] sm:$0xff]  }
 0x32e   :  { %v2784_v25 = vpop.f32.mrf.mxu1 }
 0x32f   :  { %v2825_v28 = vmax.f32 %v2768_v27, %v2784_v25  ;;  %v6887_v27 = vld [vmem:[%s9043_s4 + $0x10] sm:$0xff]   ;;  %v6894_v25 = vld [vmem:[%s9043_s4 + $0x48] sm:$0xff]  }
 0x330   :  { %v2786_v36 = vpop.f32.mrf.mxu1 }
 0x331   :  { %v6895_v36 = vld [vmem:[%s9043_s4 + $0x50] sm:$0xff]  }
 0x332   :  { %v2787_v37 = vpop.f32.mrf.mxu1 }
 0x333   :  { %v2826_v60 = vmax.f32 %v2771_v24, %v2787_v37  ;;  %v6889_v24 = vld [vmem:[%s9043_s4 + $0x20] sm:$0xff]   ;;  %v6896_v37 = vld [vmem:[%s9043_s4 + $0x58] sm:$0xff]  }
 0x334   :  { %v2789_v57 = vpop.f32.mrf.mxu1 }
 0x335   :  { %v6897_v57 = vld [vmem:[%s9043_s4 + $0x60] sm:$0xff]  }
 0x336   :  { %v2792_v15 = vpop.f32.mrf.mxu1 }
 0x338   :  { %v2794_v33 = vpop.f32.mrf.mxu1 }
 0x339   :  { %v6899_v33 = vld [vmem:[%s9043_s4 + $0x70] sm:$0xff]  }
 0x33a   :  { %v2795_v48 = vpop.f32.mrf.mxu1 }
 0x33c   :  { %v2797_v31 = vpop.f32.mrf.mxu1 }
 0x33d   :  { %v6901_v31 = vld [vmem:[%s9043_s4 + $0x80] sm:$0xff]  }
 0x33e   :  { %v2800_v61 = vpop.f32.mrf.mxu1 }
 0x340   :  { %v2802_v29 = vpop.f32.mrf.mxu1 }
 0x341   :  { %v6907_v29 = vld [vmem:[%s9044_s5 + $0x58] sm:$0xff]  }
 0x342   :  { %v2803_v7 = vpop.f32.mrf.mxu1  ;;  %6324 = vmatprep.subr.bf16.mxu0 %v6907_v29 }
 0x343   :  { %6325 = vmatpush3.bf16.msra.mxu0 %v6907_v29  ;;  %v6934_v29 = vld [vmem:[%s9044_s5 + $0x120] sm:$0xff]  }
 0x344   :  { %v2805_v6 = vpop.f32.mrf.mxu1 }
 0x345   :  { %v6912_v6 = vld [vmem:[%s9044_s5 + $0xb8] sm:$0xff]  }
 0x346   :  { %v2808_v47 = vpop.f32.mrf.mxu1 }
 0x347   :  { %v2827_v45 = vmax.f32 %v2792_v15, %v2808_v47  ;;  %v6898_v15 = vld [vmem:[%s9043_s4 + $0x68] sm:$0xff]  }
 0x348   :  { %v2810_v20 = vpop.f32.mrf.mxu1  ;;  %v6909_v47 = vld [vmem:[%s9044_s5 + $0x48] sm:$0xff]  }
 0x349   :  { %v2831_v34 = vmax.f32 %v2823_v12, %v2827_v45  ;;  %v6914_v20 = vld [vmem:[%s9044_s5 + $0xb0] sm:$0xff]  }
 0x34a   :  { %v2811_v42 = vpop.f32.mrf.mxu1 }
 0x34b   :  { %v2828_v52 = vmax.f32 %v2795_v48, %v2811_v42  ;;  %v6900_v48 = vld [vmem:[%s9043_s4 + $0x78] sm:$0xff]   ;;  %v6910_v42 = vld [vmem:[%s9044_s5 + $0x40] sm:$0xff]  }
 0x34c   :  { %v2813_v50 = vpop.f32.mrf.mxu1 }
 0x34d   :  { %v2832_v30 = vmax.f32 %v2824_v32, %v2828_v52  ;;  %v6916_v50 = vld [vmem:[%s9044_s5 + $0xa8] sm:$0xff]   ;;  %v6920_v52 = vld [vmem:[%s9044_s5 + $0x98] sm:$0xff]  }
 0x34e   :  { %v2816_v22 = vpop.f32.mrf.mxu1  ;;  %v6924_v32 = vld [vmem:[%s9044_s5 + $0x88] sm:$0xff]  }
 0x34f   :  { %v2829_v62 = vmax.f32 %v2800_v61, %v2816_v22  ;;  %v2835_v23 = vpack.c.bf16 %v2832_v30, %v2831_v34  ;;  %v6902_v61 = vld [vmem:[%s9043_s4 + $0x88] sm:$0xff]   ;;  %v6911_v22 = vld [vmem:[%s9044_s5 + $0x38] sm:$0xff]  }
 0x350   :  { %v2818_v17 = vpop.f32.mrf.mxu1 }
 0x351   :  { %v2833_v59 = vmax.f32 %v2825_v28, %v2829_v62  ;;  %v6918_v17 = vld [vmem:[%s9044_s5 + $0xa0] sm:$0xff]   ;;  %v6922_v62 = vld [vmem:[%s9044_s5 + $0x90] sm:$0xff]   ;;  %v6928_v28 = vld [vmem:[%s9044_s5 + $0x138] sm:$0xff]  }
 0x352   :  { %v2819_v9 = vpop.f32.mrf.mxu1 }
 0x353   :  { %v2830_v40 = vmax.f32 %v2803_v7, %v2819_v9  ;;  %v6908_v7 = vld [vmem:[%s9044_s5 + $0x50] sm:$0xff]   ;;  %v6926_v9 = vld [vmem:[%s9044_s5 + $0x80] sm:$0xff]  }
 0x354   :  { %v2821_v4 = vpop.f32.mrf.mxu1  ;;  %6326 = vmatprep.subr.bf16.mxu0 %v6908_v7 }
 0x355   :  { %v2834_v51 = vmax.f32 %v2826_v60, %v2830_v40  ;;  %6327 = vmatpush3.bf16.msra.mxu0 %v6908_v7 }
 0x356   :  { %6328 = vmatprep.subr.bf16.mxu0 %v6909_v47 }
 0x357   :  { %v2836_v55 = vpack.c.bf16 %v2834_v51, %v2833_v59 }
 0x359   :  { %6276 = vmatprep.subr.bf16.mxu1 %v2836_v55  ;;  %6329 = vmatpush3.bf16.msra.mxu0 %v6909_v47  ;;  %v6923_v47 = vld [vmem:[%s9044_s5 + $0x8] sm:$0xff]  }
 0x35a   :  { %6277 = vmatpush3.bf16.msra.mxu1 %v2836_v55  ;;  %6330 = vmatprep.subr.bf16.mxu0 %v6910_v42 }
 0x35b   :  { %6278 = vmatprep.subr.bf16.mxu1 %v2835_v23 }
 0x35d   :  { %6331 = vmatpush3.bf16.msra.mxu0 %v6910_v42 }
 0x35e   :  { %6279 = vmatpush3.bf16.msra.mxu1 %v2835_v23  ;;  %6336 = vmatprep.subr.bf16.mxu0 %v6911_v22  ;;  %v6913_v23 = vld [vmem:[%s9044_s5 + $0x30] sm:$0xff]  }
 0x35f   :  { %6356 = vmatprep.subr.bf16.mxu1 %v6912_v6 }
 0x361   :  { %6281 = vmatmul.mubr.msk.bf16.vlgmr.msra.gmra.mxu1 %vm2963_vm2, %v6886_v1 }
 0x362   :  { %6284 = vmatprep.mubr.msk.bf16.mxu1 %vm2963_vm2, %v6887_v27  ;;  %6357 = vmatpush3.bf16.msra.mxu1 %v6912_v6 }
 0x363   :  { %6358 = vmatprep.subr.bf16.mxu1 %v6914_v20 }
 0x366   :  { %6359 = vmatpush3.bf16.msra.mxu1 %v6914_v20  ;;  %v6936_v20 = vld [vmem:[%s9044_s5 + $0x118] sm:$0xff]  }
 0x367   :  { %6360 = vmatprep.subr.bf16.mxu1 %v6916_v50 }
 0x369   :  { %6285 = vmatmul.mubr.msk.bf16.gmra.mxu1 %vm2963_vm2, %v6888_v56 }
 0x36a   :  { %6288 = vmatprep.mubr.msk.bf16.mxu1 %vm2963_vm2, %v6889_v24  ;;  %6361 = vmatpush3.bf16.msra.mxu1 %v6916_v50  ;;  %v6915_v24 = vld [vmem:[%s9044_s5 + $0x28] sm:$0xff]  }
 0x36b   :  { %6362 = vmatprep.subr.bf16.mxu1 %v6918_v17 }
 0x36e   :  { %6363 = vmatpush3.bf16.msra.mxu1 %v6918_v17  ;;  %v6925_v17 = vld [vmem:[%s9044_s5] sm:$0xff]  }
 0x36f   :  { %6364 = vmatprep.subr.bf16.mxu1 %v6920_v52 }
 0x371   :  { %6289 = vmatmul.mubr.msk.bf16.gmra.mxu1 %vm2963_vm2, %v6890_v26 }
 0x372   :  { %6292 = vmatprep.mubr.msk.bf16.mxu1 %vm2963_vm2, %v6891_v11  ;;  %6365 = vmatpush3.bf16.msra.mxu1 %v6920_v52  ;;  %v6938_v52 = vld [vmem:[%s9044_s5 + $0x110] sm:$0xff]  }
 0x373   :  { %6366 = vmatprep.subr.bf16.mxu1 %v6922_v62 }
 0x376   :  { %6367 = vmatpush3.bf16.msra.mxu1 %v6922_v62 }
 0x377   :  { %6368 = vmatprep.subr.bf16.mxu1 %v6924_v32 }
 0x379   :  { %6293 = vmatmul.mubr.msk.bf16.gmra.mxu1 %vm2963_vm2, %v6892_v49 }
 0x37a   :  { %6296 = vmatprep.mubr.msk.bf16.mxu1 %vm2963_vm2, %v6893_v54  ;;  %6369 = vmatpush3.bf16.msra.mxu1 %v6924_v32 }
 0x37b   :  { %6370 = vmatprep.subr.bf16.mxu1 %v6926_v9 }
 0x37e   :  { %6371 = vmatpush3.bf16.msra.mxu1 %v6926_v9  ;;  %v6927_v9 = vld [vmem:[%s9044_s5 + $0xf8] sm:$0xff]  }
 0x37f   :  { %6396 = vmatprep.subr.bf16.mxu1 %v6928_v28 }
 0x381   :  { %6297 = vmatmul.mubr.msk.bf16.gmra.mxu1 %vm2963_vm2, %v6894_v25  ;;  %v6917_v25 = vld [vmem:[%s9044_s5 + $0x20] sm:$0xff]  }
 0x382   :  { %6300 = vmatprep.mubr.msk.bf16.mxu1 %vm2963_vm2, %v6895_v36  ;;  %v6930_v36 = vld [vmem:[%s9044_s5 + $0x130] sm:$0xff]  }
 0x389   :  { %6301 = vmatmul.mubr.msk.bf16.gmra.mxu1 %vm2963_vm2, %v6896_v37 }
 0x38a   :  { %6304 = vmatprep.mubr.msk.bf16.mxu1 %vm2963_vm2, %v6897_v57 }
 0x391   :  { %6305 = vmatmul.mubr.msk.bf16.gmra.mxu1 %vm2963_vm2, %v6898_v15  ;;  %v6919_v15 = vld [vmem:[%s9044_s5 + $0x18] sm:$0xff]  }
 0x392   :  { %6308 = vmatprep.mubr.msk.bf16.mxu1 %vm2963_vm2, %v6899_v33  ;;  %v6932_v33 = vld [vmem:[%s9044_s5 + $0x128] sm:$0xff]  }
 0x399   :  { %6309 = vmatmul.mubr.msk.bf16.gmra.mxu1 %vm2963_vm2, %v6900_v48 }
 0x39a   :  { %6312 = vmatprep.mubr.msk.bf16.mxu1 %vm2963_vm2, %v6901_v31 }
 0x3a1   :  { %6313 = vmatmul.mubr.msk.bf16.gmra.mxu1 %vm2963_vm2, %v6902_v61  ;;  %v6921_v61 = vld [vmem:[%s9044_s5 + $0x10] sm:$0xff]  }
 0x421   :  { %v8453_v60 = vpop.f32.mrf.mxu1 }
 0x423   :  { %v3052_v45 = vpop.f32.mrf.mxu1 }
 0x425   :  { %v8455_v40 = vpop.f32.mrf.mxu1 }
 0x427   :  { %v3055_v4 = vpop.f32.mrf.mxu1 }
 0x428   :  { %v3195_v27 = vpack.c.bf16 %v3055_v4, %v3052_v45 }
 0x429   :  { %v6286_v12 = vpop.f32.mrf.mxu1 }
 0x42b   :  { %v3068_v30 = vpop.f32.mrf.mxu1 }
 0x42d   :  { %v6287_v59 = vpop.f32.mrf.mxu1 }
 0x42e   :  { %v3198_v55 = vpack.c.bf16 %v6287_v59, %v6286_v12  ;;  %v3196_v12 = vpack.c.bf16 %v8455_v40, %v8453_v60  ;;  %v6942_v59 = vld [vmem:[%s9044_s5 + $0x100] sm:$0xff]   ;;  %v6931_v60 = vld [vmem:[%s9044_s5 + $0xe8] sm:$0xff]   ;;  %v6944_v40 = vld [vmem:[%s9044_s5 + $0x1b8] sm:$0xff]  }
 0x42f   :  { %v3071_v51 = vpop.f32.mrf.mxu1 }
 0x430   :  { %v3197_v34 = vpack.c.bf16 %v3071_v51, %v3068_v30  ;;  %v6929_v30 = vld [vmem:[%s9044_s5 + $0xf0] sm:$0xff]  }
 0x431   :  { %v6290_v1 = vpop.f32.mrf.mxu1 }
 0x432   :  { %6332 = vmatprep.mubr.bf16.mxu0 %v3197_v34 }
 0x433   :  { %6333 = vmatmul.mubr.bf16.vlgmr.msra.gmra.mxu0 %v3198_v55  ;;  %v3084_v56 = vpop.f32.mrf.mxu1 }
 0x434   :  { %6337 = vmatpush3.bf16.msra.mxu0 %v6911_v22  ;;  %6352 = vmatprep.mubr.bf16.mxu0 %v3195_v27 }
 0x435   :  { %6338 = vmatprep.subr.bf16.mxu0 %v6913_v23  ;;  %v6291_v26 = vpop.f32.mrf.mxu1 }
 0x436   :  { %v3200_v11 = vpack.c.bf16 %v6291_v26, %v6290_v1 }
 0x437   :  { %v3087_v49 = vpop.f32.mrf.mxu1 }
 0x438   :  { %6339 = vmatpush3.bf16.msra.mxu0 %v6913_v23  ;;  %v3199_v54 = vpack.c.bf16 %v3087_v49, %v3084_v56  ;;  %v6933_v56 = vld [vmem:[%s9044_s5 + $0xe0] sm:$0xff]   ;;  %v6935_v49 = vld [vmem:[%s9044_s5 + $0xd8] sm:$0xff]  }
 0x439   :  { %6340 = vmatprep.subr.bf16.mxu0 %v6915_v24  ;;  %v8469_v37 = vpop.f32.mrf.mxu1 }
 0x43a   :  { %6372 = vmatprep.mubr.bf16.mxu1 %v3199_v54  ;;  %v6948_v54 = vld [vmem:[%s9044_s5 + $0x1a8] sm:$0xff]  }
 0x43b   :  { %6373 = vmatmul.mubr.bf16.vlgmr.msra.gmra.mxu1 %v3200_v11  ;;  %v3100_v57 = vpop.f32.mrf.mxu1 }
 0x43c   :  { %6341 = vmatpush3.bf16.msra.mxu0 %v6915_v24  ;;  %6397 = vmatpush3.bf16.msra.mxu1 %v6928_v28  ;;  %v6940_v28 = vld [vmem:[%s9044_s5 + $0x108] sm:$0xff]   ;;  %v6946_v24 = vld [vmem:[%s9044_s5 + $0x1b0] sm:$0xff]  }
 0x43d   :  { %6342 = vmatprep.subr.bf16.mxu0 %v6917_v25  ;;  %6398 = vmatprep.subr.bf16.mxu1 %v6930_v36  ;;  %v8477_v48 = vpop.f32.mrf.mxu1 }
 0x43f   :  { %v3103_v31 = vpop.f32.mrf.mxu1 }
 0x440   :  { %6343 = vmatpush3.bf16.msra.mxu0 %v6917_v25  ;;  %6399 = vmatpush3.bf16.msra.mxu1 %v6930_v36  ;;  %v3201_v34 = vpack.c.bf16 %v3103_v31, %v3100_v57  ;;  %v6937_v36 = vld [vmem:[%s9044_s5 + $0xd0] sm:$0xff]   ;;  %v6950_v57 = vld [vmem:[%s9044_s5 + $0x1a0] sm:$0xff]   ;;  %v6952_v31 = vld [vmem:[%s9044_s5 + $0x198] sm:$0xff]  }
 0x441   :  { %6344 = vmatprep.subr.bf16.mxu0 %v6919_v15  ;;  %6400 = vmatprep.subr.bf16.mxu1 %v6932_v33  ;;  %v6298_v7 = vpop.f32.mrf.mxu1 }
 0x443   :  { %v3116_v6 = vpop.f32.mrf.mxu1 }
 0x444   :  { %6345 = vmatpush3.bf16.msra.mxu0 %v6919_v15  ;;  %6401 = vmatpush3.bf16.msra.mxu1 %v6932_v33  ;;  %v6939_v33 = vld [vmem:[%s9044_s5 + $0xc8] sm:$0xff]  }
 0x445   :  { %6346 = vmatprep.subr.bf16.mxu0 %v6921_v61  ;;  %6402 = vmatprep.subr.bf16.mxu1 %v6934_v29  ;;  %v6299_v42 = vpop.f32.mrf.mxu1 }
 0x446   :  { %v3204_v1 = vpack.c.bf16 %v6299_v42, %v6298_v7  ;;  %v6954_v7 = vld [vmem:[%s9044_s5 + $0x190] sm:$0xff]  }
 0x447   :  { %v3119_v50 = vpop.f32.mrf.mxu1 }
 0x448   :  { %6347 = vmatpush3.bf16.msra.mxu0 %v6921_v61  ;;  %6403 = vmatpush3.bf16.msra.mxu1 %v6934_v29  ;;  %v3203_v22 = vpack.c.bf16 %v3119_v50, %v3116_v6  ;;  %v6941_v29 = vld [vmem:[%s9044_s5 + $0xc0] sm:$0xff]   ;;  %v3202_v50 = vpack.c.bf16 %v8477_v48, %v8469_v37  ;;  %v6947_v37 = vld [vmem:[%s9044_s5 + $0x168] sm:$0xff]   ;;  %v6960_v48 = vld [vmem:[%s9044_s5 + $0x238] sm:$0xff]  }
 0x449   :  { %6348 = vmatprep.subr.bf16.mxu0 %v6923_v47  ;;  %6404 = vmatprep.subr.bf16.mxu1 %v6936_v20  ;;  %v8497_v62 = vpop.f32.mrf.mxu1 }
 0x44a   :  { %6412 = vmatprep.mubr.bf16.mxu1 %v3203_v22  ;;  %v6945_v22 = vld [vmem:[%s9044_s5 + $0x170] sm:$0xff]  }
 0x44b   :  { %v8499_v32 = vpop.f32.mrf.mxu1 }
 0x44c   :  { %6349 = vmatpush3.bf16.msra.mxu0 %v6923_v47  ;;  %6405 = vmatpush3.bf16.msra.mxu1 %v6936_v20  ;;  %v6943_v47 = vld [vmem:[%s9044_s5 + $0x178] sm:$0xff]   ;;  %v6956_v20 = vld [vmem:[%s9044_s5 + $0x188] sm:$0xff]  }
 0x44d   :  { %6350 = vmatprep.subr.bf16.mxu0 %v6925_v17  ;;  %6406 = vmatprep.subr.bf16.mxu1 %v6938_v52  ;;  %v8507_v45 = vpop.f32.mrf.mxu1 }
 0x44f   :  { %v8509_v4 = vpop.f32.mrf.mxu1 }
 0x450   :  { %6351 = vmatpush3.bf16.msra.mxu0 %v6925_v17  ;;  %6407 = vmatpush3.bf16.msra.mxu1 %v6938_v52  ;;  %v6958_v17 = vld [vmem:[%s9044_s5 + $0x180] sm:$0xff]   ;;  %v3205_v52 = vpack.c.bf16 %v8509_v4, %v8499_v32 }
 0x451   :  { %6376 = vmatprep.subr.bf16.mxu0 %v6927_v9  ;;  %6408 = vmatprep.subr.bf16.mxu1 %v6940_v28  ;;  %v8519_v51 = vpop.f32.mrf.mxu1  ;;  %v6949_v4 = vld [vmem:[%s9044_s5 + $0x160] sm:$0xff]  }
 0x453   :  { %6353 = vmatmul.mubr.bf16.vlgmr.msra.gmra.mxu0 %v3196_v12  ;;  %v3148_v55 = vpop.f32.mrf.mxu1  ;;  %v6962_v12 = vld [vmem:[%s9044_s5 + $0x230] sm:$0xff]  }
 0x454   :  { %6377 = vmatpush3.bf16.msra.mxu0 %v6927_v9  ;;  %6409 = vmatpush3.bf16.msra.mxu1 %v6940_v28 }
 0x455   :  { %6378 = vmatprep.subr.bf16.mxu0 %v6929_v30  ;;  %6410 = vmatprep.subr.bf16.mxu1 %v6942_v59  ;;  %v8527_v23 = vpop.f32.mrf.mxu1 }
 0x456   :  { %6392 = vmatprep.mubr.bf16.mxu0 %v3201_v34  ;;  %v3208_v28 = vpack.c.bf16 %v8527_v23, %v8519_v51  ;;  %v6964_v51 = vld [vmem:[%s9044_s5 + $0x228] sm:$0xff]   ;;  %v6953_v34 = vld [vmem:[%s9044_s5 + $0x150] sm:$0xff]   ;;  %v6957_v23 = vld [vmem:[%s9044_s5 + $0x140] sm:$0xff]  }
 0x457   :  { %v3151_v27 = vpop.f32.mrf.mxu1 }
 0x458   :  { %6379 = vmatpush3.bf16.msra.mxu0 %v6929_v30  ;;  %6411 = vmatpush3.bf16.msra.mxu1 %v6942_v59  ;;  %v3207_v26 = vpack.c.bf16 %v3151_v27, %v3148_v55  ;;  %v6951_v59 = vld [vmem:[%s9044_s5 + $0x158] sm:$0xff]   ;;  %v6966_v55 = vld [vmem:[%s9044_s5 + $0x220] sm:$0xff]  }
 0x459   :  { %6380 = vmatprep.subr.bf16.mxu0 %v6931_v60  ;;  %6436 = vmatprep.subr.bf16.mxu1 %v6944_v40  ;;  %v8535_v11 = vpop.f32.mrf.mxu1  ;;  %v6959_v27 = vld [vmem:[%s9044_s5 + $0x1f8] sm:$0xff]  }
 0x45b   :  { %6413 = vmatmul.mubr.bf16.vlgmr.msra.gmra.mxu1 %v3204_v1  ;;  %v8543_v25 = vpop.f32.mrf.mxu1  ;;  %v6970_v1 = vld [vmem:[%s9044_s5 + $0x210] sm:$0xff]  }
 0x45c   :  { %6381 = vmatpush3.bf16.msra.mxu0 %v6931_v60  ;;  %6437 = vmatpush3.bf16.msra.mxu1 %v6944_v40  ;;  %v6955_v60 = vld [vmem:[%s9044_s5 + $0x148] sm:$0xff]   ;;  %v6968_v40 = vld [vmem:[%s9044_s5 + $0x218] sm:$0xff]  }
 0x45d   :  { %6382 = vmatprep.subr.bf16.mxu0 %v6933_v56  ;;  %6438 = vmatprep.subr.bf16.mxu1 %v6946_v24  ;;  %v8551_v15 = vpop.f32.mrf.mxu1 }
 0x45e   :  { %6452 = vmatprep.mubr.bf16.mxu1 %v3207_v26  ;;  %v6961_v26 = vld [vmem:[%s9044_s5 + $0x1f0] sm:$0xff]  }
 0x45f   :  { %v8559_v61 = vpop.f32.mrf.mxu1 }
 0x460   :  { %6383 = vmatpush3.bf16.msra.mxu0 %v6933_v56  ;;  %6439 = vmatpush3.bf16.msra.mxu1 %v6946_v24  ;;  %v6972_v56 = vld [vmem:[%s9044_s5 + $0x208] sm:$0xff]   ;;  %v3206_v24 = vpack.c.bf16 %v8507_v45, %v8497_v62 }
 0x461   :  { %6384 = vmatprep.subr.bf16.mxu0 %v6935_v49  ;;  %6440 = vmatprep.subr.bf16.mxu1 %v6948_v54  ;;  %v8567_v6 = vpop.f32.mrf.mxu1  ;;  %v6963_v62 = vld [vmem:[%s9044_s5 + $0x1e8] sm:$0xff]  }
 0x463   :  { %v3180_v42 = vpop.f32.mrf.mxu1 }
 0x464   :  { %6385 = vmatpush3.bf16.msra.mxu0 %v6935_v49  ;;  %6441 = vmatpush3.bf16.msra.mxu1 %v6948_v54  ;;  %v6974_v49 = vld [vmem:[%s9044_s5 + $0x200] sm:$0xff]   ;;  %v3209_v54 = vpack.c.bf16 %v8559_v61, %v8543_v25  ;;  %v3210_v61 = vpack.c.bf16 %v8551_v15, %v8535_v11 }
 0x465   :  { %6386 = vmatprep.subr.bf16.mxu0 %v6937_v36  ;;  %6442 = vmatprep.subr.bf16.mxu1 %v6950_v57  ;;  %v8585_v9 = vpop.f32.mrf.mxu1  ;;  %v6965_v25 = vld [vmem:[%s9044_s5 + $0x1e0] sm:$0xff]  }
 0x466   :  { %v3212_v45 = vpack.c.bf16 %v8585_v9, %v8567_v6 }
 0x467   :  { %v3183_v32 = vpop.f32.mrf.mxu1 }
 0x468   :  { %6387 = vmatpush3.bf16.msra.mxu0 %v6937_v36  ;;  %6443 = vmatpush3.bf16.msra.mxu1 %v6950_v57  ;;  %v3211_v30 = vpack.c.bf16 %v3183_v32, %v3180_v42  ;;  %v6967_v36 = vld [vmem:[%s9044_s5 + $0x1d8] sm:$0xff]   ;;  %v6969_v57 = vld [vmem:[%s9044_s5 + $0x1d0] sm:$0xff]  }
 0x469   :  { %6388 = vmatprep.subr.bf16.mxu0 %v6939_v33  ;;  %6444 = vmatprep.subr.bf16.mxu1 %v6952_v31 }
 0x46c   :  { %6389 = vmatpush3.bf16.msra.mxu0 %v6939_v33  ;;  %6445 = vmatpush3.bf16.msra.mxu1 %v6952_v31  ;;  %v6971_v33 = vld [vmem:[%s9044_s5 + $0x1c8] sm:$0xff]   ;;  %v6973_v31 = vld [vmem:[%s9044_s5 + $0x1c0] sm:$0xff]  }
 0x46d   :  { %6390 = vmatprep.subr.bf16.mxu0 %v6941_v29  ;;  %6446 = vmatprep.subr.bf16.mxu1 %v6954_v7 }
 0x470   :  { %6391 = vmatpush3.bf16.msra.mxu0 %v6941_v29  ;;  %6447 = vmatpush3.bf16.msra.mxu1 %v6954_v7  ;;  %v4277_v29 = vld [vmem:[%s9045_s7] sm:$0xff] }
 0x471   :  { %6416 = vmatprep.subr.bf16.mxu0 %v6943_v47  ;;  %6448 = vmatprep.subr.bf16.mxu1 %v6956_v20  ;;  %v4293_v7 = vld [vmem:[%s9045_s7 + $0x80] sm:$0xff] }
 0x473   :  { %6393 = vmatmul.mubr.bf16.vlgmr.msra.gmra.mxu0 %v3202_v50 }
 0x474   :  { %6417 = vmatpush3.bf16.msra.mxu0 %v6943_v47  ;;  %6449 = vmatpush3.bf16.msra.mxu1 %v6956_v20 }
 0x475   :  { %6418 = vmatprep.subr.bf16.mxu0 %v6945_v22  ;;  %6450 = vmatprep.subr.bf16.mxu1 %v6958_v17 }
 0x476   :  { %6432 = vmatprep.mubr.bf16.mxu0 %v3205_v52 }
 0x478   :  { %6419 = vmatpush3.bf16.msra.mxu0 %v6945_v22  ;;  %6451 = vmatpush3.bf16.msra.mxu1 %v6958_v17 }
 0x479   :  { %6420 = vmatprep.subr.bf16.mxu0 %v6947_v37  ;;  %6476 = vmatprep.subr.bf16.mxu1 %v6960_v48 }
 0x47b   :  { %6453 = vmatmul.mubr.bf16.vlgmr.msra.gmra.mxu1 %v3208_v28 }
 0x47c   :  { %6421 = vmatpush3.bf16.msra.mxu0 %v6947_v37  ;;  %6477 = vmatpush3.bf16.msra.mxu1 %v6960_v48 }
 0x47d   :  { %6422 = vmatprep.subr.bf16.mxu0 %v6949_v4  ;;  %6478 = vmatprep.subr.bf16.mxu1 %v6962_v12 }
 0x47e   :  { %6492 = vmatprep.mubr.bf16.mxu1 %v3211_v30 }
 0x480   :  { %6423 = vmatpush3.bf16.msra.mxu0 %v6949_v4  ;;  %6479 = vmatpush3.bf16.msra.mxu1 %v6962_v12 }
 0x481   :  { %6424 = vmatprep.subr.bf16.mxu0 %v6951_v59  ;;  %6480 = vmatprep.subr.bf16.mxu1 %v6964_v51 }
 0x484   :  { %6425 = vmatpush3.bf16.msra.mxu0 %v6951_v59  ;;  %6481 = vmatpush3.bf16.msra.mxu1 %v6964_v51 }
 0x485   :  { %6426 = vmatprep.subr.bf16.mxu0 %v6953_v34  ;;  %6482 = vmatprep.subr.bf16.mxu1 %v6966_v55 }
 0x488   :  { %6427 = vmatpush3.bf16.msra.mxu0 %v6953_v34  ;;  %6483 = vmatpush3.bf16.msra.mxu1 %v6966_v55 }
 0x489   :  { %6428 = vmatprep.subr.bf16.mxu0 %v6955_v60  ;;  %6484 = vmatprep.subr.bf16.mxu1 %v6968_v40 }
 0x48c   :  { %6429 = vmatpush3.bf16.msra.mxu0 %v6955_v60  ;;  %6485 = vmatpush3.bf16.msra.mxu1 %v6968_v40 }
 0x48d   :  { %6430 = vmatprep.subr.bf16.mxu0 %v6957_v23  ;;  %6486 = vmatprep.subr.bf16.mxu1 %v6970_v1 }
 0x490   :  { %6431 = vmatpush3.bf16.msra.mxu0 %v6957_v23  ;;  %6487 = vmatpush3.bf16.msra.mxu1 %v6970_v1 }
 0x491   :  { %6456 = vmatprep.subr.bf16.mxu0 %v6959_v27  ;;  %6488 = vmatprep.subr.bf16.mxu1 %v6972_v56 }
 0x493   :  { %6433 = vmatmul.mubr.bf16.vlgmr.msra.gmra.mxu0 %v3206_v24 }
 0x494   :  { %6457 = vmatpush3.bf16.msra.mxu0 %v6959_v27  ;;  %6489 = vmatpush3.bf16.msra.mxu1 %v6972_v56 }
 0x495   :  { %6458 = vmatprep.subr.bf16.mxu0 %v6961_v26  ;;  %6490 = vmatprep.subr.bf16.mxu1 %v6974_v49 }
 0x496   :  { %6472 = vmatprep.mubr.bf16.mxu0 %v3209_v54 }
 0x498   :  { %6459 = vmatpush3.bf16.msra.mxu0 %v6961_v26  ;;  %6491 = vmatpush3.bf16.msra.mxu1 %v6974_v49 }
 0x499   :  { %6460 = vmatprep.subr.bf16.mxu0 %v6963_v62 }
 0x49b   :  { %6493 = vmatmul.mubr.bf16.vlgmr.msra.gmra.mxu1 %v3212_v45 }
 0x49c   :  { %6461 = vmatpush3.bf16.msra.mxu0 %v6963_v62  ;;  %6528 = vmatprep.mubr.msk.f32.mxu1 %vm2963_vm2, %v4293_v7 }
 0x49d   :  { %6462 = vmatprep.subr.bf16.mxu0 %v6965_v25 }
 0x4a0   :  { %6463 = vmatpush3.bf16.msra.mxu0 %v6965_v25 }
 0x4a1   :  { %6464 = vmatprep.subr.bf16.mxu0 %v6967_v36 }
 0x4a4   :  { %6465 = vmatpush3.bf16.msra.mxu0 %v6967_v36 }
 0x4a5   :  { %6466 = vmatprep.subr.bf16.mxu0 %v6969_v57 }
 0x4a8   :  { %6467 = vmatpush3.bf16.msra.mxu0 %v6969_v57 }
 0x4a9   :  { %6468 = vmatprep.subr.bf16.mxu0 %v6971_v33 }
 0x4ac   :  { %6469 = vmatpush3.bf16.msra.mxu0 %v6971_v33 }
 0x4ad   :  { %6470 = vmatprep.subr.bf16.mxu0 %v6973_v31 }
 0x4b0   :  { %6471 = vmatpush3.bf16.msra.mxu0 %v6973_v31 }
 0x4b3   :  { %6473 = vmatmul.mubr.bf16.vlgmr.msra.gmra.mxu0 %v3210_v61 }
 0x4b4   :  { %6504 = vmatprep.mubr.msk.f32.mxu0 %vm2963_vm2, %v4277_v29 }
 0x4f3   :  { %v6334_v6 = vpop.f32.mrf.mxu0 }
 0x4f5   :  { %v3328_v47 = vpop.f32.mrf.mxu0 }
 0x4f7   :  { %v6335_v20 = vpop.f32.mrf.mxu0 }
 0x4f9   :  { %v3331_v50 = vpop.f32.mrf.mxu0 }
 0x4fb   :  { %v6374_v42 = vpop.f32.mrf.mxu1 }
 0x4fd   :  { %v3539_v11 = vpop.f32.mrf.mxu1 }
 0x4ff   :  { %v6375_v17 = vpop.f32.mrf.mxu1 }
 0x501   :  { %v3542_v9 = vpop.f32.mrf.mxu1 }
 0x513   :  { %v6354_v22 = vpop.f32.mrf.mxu0 }
 0x514   :  { %v3434_v55 = vadd.f32 %v6354_v22, %v6334_v6 }
 0x515   :  { %v3425_v15 = vpop.f32.mrf.mxu0 }
 0x516   :  { %v3426_v1 = vadd.f32 %v3425_v15, %v3328_v47  ;;  %v3556_v27 = vadd.f32 %v6374_v42, %v3434_v55 }
 0x517   :  { %v6355_v52 = vpop.f32.mrf.mxu0 }
 0x518   :  { %v3437_v23 = vadd.f32 %v6355_v52, %v6335_v20  ;;  %v3554_v62 = vadd.f32 %v3539_v11, %v3426_v1 }
 0x519   :  { %v3428_v48 = vpop.f32.mrf.mxu0 }
 0x51a   :  { %v3429_v56 = vadd.f32 %v3428_v48, %v3331_v50  ;;  %v3557_v49 = vadd.f32 %v6375_v17, %v3437_v23 }
 0x51b   :  { %v6414_v37 = vpop.f32.mrf.mxu1 }
 0x51c   :  { %v3555_v45 = vadd.f32 %v3542_v9, %v3429_v56 }
 0x51d   :  { %v3775_v32 = vpop.f32.mrf.mxu1 }
 0x51f   :  { %v6415_v12 = vpop.f32.mrf.mxu1 }
 0x521   :  { %v3778_v59 = vpop.f32.mrf.mxu1 }
 0x533   :  { %v6394_v28 = vpop.f32.mrf.mxu0 }
 0x534   :  { %v3674_v54 = vadd.f32 %v6394_v28, %v3556_v27 }
 0x535   :  { %v3657_v4 = vpop.f32.mrf.mxu0 }
 0x536   :  { %v3672_v33 = vadd.f32 %v3657_v4, %v3554_v62  ;;  %v3792_v31 = vadd.f32 %v6414_v37, %v3674_v54  ;;  %v4278_v54 = vld [vmem:[%s9045_s7 + $0x8] sm:$0xff] }
 0x537   :  { %v6395_v30 = vpop.f32.mrf.mxu0  ;;  %v4294_v62 = vld [vmem:[%s9045_s7 + $0x88] sm:$0xff] }
 0x538   :  { %v3675_v25 = vadd.f32 %v6395_v30, %v3557_v49  ;;  %v3790_v20 = vadd.f32 %v3775_v32, %v3672_v33  ;;  %v4281_v33 = vld [vmem:[%s9045_s7 + $0x20] sm:$0xff] }
 0x539   :  { %v3660_v34 = vpop.f32.mrf.mxu0 }
 0x53a   :  { %v3673_v61 = vadd.f32 %v3660_v34, %v3555_v45  ;;  %v3793_v7 = vadd.f32 %v6415_v12, %v3675_v25  ;;  %v4279_v45 = vld [vmem:[%s9045_s7 + $0x10] sm:$0xff] }
 0x53b   :  { %v6454_v51 = vpop.f32.mrf.mxu1  ;;  %v4295_v25 = vld [vmem:[%s9045_s7 + $0x90] sm:$0xff] }
 0x53c   :  { %v3791_v47 = vadd.f32 %v3778_v59, %v3673_v61  ;;  %v5545_v59 = vld [vmem:[%s9046_s6] ss:$0 sm:$0xff]  ;;  %v4282_v61 = vld [vmem:[%s9045_s7 + $0x28] sm:$0xff] }
 0x53d   :  { %v4011_v40 = vpop.f32.mrf.mxu1 }
 0x53f   :  { %v6455_v26 = vpop.f32.mrf.mxu1 }
 0x541   :  { %v4014_v57 = vpop.f32.mrf.mxu1 }
 0x553   :  { %v6434_v60 = vpop.f32.mrf.mxu0 }
 0x554   :  { %v3910_v6 = vadd.f32 %v6434_v60, %v3792_v31  ;;  %v4297_v31 = vld [vmem:[%s9045_s7 + $0xa0] sm:$0xff] }
 0x555   :  { %v3893_v24 = vpop.f32.mrf.mxu0 }
 0x556   :  { %v3908_v52 = vadd.f32 %v3893_v24, %v3790_v20  ;;  %v4028_v17 = vadd.f32 %v6454_v51, %v3910_v6  ;;  %v4284_v6 = vld [vmem:[%s9045_s7 + $0x38] sm:$0xff]  ;;  %v4286_v20 = vld [vmem:[%s9045_s7 + $0x48] sm:$0xff] }
 0x557   :  { %v6435_v36 = vpop.f32.mrf.mxu0 }
 0x558   :  { %v3911_v42 = vadd.f32 %v6435_v36, %v3793_v7  ;;  %v4026_v4 = vadd.f32 %v4011_v40, %v3908_v52  ;;  %v4280_v36 = vld [vmem:[%s9045_s7 + $0x18] sm:$0xff]  ;;  %v4283_v7 = vld [vmem:[%s9045_s7 + $0x30] sm:$0xff] }
 0x559   :  { %v3896_v22 = vpop.f32.mrf.mxu0  ;;  %v4291_v52 = vld [vmem:[%s9045_s7 + $0x70] sm:$0xff] }
 0x55a   :  { %v3909_v48 = vadd.f32 %v3896_v22, %v3791_v47  ;;  %v4029_v9 = vadd.f32 %v6455_v26, %v3911_v42  ;;  %v4285_v22 = vld [vmem:[%s9045_s7 + $0x40] sm:$0xff]  ;;  %v4287_v47 = vld [vmem:[%s9045_s7 + $0x50] sm:$0xff]  ;;  %v4288_v42 = vld [vmem:[%s9045_s7 + $0x58] sm:$0xff] }
 0x55b   :  { %v6494_v29 = vpop.f32.mrf.mxu1 }
 0x55c   :  { %v4027_v37 = vadd.f32 %v4014_v57, %v3909_v48  ;;  %v4296_v57 = vld [vmem:[%s9045_s7 + $0x98] sm:$0xff] }
 0x55d   :  { %v4247_v15 = vpop.f32.mrf.mxu1 }
 0x55f   :  { %v6495_v55 = vpop.f32.mrf.mxu1 }
 0x561   :  { %v4250_v27 = vpop.f32.mrf.mxu1 }
 0x573   :  { %v6474_v50 = vpop.f32.mrf.mxu0 }
 0x574   :  { %v4146_v28 = vadd.f32 %v6474_v50, %v4028_v17  ;;  %v4289_v50 = vld [vmem:[%s9045_s7 + $0x60] sm:$0xff]  ;;  %v4292_v17 = vld [vmem:[%s9045_s7 + $0x78] sm:$0xff] }
 0x575   :  { %v4129_v11 = vpop.f32.mrf.mxu0 }
 0x576   :  { %v4144_v12 = vadd.f32 %v4129_v11, %v4026_v4  ;;  %v4264_v60 = vadd.f32 %v6494_v29, %v4146_v28  ;;  %v4298_v29 = vld [vmem:[%s9045_s7 + $0xa8] sm:$0xff] }
 0x577   :  { %v6475_v30 = vpop.f32.mrf.mxu0 }
 0x578   :  { %v4147_v34 = vadd.f32 %v6475_v30, %v4029_v9  ;;  %v4275_v24 = vadd.f32 %v5545_v59, %v4264_v60  ;;  %v4262_v26 = vadd.f32 %v4247_v15, %v4144_v12  ;;  %v4290_v15 = vld [vmem:[%s9045_s7 + $0x68] sm:$0xff] }
 0x579   :  { %v4132_v23 = vpop.f32.mrf.mxu0 }
 0x57a   :  { %v4145_v1 = vadd.f32 %v4132_v23, %v4027_v37  ;;  %v4265_v32 = vadd.f32 %v6495_v55, %v4147_v34  ;;  %v4273_v49 = vadd.f32 %v5545_v59, %v4262_v26 }
 0x57c   :  { %v4276_v51 = vadd.f32 %v5545_v59, %v4265_v32  ;;  %v4263_v56 = vadd.f32 %v4250_v27, %v4145_v1 }
 0x57e   :  { %6496 = vmatprep.subr.mxu0 %v4276_v51  ;;  %6537 = vmatprep.subr.mxu1 %v4276_v51  ;;  %v4274_v40 = vadd.f32 %v5545_v59, %v4263_v56 }
 0x57f   :  { %6497 = vmatpush3.msra.mxu0 %v4276_v51  ;;  %6541 = vmatpush3.msra.mxu1 %v4276_v51 }
 0x580   :  { %6498 = vmatprep.subr.mxu0 %v4275_v24  ;;  %6538 = vmatprep.subr.mxu1 %v4275_v24 }
 0x581   :  { %6499 = vmatpush3.msra.mxu0 %v4275_v24  ;;  %6542 = vmatpush3.msra.mxu1 %v4275_v24 }
 0x582   :  { %6500 = vmatprep.subr.mxu0 %v4274_v40  ;;  %6539 = vmatprep.subr.mxu1 %v4274_v40 }
 0x583   :  { %6501 = vmatpush3.msra.mxu0 %v4274_v40  ;;  %6543 = vmatpush3.msra.mxu1 %v4274_v40 }
 0x584   :  { %6502 = vmatprep.subr.mxu0 %v4273_v49  ;;  %6540 = vmatprep.subr.mxu1 %v4273_v49 }
 0x585   :  { %6503 = vmatpush3.msra.mxu0 %v4273_v49  ;;  %6544 = vmatpush3.msra.mxu1 %v4273_v49 }
 0x586   :  { %6505 = vmatmul.mubr.msk.f32.vlgmr.msra.gmra.mxu0 %vm2963_vm2, %v4278_v54  ;;  %6529 = vmatmul.mubr.msk.f32.vlgmr.msra.gmra.mxu1 %vm2963_vm2, %v4294_v62 }
 0x587   :  { %6507 = vmatprep.mubr.msk.f32.mxu0 %vm2963_vm2, %v4279_v45  ;;  %6531 = vmatprep.mubr.msk.f32.mxu1 %vm2963_vm2, %v4295_v25 }
 0x58a   :  { %6508 = vmatmul.mubr.msk.f32.gmra.mxu0 %vm2963_vm2, %v4280_v36  ;;  %6532 = vmatmul.mubr.msk.f32.gmra.mxu1 %vm2963_vm2, %v4296_v57 }
 0x58b   :  { %6510 = vmatprep.mubr.msk.f32.mxu0 %vm2963_vm2, %v4281_v33  ;;  %6534 = vmatprep.mubr.msk.f32.mxu1 %vm2963_vm2, %v4297_v31 }
 0x58e   :  { %6511 = vmatmul.mubr.msk.f32.gmra.mxu0 %vm2963_vm2, %v4282_v61  ;;  %6535 = vmatmul.mubr.msk.f32.gmra.mxu1 %vm2963_vm2, %v4298_v29 }
 0x58f   :  { %6513 = vmatprep.mubr.msk.f32.mxu0 %vm2963_vm2, %v4283_v7 }
 0x592   :  { %6514 = vmatmul.mubr.msk.f32.gmra.mxu0 %vm2963_vm2, %v4284_v6 }
 0x593   :  { %6516 = vmatprep.mubr.msk.f32.mxu0 %vm2963_vm2, %v4285_v22 }
 0x596   :  { %6517 = vmatmul.mubr.msk.f32.gmra.mxu0 %vm2963_vm2, %v4286_v20 }
 0x597   :  { %6519 = vmatprep.mubr.msk.f32.mxu0 %vm2963_vm2, %v4287_v47 }
 0x59a   :  { %6520 = vmatmul.mubr.msk.f32.gmra.mxu0 %vm2963_vm2, %v4288_v42 }
 0x59b   :  { %6522 = vmatprep.mubr.msk.f32.mxu0 %vm2963_vm2, %v4289_v50 }
 0x59e   :  { %6523 = vmatmul.mubr.msk.f32.gmra.mxu0 %vm2963_vm2, %v4290_v15 }
 0x59f   :  { %6525 = vmatprep.mubr.msk.f32.mxu0 %vm2963_vm2, %v4291_v52 }
 0x5a2   :  { %6526 = vmatmul.mubr.msk.f32.gmra.mxu0 %vm2963_vm2, %v4292_v17 }
 0x646   :  { %v6506_v48 = vpop.f32.mrf.mxu0  ;;  %v8754_v25 = vpop.f32.mrf.mxu1 }
 0x647   :  { %v4541_v11 = vsub.f32 0.0, %v6506_v48 }
 0x648   :  { %v4431_v9 = vpop.f32.mrf.mxu0  ;;  %v4511_v6 = vpop.f32.mrf.mxu1 }
 0x649   :  { %v4564_v28 = vmul.f32 1.442695, %v4541_v11  ;;  %v4540_v30 = vsub.f32 0.0, %v4431_v9 }
 0x64a   :  { %v6509_v55 = vpop.f32.mrf.mxu0  ;;  %v6533_v52 = vpop.f32.mrf.mxu1 }
 0x64b   :  { %6975 = vpow2.f32 %v4564_v28  ;;  %v4562_v4 = vmul.f32 1.442695, %v4540_v30  ;;  %v4543_v37 = vsub.f32 0.0, %v6509_v55 }
 0x64c   :  { %v4441_v34 = vpop.f32.mrf.mxu0 }
 0x64d   :  { %6977 = vpow2.f32 %v4562_v4  ;;  %v4568_v23 = vmul.f32 1.442695, %v4543_v37  ;;  %v4542_v12 = vsub.f32 0.0, %v4441_v34  ;;  %v4521_v37 = vpop.f32.mrf.mxu1 }
 0x64e   :  { %v6512_v60 = vpop.f32.mrf.mxu0 }
 0x64f   :  { %6979 = vpow2.f32 %v4568_v23  ;;  %v4566_v1 = vmul.f32 1.442695, %v4542_v12  ;;  %v4545_v32 = vsub.f32 0.0, %v6512_v60 }
 0x650   :  { %v4451_v59 = vpop.f32.mrf.mxu0 }
 0x651   :  { %6981 = vpow2.f32 %v4566_v1  ;;  %v4572_v27 = vmul.f32 1.442695, %v4545_v32  ;;  %v4544_v51 = vsub.f32 0.0, %v4451_v59 }
 0x652   :  { %v6515_v56 = vpop.f32.mrf.mxu0 }
 0x653   :  { %6983 = vpow2.f32 %v4572_v27  ;;  %v4570_v24 = vmul.f32 1.442695, %v4544_v51  ;;  %v4547_v49 = vsub.f32 0.0, %v6515_v56 }
 0x654   :  { %v4461_v26 = vpop.f32.mrf.mxu0 }
 0x655   :  { %6985 = vpow2.f32 %v4570_v24  ;;  %v4546_v40 = vsub.f32 0.0, %v4461_v26  ;;  %v4576_v31 = vmul.f32 1.442695, %v4547_v49  ;;  %v8756_v24 = vpop.f32.mrf.mxu1 }
 0x656   :  { %v6518_v54 = vpop.f32.mrf.mxu0 }
 0x657   :  { %v4574_v62 = vmul.f32 1.442695, %v4546_v40  ;;  %v4549_v17 = vsub.f32 0.0, %v6518_v54  ;;  %v4556_v54 = vsub.f32 0.0, %v4511_v6 }
 0x658   :  { %v6976_v45 = vpop.eup %6975  ;;  %v4471_v36 = vpop.f32.mrf.mxu0 }
 0x659   :  { %v4607_v57 = vadd.f32 1.0, %v6976_v45  ;;  %6987 = vpow2.f32 %v4574_v62  ;;  %v4548_v9 = vsub.f32 0.0, %v4471_v36  ;;  %v4580_v34 = vmul.f32 1.442695, %v4549_v17 }
 0x65a   :  { %v6978_v33 = vpop.eup %6977  ;;  %v6521_v61 = vpop.f32.mrf.mxu0 }
 0x65b   :  { %v4606_v29 = vadd.f32 1.0, %v6978_v33  ;;  %6989 = vrcp.f32 %v4607_v57  ;;  %v4551_v4 = vsub.f32 0.0, %v6521_v61  ;;  %v4578_v32 = vmul.f32 1.442695, %v4548_v9 }
 0x65c   :  { %v6980_v7 = vpop.eup %6979  ;;  %v4481_v22 = vpop.f32.mrf.mxu0 }
 0x65d   :  { %6991 = vrcp.f32 %v4606_v29  ;;  %v4609_v47 = vadd.f32 1.0, %v6980_v7  ;;  %v4550_v23 = vsub.f32 0.0, %v4481_v22  ;;  %v4584_v51 = vmul.f32 1.442695, %v4551_v4  ;;  %v4531_v7 = vpop.f32.mrf.mxu1 }
 0x65e   :  { %v6982_v20 = vpop.eup %6981  ;;  %6993 = vpow2.f32 %v4576_v31  ;;  %v6524_v42 = vpop.f32.mrf.mxu0  ;;  %v4557_v29 = vsub.f32 0.0, %v8754_v25 }
 0x65f   :  { %v4608_v50 = vadd.f32 1.0, %v6982_v20  ;;  %v4553_v12 = vsub.f32 0.0, %v6524_v42  ;;  %v4582_v26 = vmul.f32 1.442695, %v4550_v23  ;;  %v4594_v20 = vmul.f32 1.442695, %v4556_v54 }
 0x660   :  { %v6984_v15 = vpop.eup %6983  ;;  %v4491_v48 = vpop.f32.mrf.mxu0  ;;  %v4596_v25 = vmul.f32 1.442695, %v4557_v29 }
 0x661   :  { %6995 = vrcp.f32 %v4608_v50  ;;  %v4611_v30 = vadd.f32 1.0, %v6984_v15  ;;  %v4552_v59 = vsub.f32 0.0, %v4491_v48  ;;  %v4588_v62 = vmul.f32 1.442695, %v4553_v12 }
 0x662   :  { %v6986_v11 = vpop.eup %6985  ;;  %6997 = vrcp.f32 %v4609_v47  ;;  %v6527_v28 = vpop.f32.mrf.mxu0  ;;  %v4559_v47 = vsub.f32 0.0, %v6533_v52  ;;  %v4558_v50 = vsub.f32 0.0, %v4521_v37 }
 0x663   :  { %v4610_v55 = vadd.f32 1.0, %v6986_v11  ;;  %v4555_v56 = vsub.f32 0.0, %v6527_v28  ;;  %v4586_v36 = vmul.f32 1.442695, %v4552_v59  ;;  %v4560_v11 = vsub.f32 0.0, %v4531_v7 }
 0x664   :  { %v4501_v60 = vpop.f32.mrf.mxu0  ;;  %v4600_v28 = vmul.f32 1.442695, %v4559_v47  ;;  %v4598_v4 = vmul.f32 1.442695, %v4558_v50 }
 0x665   :  { %6999 = vrcp.f32 %v4610_v55  ;;  %v4554_v40 = vsub.f32 0.0, %v4501_v60  ;;  %v4592_v31 = vmul.f32 1.442695, %v4555_v56  ;;  %v4602_v37 = vmul.f32 1.442695, %v4560_v11 }
 0x666   :  { %v6988_v1 = vpop.eup %6987  ;;  %7001 = vrcp.f32 %v4611_v30 }
 0x667   :  { %v4612_v27 = vadd.f32 1.0, %v6988_v1  ;;  %7003 = vpow2.f32 %v4580_v34  ;;  %v4590_v22 = vmul.f32 1.442695, %v4554_v40 }
 0x668   :  { %v6990_v49 = vpop.eup %6989 }
 0x669   :  { %7005 = vrcp.f32 %v4612_v27  ;;  %v4651_v61 = vadd.f32 1.0, %v6990_v49 }
 0x66a   :  { %v6992_v45 = vpop.eup %6991  ;;  %7007 = vpow2.f32 %v4578_v32 }
 0x66b   :  { %v6994_v57 = vpop.eup %6993  ;;  %v4650_v33 = vadd.f32 1.0, %v6992_v45  ;;  %7009 = vpow2.f32 %v4584_v51  ;;  %v8763_v9 = vmul.f32 %v4651_v61, %v8130_v38 }
 0x66c   :  { %7011 = vpow2.f32 %v4582_v26  ;;  %v4613_v15 = vadd.f32 1.0, %v6994_v57 }
 0x66d   :  { %7013 = vpow2.f32 %v4588_v62  ;;  %v8760_v6 = vmul.f32 %v4650_v33, %v8127_v10 }
 0x66e   :  { %v6996_v42 = vpop.eup %6995  ;;  %7015 = vpow2.f32 %v4586_v36 }
 0x66f   :  { %v6998_v17 = vpop.eup %6997  ;;  %v4652_v48 = vadd.f32 1.0, %v6996_v42  ;;  %7017 = vpow2.f32 %v4592_v31  ;;  %v4805_v10 = vadd.f32 %v8763_v9, %v8760_v6 }
 0x670   :  { %7019 = vpow2.f32 %v4590_v22  ;;  %v4653_v55 = vadd.f32 1.0, %v6998_v17 }
 0x671   :  { %7021 = vpow2.f32 %v4594_v20  ;;  %v8766_v52 = vmul.f32 %v4652_v48, %v8133_v35 }
 0x672   :  { %v7000_v30 = vpop.eup %6999  ;;  %7023 = vrcp.f32 %v4613_v15  ;;  %v8772_v1 = vmul.f32 %v4653_v55, %v8136_v58 }
 0x673   :  { %v7002_v34 = vpop.eup %7001  ;;  %7025 = vpow2.f32 %v4596_v25  ;;  %v4806_v38 = vadd.f32 %v4805_v10, %v8766_v52  ;;  %v4654_v23 = vadd.f32 1.0, %v7000_v30 }
 0x674   :  { %v7004_v12 = vpop.eup %7003  ;;  %7027 = vpow2.f32 %v4600_v28  ;;  %v4655_v54 = vadd.f32 1.0, %v7002_v34 }
 0x675   :  { %7029 = vpow2.f32 %v4598_v4  ;;  %v4615_v35 = vadd.f32 1.0, %v7004_v12  ;;  %v8775_v27 = vmul.f32 %v4654_v23, %v8139_v0  ;;  %v4807_v51 = vadd.f32 %v4806_v38, %v8772_v1 }
 0x676   :  { %v7006_v60 = vpop.eup %7005  ;;  %7031 = vpow2.f32 %v4602_v37  ;;  %v8780_v29 = vmul.f32 %v4655_v54, %v8226_v8  ;;  %v4561_v37 = vsub.f32 0.0, %v8756_v24 }
 0x677   :  { %v7008_v32 = vpop.eup %7007  ;;  %7033 = vrcp.f32 %v4615_v35  ;;  %v4808_v57 = vadd.f32 %v4807_v51, %v8775_v27  ;;  %v4656_v33 = vadd.f32 1.0, %v7006_v60 }
 0x678   :  { %v7010_v59 = vpop.eup %7009  ;;  %v4614_v56 = vadd.f32 1.0, %v7008_v32 }
 0x679   :  { %v7012_v26 = vpop.eup %7011  ;;  %v4617_v40 = vadd.f32 1.0, %v7010_v59  ;;  %v8783_v20 = vmul.f32 %v4656_v33, %v8222_v13  ;;  %v4809_v47 = vadd.f32 %v4808_v57, %v8780_v29 }
 0x67a   :  { %v7014_v49 = vpop.eup %7013  ;;  %7035 = vrcp.f32 %v4614_v56  ;;  %v4616_v62 = vadd.f32 1.0, %v7012_v26 }
 0x67b   :  { %v7016_v58 = vpop.eup %7015  ;;  %7037 = vrcp.f32 %v4617_v40  ;;  %v4619_v45 = vadd.f32 1.0, %v7014_v49  ;;  %v4810_v8 = vadd.f32 %v4809_v47, %v8783_v20 }
 0x67c   :  { %v7018_v36 = vpop.eup %7017  ;;  %7039 = vrcp.f32 %v4616_v62  ;;  %v4618_v0 = vadd.f32 1.0, %v7016_v58 }
 0x67d   :  { %v7020_v31 = vpop.eup %7019  ;;  %v4621_v42 = vadd.f32 1.0, %v7018_v36 }
 0x67e   :  { %v7022_v61 = vpop.eup %7021  ;;  %7041 = vrcp.f32 %v4618_v0  ;;  %v4620_v7 = vadd.f32 1.0, %v7020_v31  ;;  %v4694_v31 = vlaneseq }
 0x67f   :  { %v7024_v22 = vpop.eup %7023  ;;  %7043 = vrcp.f32 %v4619_v45  ;;  %v4622_v17 = vadd.f32 1.0, %v7022_v61 }
 0x680   :  { %7045 = vrcp.f32 %v4620_v7  ;;  %v7026_v50 = vpop.eup %7025  ;;  %v4657_v48 = vadd.f32 1.0, %v7024_v22 }
 0x681   :  { %v7028_v15 = vpop.eup %7027  ;;  %v4623_v28 = vadd.f32 1.0, %v7026_v50  ;;  %7047 = vrcp.f32 %v4621_v42 }
 0x682   :  { %v7030_v11 = vpop.eup %7029  ;;  %v4625_v10 = vadd.f32 1.0, %v7028_v15  ;;  %7049 = vrcp.f32 %v4622_v17  ;;  %v8788_v13 = vmul.f32 %v4657_v48, %v8216_v16  ;;  %v4604_v16 = vmul.f32 1.442695, %v4561_v37 }
 0x683   :  { %v7032_v25 = vpop.eup %7031  ;;  %v4624_v55 = vadd.f32 1.0, %v7030_v11  ;;  %7051 = vrcp.f32 %v4623_v28  ;;  %v8819_v11 = vshrl.u32 %v4694_v31, 7 }
 0x684   :  { %v7034_v30 = vpop.eup %7033  ;;  %v4626_v34 = vadd.f32 1.0, %v7032_v25  ;;  %v4811_v60 = vadd.f32 %v4810_v8, %v8788_v13  ;;  %7053 = vrcp.f32 %v4625_v10 }
 0x685   :  { %v4659_v23 = vadd.f32 1.0, %v7034_v30  ;;  %7055 = vrcp.f32 %v4624_v55  ;;  %v8833_v37 = vadd.s32 160, %v8819_v11 }
 0x686   :  { %7057 = vrcp.f32 %v4626_v34 }
 0x687   :  { %v7036_v4 = vpop.eup %7035  ;;  %v8796_v24 = vmul.f32 %v4659_v23, %v8203_v2  ;;  %7059 = vpow2.f32 %v4604_v16  ;;  %vm4737_vm3 = vcmp.lt.s32.totalorder %v8833_v37, 162  ;;  %v4935_v37 = vsub.s32 0, %v8819_v11 }
 0x688   :  { %v7038_v38 = vpop.eup %7037  ;;  %v4658_v12 = vadd.f32 1.0, %v7036_v4 }
 0x689   :  { %v7040_v35 = vpop.eup %7039  ;;  %v4661_v56 = vadd.f32 1.0, %v7038_v38 }
 0x68a   :  { %v8793_v32 = vmul.f32 %v4658_v12, %v8211_v41  ;;  %v4660_v59 = vadd.f32 1.0, %v7040_v35 }
 0x68b   :  { %v7042_v51 = vpop.eup %7041  ;;  %v8804_v41 = vmul.f32 %v4661_v56, %v8188_v44 }
 0x68c   :  { %v7044_v26 = vpop.eup %7043  ;;  %v4812_v40 = vadd.f32 %v4811_v60, %v8793_v32  ;;  %v8800_v49 = vmul.f32 %v4660_v59, %v8197_v21  ;;  %v4662_v54 = vadd.f32 1.0, %v7042_v51 }
 0x68d   :  { %v7046_v62 = vpop.eup %7045  ;;  %v4663_v36 = vadd.f32 1.0, %v7044_v26 }
 0x68e   :  { %v4813_v58 = vadd.f32 %v4812_v40, %v8796_v24  ;;  %v8808_v57 = vmul.f32 %v4662_v54, %v8182_v63  ;;  %v4664_v2 = vadd.f32 1.0, %v7046_v62  ;;  %v7048_v33 = vpop.eup %7047 }
 0x68f   :  { %v7050_v21 = vpop.eup %7049  ;;  %v8812_v61 = vmul.f32 %v4663_v36, %v8173_v3  ;;  %v4665_v22 = vadd.f32 1.0, %v7048_v33 }
 0x690   :  { %v4814_v45 = vadd.f32 %v4813_v58, %v8800_v49  ;;  %v8816_v44 = vmul.f32 %v4664_v2, %v8164_v14  ;;  %v7052_v47 = vpop.eup %7051  ;;  %v4666_v50 = vadd.f32 1.0, %v7050_v21 }
 0x691   :  { %v7054_v42 = vpop.eup %7053  ;;  %v4667_v48 = vadd.f32 1.0, %v7052_v47  ;;  %v8822_v25 = vmul.f32 %v4665_v22, %v8166_v43 }
 0x692   :  { %v4815_v0 = vadd.f32 %v4814_v45, %v8804_v41  ;;  %v7056_v15 = vpop.eup %7055  ;;  %v8826_v28 = vmul.f32 %v4666_v50, %v8270_v5  ;;  %v4669_v4 = vadd.f32 1.0, %v7054_v42 }
 0x693   :  { %v7058_v17 = vpop.eup %7057  ;;  %v4668_v14 = vadd.f32 1.0, %v7056_v15  ;;  %v8830_v55 = vmul.f32 %v4667_v48, %v8265_v53 }
 0x694   :  { %v4816_v7 = vadd.f32 %v4815_v0, %v8808_v57  ;;  %v4670_v30 = vadd.f32 1.0, %v7058_v17  ;;  %v7060_v10 = vpop.eup %7059  ;;  %v8844_v12 = vmul.f32 %v4669_v4, %v8255_v19 }
 0x695   :  { %v8837_v34 = vmul.f32 %v4668_v14, %v8260_v46  ;;  %v4627_v38 = vadd.f32 1.0, %v7060_v10 }
 0x696   :  { %v4817_v63 = vadd.f32 %v4816_v7, %v8812_v61  ;;  %v8841_v23 = vmul.f32 %v4670_v30, %v8249_v18 }
 0x697   :  { %7061 = vrcp.f32 %v4627_v38 }
 0x698   :  { %v4818_v3 = vadd.f32 %v4817_v63, %v8816_v44  ;;  %v4803_v46 = vsel %vm4737_vm3, %v8841_v23, 0.0 }
 0x69a   :  { %v4819_v8 = vadd.f32 %v4818_v3, %v8822_v25 }
 0x69c   :  { %v4820_v43 = vadd.f32 %v4819_v8, %v8826_v28 }
 0x69e   :  { %v4821_v5 = vadd.f32 %v4820_v43, %v8830_v55 }
 0x6a0   :  { %v4822_v53 = vadd.f32 %v4821_v5, %v8837_v34 }
 0x6a2   :  { %v4823_v60 = vadd.f32 %v4822_v53, %v8844_v12 }
 0x6a4   :  { %v4824_v35 = vadd.f32 %v4823_v60, %v4803_v46  ;;  %v7062_v26 = vpop.eup %7061 }
 0x6a5   :  { %v4671_v40 = vadd.f32 1.0, %v7062_v26 }
 0x6a6   :  { %v4826_v59 = vrot.slane %v4824_v35, 4 }
 0x6a7   :  { %v8855_v62 = vmul.f32 %v4671_v40, %v8244_v39 }
 0x6a8   :  { %v4827_v51 = vadd.f32 %v4826_v59, %v4824_v35 }
 0x6aa   :  { %v4828_v16 = vrot.slane %v4827_v51, 2 }
 0x6ac   :  { %v4829_v18 = vadd.f32 %v4828_v16, %v4827_v51 }
 0x6ae   :  { %v4830_v56 = vrot.slane %v4829_v18, 1 }
 0x6b0   :  { %v4831_v19 = vadd.f32 %v4830_v56, %v4829_v18 }
 0x6b2   :  { %v8852_v54 = vmul.f32 0.0061728396, %v4831_v19 }
 0x6b4   :  { %v8859_v58 = vsub.f32 %v8760_v6, %v8852_v54  ;;  %v8863_v45 = vsub.f32 %v8763_v9, %v8852_v54  ;;  %v4855_v36 = vsub.f32 %v8855_v62, %v8852_v54  ;;  %v8869_v2 = vsub.f32 %v8766_v52, %v8852_v54 }
 0x6b5   :  { %v8877_v6 = vsub.f32 %v8772_v1, %v8852_v54  ;;  %v8881_v9 = vsub.f32 %v8775_v27, %v8852_v54  ;;  %v8887_v52 = vsub.f32 %v8780_v29, %v8852_v54  ;;  %v8893_v1 = vsub.f32 %v8783_v20, %v8852_v54 }
 0x6b6   :  { %v4878_v33 = vmul.f32 %v8859_v58, %v8859_v58  ;;  %v4879_v39 = vmul.f32 %v8863_v45, %v8863_v45  ;;  %v4880_v0 = vmul.f32 %v8869_v2, %v8869_v2  ;;  %v8899_v47 = vsub.f32 %v8788_v13, %v8852_v54 }
 0x6b7   :  { %v4881_v31 = vmul.f32 %v8877_v6, %v8877_v6  ;;  %v4882_v27 = vmul.f32 %v8881_v9, %v8881_v9  ;;  %v4883_v29 = vmul.f32 %v8887_v52, %v8887_v52  ;;  %v8905_v50 = vsub.f32 %v8793_v32, %v8852_v54 }
 0x6b8   :  { %v4900_v21 = vadd.f32 %v4879_v39, %v4878_v33  ;;  %v4884_v20 = vmul.f32 %v8893_v1, %v8893_v1  ;;  %v8911_v15 = vsub.f32 %v8796_v24, %v8852_v54  ;;  %v4885_v13 = vmul.f32 %v8899_v47, %v8899_v47 }
 0x6b9   :  { %v8917_v48 = vsub.f32 %v8800_v49, %v8852_v54  ;;  %v4886_v32 = vmul.f32 %v8905_v50, %v8905_v50  ;;  %v8923_v14 = vsub.f32 %v8804_v41, %v8852_v54  ;;  %v4846_v30 = vsub.f32 %v8808_v57, %v8852_v54 }
 0x6ba   :  { %v4901_v7 = vadd.f32 %v4900_v21, %v4880_v0  ;;  %v4887_v24 = vmul.f32 %v8911_v15, %v8911_v15  ;;  %v4847_v4 = vsub.f32 %v8812_v61, %v8852_v54  ;;  %v4848_v41 = vsub.f32 %v8816_v44, %v8852_v54 }
 0x6bb   :  { %v4888_v10 = vmul.f32 %v8917_v48, %v8917_v48  ;;  %v4889_v43 = vmul.f32 %v8923_v14, %v8923_v14  ;;  %v4890_v38 = vmul.f32 %v4846_v30, %v4846_v30  ;;  %v4849_v60 = vsub.f32 %v8822_v25, %v8852_v54 }
 0x6bc   :  { %v4902_v22 = vadd.f32 %v4901_v7, %v4881_v31  ;;  %v4891_v57 = vmul.f32 %v4847_v4, %v4847_v4  ;;  %v4850_v35 = vsub.f32 %v8826_v28, %v8852_v54  ;;  %v4892_v59 = vmul.f32 %v4848_v41, %v4848_v41 }
 0x6bd   :  { %v4851_v61 = vsub.f32 %v8830_v55, %v8852_v54  ;;  %v4893_v16 = vmul.f32 %v4849_v60, %v4849_v60  ;;  %v4852_v44 = vsub.f32 %v8837_v34, %v8852_v54  ;;  %v4854_v25 = vsub.f32 %v8841_v23, %v8852_v54 }
 0x6be   :  { %v4903_v42 = vadd.f32 %v4902_v22, %v4882_v27  ;;  %v4894_v56 = vmul.f32 %v4850_v35, %v4850_v35  ;;  %v4853_v19 = vsub.f32 %v8844_v12, %v8852_v54 }
 0x6bf   :  { %v4895_v40 = vmul.f32 %v4851_v61, %v4851_v61  ;;  %v4896_v33 = vmul.f32 %v4852_v44, %v4852_v44  ;;  %v4876_v55 = vsel %vm4737_vm3, %v4854_v25, 0.0 }
 0x6c0   :  { %v4904_v63 = vadd.f32 %v4903_v42, %v4883_v29  ;;  %v4897_v0 = vmul.f32 %v4853_v19, %v4853_v19  ;;  %v4898_v31 = vmul.f32 %v4876_v55, %v4876_v55 }
 0x6c2   :  { %v4905_v17 = vadd.f32 %v4904_v63, %v4884_v20 }
 0x6c4   :  { %v4906_v3 = vadd.f32 %v4905_v17, %v4885_v13  ;;  %v4928_v13 = vld [vmem:[%s9047_s8] sm:$0x1] }
 0x6c6   :  { %v4907_v8 = vadd.f32 %v4906_v3, %v4886_v32 }
 0x6c8   :  { %v4908_v49 = vadd.f32 %v4907_v8, %v4887_v24 }
 0x6ca   :  { %v4909_v5 = vadd.f32 %v4908_v49, %v4888_v10 }
 0x6cc   :  { %v4910_v53 = vadd.f32 %v4909_v5, %v4889_v43 }
 0x6ce   :  { %v4911_v46 = vadd.f32 %v4910_v53, %v4890_v38 }
 0x6d0   :  { %v4912_v51 = vadd.f32 %v4911_v46, %v4891_v57 }
 0x6d2   :  { %v4913_v18 = vadd.f32 %v4912_v51, %v4892_v59 }
 0x6d4   :  { %v4914_v26 = vadd.f32 %v4913_v18, %v4893_v16 }
 0x6d6   :  { %v4915_v28 = vadd.f32 %v4914_v26, %v4894_v56 }
 0x6d8   :  { %v4916_v39 = vadd.f32 %v4915_v28, %v4895_v40 }
 0x6da   :  { %v4917_v21 = vadd.f32 %v4916_v39, %v4896_v33 }
 0x6dc   :  { %v4918_v7 = vadd.f32 %v4917_v21, %v4897_v0 }
 0x6de   :  { %v4919_v34 = vadd.f32 %v4918_v7, %v4898_v31 }
 0x6e0   :  { %v4921_v27 = vrot.slane %v4919_v34, 4 }
 0x6e2   :  { %v4922_v22 = vadd.f32 %v4921_v27, %v4919_v34 }
 0x6e4   :  { %v4923_v29 = vrot.slane %v4922_v22, 2 }
 0x6e6   :  { %v4924_v42 = vadd.f32 %v4923_v29, %v4922_v22 }
 0x6e8   :  { %v4925_v23 = vrot.slane %v4924_v42, 1 }
 0x6ea   :  { %v4926_v20 = vadd.f32 %v4925_v23, %v4924_v42 }
 0x6ec   :  { %v4927_v63 = vmul.f32 0.0061728396, %v4926_v20 }
 0x6ee   :  { %v4929_v12 = vadd.f32 1e-05, %v4927_v63 }
 0x6f0   :  { %7063 = vrsqrt.f32 %v4929_v12 }
 0x6fd   :  { %v7064_v17 = vpop.eup %7063 }
 0x6fe   :  { %v4931_v32 = vmul.f32 %v7064_v17, %v4928_v13 }
 0x700   :  { %v4936_v3 = vrot.slane %v4931_v32, %v4935_v37 }
 0x702   :  { %v4938_v24 = vmul.f32 %v4936_v3, %v8859_v58  ;;  %v4939_v8 = vmul.f32 %v4936_v3, %v8863_v45  ;;  %v4940_v10 = vmul.f32 %v4936_v3, %v8869_v2  ;;  %v4941_v49 = vmul.f32 %v4936_v3, %v8877_v6  ;;  %v5568_v2 = vld [vmem:[%s9048_s9] ss:$0 sm:$0xff] }
 0x703   :  { %v4942_v43 = vmul.f32 %v4936_v3, %v8881_v9  ;;  %v4943_v5 = vmul.f32 %v4936_v3, %v8887_v52  ;;  %v4944_v38 = vmul.f32 %v4936_v3, %v8893_v1  ;;  %v4945_v53 = vmul.f32 %v4936_v3, %v8899_v47 }
 0x704   :  { %v4946_v11 = vmul.f32 %v4936_v3, %v8905_v50  ;;  %v4947_v57 = vmul.f32 %v4936_v3, %v8911_v15  ;;  %v4948_v58 = vmul.f32 %v4936_v3, %v8917_v48  ;;  %v4949_v45 = vmul.f32 %v4936_v3, %v8923_v14 }
 0x705   :  { %v4950_v6 = vmul.f32 %v4936_v3, %v4846_v30  ;;  %v4951_v9 = vmul.f32 %v4936_v3, %v4847_v4  ;;  %v4952_v46 = vmul.f32 %v4936_v3, %v4848_v41  ;;  %v4953_v52 = vmul.f32 %v4936_v3, %v4849_v60 }
 0x706   :  { %v4954_v59 = vmul.f32 %v4936_v3, %v4850_v35  ;;  %v4955_v1 = vmul.f32 %v4936_v3, %v4851_v61  ;;  %v4956_v51 = vmul.f32 %v4936_v3, %v4852_v44  ;;  %v4957_v47 = vmul.f32 %v4936_v3, %v4853_v19 }
 0x707   :  { %v4958_v16 = vmul.f32 %v4936_v3, %v4854_v25  ;;  %v4959_v50 = vmul.f32 %v4936_v3, %v4855_v36  ;;  %v4967_v15 = vadd.f32 %v5568_v2, %v4938_v24  ;;  %v4968_v48 = vadd.f32 %v5568_v2, %v4939_v8 }
 0x708   :  { %v4969_v14 = vadd.f32 %v5568_v2, %v4940_v10  ;;  %v4970_v18 = vadd.f32 %v5568_v2, %v4941_v49  ;;  %v4971_v56 = vadd.f32 %v5568_v2, %v4942_v43  ;;  %v4972_v26 = vadd.f32 %v5568_v2, %v4943_v5 }
 0x709   :  { %v4973_v40 = vadd.f32 %v5568_v2, %v4944_v38  ;;  %v4974_v30 = vadd.f32 %v5568_v2, %v4945_v53  ;;  %v4975_v4 = vadd.f32 %v5568_v2, %v4946_v11  ;;  %v4976_v41 = vadd.f32 %v5568_v2, %v4947_v57 }
 0x70a   :  { %v4977_v60 = vadd.f32 %v5568_v2, %v4948_v58  ;;  %v4978_v35 = vadd.f32 %v5568_v2, %v4949_v45  ;;  %v4979_v61 = vadd.f32 %v5568_v2, %v4950_v6  ;;  %v4980_v44 = vadd.f32 %v5568_v2, %v4951_v9 }
 0x70b   :  { %v4981_v19 = vadd.f32 %v5568_v2, %v4952_v46  ;;  %v4982_v25 = vadd.f32 %v5568_v2, %v4953_v52  ;;  %v4983_v28 = vadd.f32 %v5568_v2, %v4954_v59  ;;  %v4984_v33 = vadd.f32 %v5568_v2, %v4955_v1 }
 0x70c   :  { %v4985_v54 = vadd.f32 %v5568_v2, %v4956_v51  ;;  %v4986_v62 = vadd.f32 %v5568_v2, %v4957_v47  ;;  %v4987_v36 = vadd.f32 %v5568_v2, %v4958_v16  ;;  %v4988_v39 = vadd.f32 %v5568_v2, %v4959_v50 }
 0x70d   :  { %v4989_v55 = vmax.f32 %v4967_v15, 0.0  ;;  %v4990_v0 = vmax.f32 %v4968_v48, 0.0  ;;  %v4991_v21 = vmax.f32 %v4969_v14, 0.0  ;;  %v4992_v31 = vmax.f32 %v4970_v18, 0.0 }
 0x70e   :  { %v4993_v7 = vmax.f32 %v4971_v56, 0.0  ;;  %v4994_v34 = vmax.f32 %v4972_v26, 0.0  ;;  %v4995_v27 = vmax.f32 %v4973_v40, 0.0  ;;  %v4996_v22 = vmax.f32 %v4974_v30, 0.0 }
 0x70f   :  { %v4997_v29 = vmax.f32 %v4975_v4, 0.0  ;;  %v4998_v42 = vmax.f32 %v4976_v41, 0.0  ;;  %v4999_v23 = vmax.f32 %v4977_v60, 0.0  ;;  %v5000_v20 = vmax.f32 %v4978_v35, 0.0  ;;  %5011 = vst [vmem:[%s9049_s10] sm:$0xff] %v4989_v55  ;;  %5012 = vst [vmem:[%s9049_s10 + $0x8] sm:$0xff] %v4990_v0 }
 0x710   :  { %5013 = vst [vmem:[%s9049_s10 + $0x10] sm:$0xff] %v4991_v21  ;;  %5014 = vst [vmem:[%s9049_s10 + $0x18] sm:$0xff] %v4992_v31  ;;  %v5001_v63 = vmax.f32 %v4979_v61, 0.0  ;;  %v5002_v12 = vmax.f32 %v4980_v44, 0.0  ;;  %v5003_v13 = vmax.f32 %v4981_v19, 0.0  ;;  %v5004_v37 = vmax.f32 %v4982_v25, 0.0 }
 0x711   :  { %5015 = vst [vmem:[%s9049_s10 + $0x20] sm:$0xff] %v4993_v7  ;;  %5016 = vst [vmem:[%s9049_s10 + $0x28] sm:$0xff] %v4994_v34  ;;  %v5005_v17 = vmax.f32 %v4983_v28, 0.0  ;;  %v5006_v32 = vmax.f32 %v4984_v33, 0.0  ;;  %v5007_v3 = vmax.f32 %v4985_v54, 0.0  ;;  %v5008_v24 = vmax.f32 %v4986_v62, 0.0 }
 0x712   :  { %5017 = vst [vmem:[%s9049_s10 + $0x30] sm:$0xff] %v4995_v27  ;;  %5018 = vst [vmem:[%s9049_s10 + $0x38] sm:$0xff] %v4996_v22  ;;  %v5009_v8 = vmax.f32 %v4987_v36, 0.0  ;;  %v5010_v10 = vmax.f32 %v4988_v39, 0.0 }
 0x713   :  { %5019 = vst [vmem:[%s9049_s10 + $0x40] sm:$0xff] %v4997_v29  ;;  %5020 = vst [vmem:[%s9049_s10 + $0x48] sm:$0xff] %v4998_v42 }
 0x714   :  { %5021 = vst [vmem:[%s9049_s10 + $0x50] sm:$0xff] %v4999_v23  ;;  %5022 = vst [vmem:[%s9049_s10 + $0x58] sm:$0xff] %v5000_v20 }
 0x715   :  { %5023 = vst [vmem:[%s9049_s10 + $0x60] sm:$0xff] %v5001_v63  ;;  %5024 = vst [vmem:[%s9049_s10 + $0x68] sm:$0xff] %v5002_v12 }
 0x716   :  { %5025 = vst [vmem:[%s9049_s10 + $0x70] sm:$0xff] %v5003_v13  ;;  %5026 = vst [vmem:[%s9049_s10 + $0x78] sm:$0xff] %v5004_v37 }
 0x717   :  { %5027 = vst [vmem:[%s9049_s10 + $0x80] sm:$0xff] %v5005_v17  ;;  %5028 = vst [vmem:[%s9049_s10 + $0x88] sm:$0xff] %v5006_v32 }
 0x718   :  { %5029 = vst [vmem:[%s9049_s10 + $0x90] sm:$0xff] %v5007_v3  ;;  %5030 = vst [vmem:[%s9049_s10 + $0x98] sm:$0xff] %v5008_v24 }
 0x719   :  { %5031 = vst [vmem:[%s9049_s10 + $0xa0] sm:$0xff] %v5009_v8  ;;  %5032 = vst [vmem:[%s9049_s10 + $0xa8] sm:$0xff] %v5010_v10 }

</bundles_post_ra>
